<compile_context>
chip_gen: v7x
topology: tpu7x:2x2x1
jax: 0.10.0
libtpu: 0.0.40
codegen_flags: <defaults>
</compile_context>

<pallas_src>
import functools

import jax
import jax.numpy as jnp
from jax import lax
from jax.experimental import pallas as pl
from jax.experimental.pallas import tpu as pltpu

EPS = 1e-5
ACTION_SIZE = 256          # synthetic action space (module leaves it external)
H = W = 8                  # implied by policy_fc = Linear(2*8*8, ACTION_SIZE)
CH = 64                    # trunk channels
NUM_BLOCKS = 10
ROW_PAD = 16               # zero margin (multiple of 8 >= max |3x3 row shift| = 9)

_VMEM = pl.BlockSpec(memory_space=pltpu.MemorySpace.VMEM)


# ---------------------------------------------------------------------------
# Fused Pallas kernel: stem + 10 residual blocks + policy head + value head
# ---------------------------------------------------------------------------
def _pvnet_kernel(x0_ref, tmask_ref, w0_ref, wres_ref, gamma_ref, beta_ref,
                  wpv_ref, gpv_ref, bpv_ref, wpfc_ref, pfcb_ref,
                  wv1_ref, vb1_ref, wv2_ref, vb2_ref,
                  logp_ref, value_ref, apad_ref, *, batch):
    n = batch * H * W
    hw = H * W

    def batchnorm(y, g, b):
        # PyTorch training-mode BN forward: biased batch statistics, eps=1e-5.
        mean = jnp.mean(y, axis=0, keepdims=True)
        var = jnp.mean(jnp.square(y - mean), axis=0, keepdims=True)
        return (y - mean) * (g * lax.rsqrt(var + EPS)) + b

    # zero the row-padded scratch once; the 16-row top/bottom margins stay zero so
    # shifted windows read zeros outside the activation.
    apad_ref[...] = jnp.zeros_like(apad_ref)
    tm = tmask_ref[...]                                   # (n, 9) {0,1} tap masks

    def conv3x3(a, conv_idx):
        """3x3 / pad=1 conv of the (n, 64) activation with stacked weight #conv_idx.
        Patches are built entirely in VMEM: aligned store into the row-padded
        scratch, then 9 shifted+masked row windows feed 9 bf16 MXU matmuls."""
        apad_ref[ROW_PAD:ROW_PAD + n, :] = a              # aligned (offset 16) store
        acc = jnp.zeros((n, CH), jnp.float32)
        for di in range(3):
            for dj in range(3):
                tap = di * 3 + dj
                shift = (di - 1) * W + (dj - 1)
                window = apad_ref[ROW_PAD + shift:ROW_PAD + shift + n, :]
                if di == 1 and dj == 1:                   # center tap: mask == 1
                    patch = window.astype(jnp.bfloat16)
                else:
                    patch = (window * tm[:, tap:tap + 1]).astype(jnp.bfloat16)
                w_tap = wres_ref[conv_idx * 9 + tap]      # (64, 64) bf16, dynamic idx
                acc += jnp.dot(patch, w_tap, preferred_element_type=jnp.float32)
        return acc

    # ---- stem: conv1 (single K=36 matmul on pre-im2col'd input) + BN + ReLU ----
    y0 = jnp.dot(x0_ref[...], w0_ref[...], preferred_element_type=jnp.float32)
    h = jnp.maximum(
        batchnorm(y0, gamma_ref[pl.ds(0, 1), :], beta_ref[pl.ds(0, 1), :]), 0.0)

    # ---- 10 residual blocks, fully resident in VMEM ----------------------------
    def block(i, hcur):
        c1 = 2 * i
        c2 = 2 * i + 1
        a1 = jnp.maximum(
            batchnorm(conv3x3(hcur, c1),
                      gamma_ref[pl.ds(1 + c1, 1), :],
                      beta_ref[pl.ds(1 + c1, 1), :]), 0.0)
        a2 = batchnorm(conv3x3(a1, c2),
                       gamma_ref[pl.ds(1 + c2, 1), :],
                       beta_ref[pl.ds(1 + c2, 1), :]) + hcur
        return jnp.maximum(a2, 0.0)

    h = lax.fori_loop(0, NUM_BLOCKS, block, h)

    # ---- heads: packed 1x1 conv (policy c0, c1 | value) + BN + ReLU ------------
    hb = h.astype(jnp.bfloat16)
    pv = jnp.dot(hb, wpv_ref[...], preferred_element_type=jnp.float32)   # (n, 3)
    pv = jnp.maximum(batchnorm(pv, gpv_ref[...], bpv_ref[...]), 0.0)

    # policy FC + log_softmax.  The spatial contraction keeps rows in sublanes
    # (multiply-by-weight-plane then reduce) so no row->lane reshape is needed;
    # the NCHW flatten permutation is already folded into wpfc at init.
    pol = pv[:, 0:2].reshape(batch, hw, 2)                               # (B, 64, 2)
    q = pol[:, :, 0:1] * wpfc_ref[0] + pol[:, :, 1:2] * wpfc_ref[1]       # (B, 64, A)
    logits = jnp.sum(q, axis=1) + pfcb_ref[...]                           # (B, A)
    m = jnp.max(logits, axis=-1, keepdims=True)
    z = logits - m
    logp_ref[...] = z - jnp.log(jnp.sum(jnp.exp(z), axis=-1, keepdims=True))

    # value FC1 + ReLU + FC2 + tanh
    val = pv[:, 2:3].reshape(batch, hw, 1)                                # (B, 64, 1)
    hid = jnp.maximum(jnp.sum(val * wv1_ref[...], axis=1) + vb1_ref[...], 0.0)
    v = jnp.dot(hid, wv2_ref[...], preferred_element_type=jnp.float32) + vb2_ref[...]
    value_ref[...] = jnp.tanh(v)


# ---------------------------------------------------------------------------
# Host-side glue: stem im2col, tap masks, parameter packing
# ---------------------------------------------------------------------------
def im2col_3x3(x_nhwc):
    """3x3, pad=1, stride=1 patches: (B,H,W,C) -> (B*H*W, 9*C), (kh,kw,cin) order."""
    b, h, w, c = x_nhwc.shape
    xp = jnp.pad(x_nhwc, ((0, 0), (1, 1), (1, 1), (0, 0)))
    cols = [xp[:, di:di + h, dj:dj + w, :] for di in range(3) for dj in range(3)]
    return jnp.concatenate(cols, axis=-1).reshape(b * h * w, 9 * c)


def conv_w_to_mat(w_oihw):
    """PyTorch conv weight (Cout,Cin,KH,KW) -> (KH*KW*Cin, Cout)."""
    return jnp.transpose(w_oihw, (2, 3, 1, 0)).reshape(-1, w_oihw.shape[0])


def _tap_masks(batch):
    """(B*H*W, 9) float {0,1}: is tap (di,dj) inside the image at flat row r?"""
    r = jnp.arange(batch * H * W)
    hh = (r // W) % H
    ww = r % W
    cols = []
    for di in range(3):
        for dj in range(3):
            cols.append((hh + di - 1 >= 0) & (hh + di - 1 < H) &
                        (ww + dj - 1 >= 0) & (ww + dj - 1 < W))
    return jnp.stack(cols, axis=1).astype(jnp.float32)


def prepare_params(p):
    """Pack PyTorch-layout parameters into the kernel format (done once)."""
    w0 = conv_w_to_mat(p["conv1_w"]).astype(jnp.bfloat16)                 # (36, 64)

    wres, gammas, betas = [], [p["bn1_g"]], [p["bn1_b"]]
    for blk in p["res_blocks"]:
        for wk, gk, bk in (("w1", "g1", "b1"), ("w2", "g2", "b2")):
            wres.append(conv_w_to_mat(blk[wk]).reshape(9, CH, CH))        # (9,64,64)
            gammas.append(blk[gk])
            betas.append(blk[bk])
    wres = jnp.concatenate(wres, axis=0).astype(jnp.bfloat16)             # (180,64,64)
    gamma = jnp.stack(gammas, axis=0).astype(jnp.float32)                 # (21, 64)
    beta = jnp.stack(betas, axis=0).astype(jnp.float32)

    # packed 1x1 head conv: columns [policy ch0, policy ch1, value]
    wp_conv = p["policy_conv_w"].reshape(2, CH).T                         # (64, 2)
    wv_conv = p["value_conv_w"].reshape(1, CH).T                          # (64, 1)
    wpv = jnp.concatenate([wp_conv, wv_conv], axis=1).astype(jnp.bfloat16)
    gpv = jnp.concatenate([p["policy_bn_g"], p["value_bn_g"]]).reshape(1, 3)
    bpv = jnp.concatenate([p["policy_bn_b"], p["value_bn_b"]]).reshape(1, 3)

    # policy fc: PyTorch (A, 2*64) over NCHW flatten (c, h, w) -> (2, HW, A)
    wpfc = jnp.transpose(p["policy_fc_w"].reshape(ACTION_SIZE, 2, H * W), (1, 2, 0))
    pfcb = p["policy_fc_b"].reshape(1, ACTION_SIZE)

    wv1 = jnp.transpose(p["value_fc1_w"], (1, 0))                         # (64, 256)
    vb1 = p["value_fc1_b"].reshape(1, 256)
    wv2 = jnp.transpose(p["value_fc2_w"], (1, 0))                         # (256, 1)
    vb2 = p["value_fc2_b"].reshape(1, 1)
    return dict(w0=w0, wres=wres, gamma=gamma, beta=beta, wpv=wpv, gpv=gpv, bpv=bpv,
                wp=wpfc, pb=pfcb, wv1=wv1, vb1=vb1, wv2=wv2, vb2=vb2)


def init_params(key):
    def nrm(k, shape, scale=0.1):
        return scale * jax.random.normal(k, shape, dtype=jnp.float32)

    keys = iter(jax.random.split(key, 96))
    p = {"conv1_w": nrm(next(keys), (64, 4, 3, 3)),
         "bn1_g": 1.0 + nrm(next(keys), (64,), 0.05),
         "bn1_b": nrm(next(keys), (64,), 0.05),
         "res_blocks": []}
    for _ in range(NUM_BLOCKS):
        p["res_blocks"].append({
            "w1": nrm(next(keys), (64, 64, 3, 3)),
            "g1": 1.0 + nrm(next(keys), (64,), 0.05),
            "b1": nrm(next(keys), (64,), 0.05),
            "w2": nrm(next(keys), (64, 64, 3, 3)),
            "g2": 1.0 + nrm(next(keys), (64,), 0.05),
            "b2": nrm(next(keys), (64,), 0.05)})
    p["policy_conv_w"] = nrm(next(keys), (2, 64, 1, 1))
    p["policy_bn_g"] = 1.0 + nrm(next(keys), (2,), 0.05)
    p["policy_bn_b"] = nrm(next(keys), (2,), 0.05)
    p["policy_fc_w"] = nrm(next(keys), (ACTION_SIZE, 2 * H * W))
    p["policy_fc_b"] = nrm(next(keys), (ACTION_SIZE,), 0.05)
    p["value_conv_w"] = nrm(next(keys), (1, 64, 1, 1))
    p["value_bn_g"] = 1.0 + nrm(next(keys), (1,), 0.05)
    p["value_bn_b"] = nrm(next(keys), (1,), 0.05)
    p["value_fc1_w"] = nrm(next(keys), (256, H * W))
    p["value_fc1_b"] = nrm(next(keys), (256,), 0.05)
    p["value_fc2_w"] = nrm(next(keys), (1, 256))
    p["value_fc2_b"] = nrm(next(keys), (1,), 0.05)
    return p


def policy_value_forward(x_nchw, kp):
    """x_nchw: (B, 4, 8, 8) f32 -> (log_policy (B, ACTION_SIZE), value (B, 1))."""
    b = x_nchw.shape[0]
    n = b * H * W
    x = jnp.transpose(x_nchw, (0, 2, 3, 1))                      # NHWC
    x0 = im2col_3x3(x).astype(jnp.bfloat16)                      # tiny stem im2col
    tmask = _tap_masks(b)

    kernel = functools.partial(_pvnet_kernel, batch=b)
    return pl.pallas_call(
        kernel,
        out_shape=(jax.ShapeDtypeStruct((b, ACTION_SIZE), jnp.float32),
                   jax.ShapeDtypeStruct((b, 1), jnp.float32)),
        in_specs=[_VMEM] * 15,
        out_specs=(_VMEM, _VMEM),
        scratch_shapes=[pltpu.VMEM((n + 2 * ROW_PAD, CH), jnp.float32)],
    )(x0, tmask, kp["w0"], kp["wres"], kp["gamma"], kp["beta"],
      kp["wpv"], kp["gpv"], kp["bpv"], kp["wp"], kp["pb"],
      kp["wv1"], kp["vb1"], kp["wv2"], kp["vb2"])


# ---------------------------------------------------------------------------
# Pure-JAX reference (matches the kernel's bf16 matmul operands) for validation
# ---------------------------------------------------------------------------
def reference_forward(x_nchw, params):
    b = x_nchw.shape[0]

    def conv3x3_ref(a_nhwc, w_oihw):
        cols = im2col_3x3(a_nhwc).astype(jnp.bfloat16)
        wmat = conv_w_to_mat(w_oihw).astype(jnp.bfloat16)
        return jnp.dot(cols, wmat, preferred_element_type=jnp.float32)

    def bn(y, g, bt):
        mean = jnp.mean(y, axis=0, keepdims=True)
        var = jnp.mean(jnp.square(y - mean), axis=0, keepdims=True)
        return (y - mean) * (g.reshape(1, -1) * lax.rsqrt(var + EPS)) + bt.reshape(1, -1)

    x = jnp.transpose(x_nchw, (0, 2, 3, 1))
    h = jnp.maximum(bn(conv3x3_ref(x, params["conv1_w"]),
                       params["bn1_g"], params["bn1_b"]), 0.0)
    for blk in params["res_blocks"]:
        a1 = jnp.maximum(bn(conv3x3_ref(h.reshape(b, H, W, CH), blk["w1"]),
                            blk["g1"], blk["b1"]), 0.0)
        a2 = bn(conv3x3_ref(a1.reshape(b, H, W, CH), blk["w2"]),
                blk["g2"], blk["b2"]) + h
        h = jnp.maximum(a2, 0.0)

    hb = h.astype(jnp.bfloat16)
    pol = jnp.dot(hb, params["policy_conv_w"].reshape(2, CH).T.astype(jnp.bfloat16),
                  preferred_element_type=jnp.float32)
    pol = jnp.maximum(bn(pol, params["policy_bn_g"], params["policy_bn_b"]), 0.0)
    pol = pol.reshape(b, H, W, 2).transpose(0, 3, 1, 2).reshape(b, 2 * H * W)
    logp = jax.nn.log_softmax(pol @ params["policy_fc_w"].T + params["policy_fc_b"], -1)

    val = jnp.dot(hb, params["value_conv_w"].reshape(1, CH).T.astype(jnp.bfloat16),
                  preferred_element_type=jnp.float32)
    val = jnp.maximum(bn(val, params["value_bn_g"], params["value_bn_b"]), 0.0)
    val = val.reshape(b, H, W, 1).transpose(0, 3, 1, 2).reshape(b, H * W)
    hid = jnp.maximum(val @ params["value_fc1_w"].T + params["value_fc1_b"], 0.0)
    v = jnp.tanh(hid @ params["value_fc2_w"].T + params["value_fc2_b"])
    return logp, v


if __name__ == "__main__":
    key = jax.random.PRNGKey(0)
    k_param, k_x = jax.random.split(key)
    params = init_params(k_param)
    kparams = prepare_params(params)
    x = jax.random.normal(k_x, (2, 4, H, W), dtype=jnp.float32)   # NCHW, like PyTorch

    fwd = jax.jit(policy_value_forward)
    log_policy, value = fwd(x, kparams)
    jax.block_until_ready((log_policy, value))

    assert log_policy.shape == (2, ACTION_SIZE)
    assert value.shape == (2, 1)
    assert bool(jnp.allclose(jnp.sum(jnp.exp(log_policy), axis=-1), 1.0, atol=1e-3))
    assert bool(jnp.all(jnp.abs(value) <= 1.0))

    # numerical check vs. a pure-JAX reference with matching bf16 matmul operands
    ref_logp, ref_value = jax.jit(reference_forward)(x, params)
    assert bool(jnp.allclose(log_policy, ref_logp, atol=5e-2))
    assert bool(jnp.allclose(value, ref_value, atol=5e-2))

    print("KERNEL_OK")
</pallas_src>

<mosaic_0001>
module attributes {stable_mosaic.version = 11 : i64} {
  func.func @_pvnet_kernel(%arg0: memref<128x36xbf16, #tpu.memory_space<vmem>>, %arg1: memref<128x9xf32, #tpu.memory_space<vmem>>, %arg2: memref<36x64xbf16, #tpu.memory_space<vmem>>, %arg3: memref<180x64x64xbf16, #tpu.memory_space<vmem>>, %arg4: memref<21x64xf32, #tpu.memory_space<vmem>>, %arg5: memref<21x64xf32, #tpu.memory_space<vmem>>, %arg6: memref<64x3xbf16, #tpu.memory_space<vmem>>, %arg7: memref<1x3xf32, #tpu.memory_space<vmem>>, %arg8: memref<1x3xf32, #tpu.memory_space<vmem>>, %arg9: memref<2x64x256xf32, #tpu.memory_space<vmem>>, %arg10: memref<1x256xf32, #tpu.memory_space<vmem>>, %arg11: memref<64x256xf32, #tpu.memory_space<vmem>>, %arg12: memref<1x256xf32, #tpu.memory_space<vmem>>, %arg13: memref<256x1xf32, #tpu.memory_space<vmem>>, %arg14: memref<1x1xf32, #tpu.memory_space<vmem>>, %arg15: memref<2x256xf32, #tpu.memory_space<vmem>>, %arg16: memref<2x1xf32, #tpu.memory_space<vmem>>, %arg17: memref<160x64xf32, #tpu.memory_space<vmem>>) attributes {dimension_semantics = [], scalar_prefetch = 0 : i64, scratch_operands = 1 : i64, tpu.core_type = #tpu.core_type<tc>} {
    %cst = arith.constant 0.000000e+00 : f32
    %0 = vector.broadcast %cst : f32 to vector<160x64xf32>
    %c0 = arith.constant 0 : index
    %c0_0 = arith.constant 0 : index
    %1 = vector.load %arg17[%c0, %c0_0] : memref<160x64xf32, #tpu.memory_space<vmem>>, vector<160x64xf32>
    tpu.vector_store %arg17[%c0, %c0_0], %0 {strides = array<i32>} : memref<160x64xf32, #tpu.memory_space<vmem>>, vector<160x64xf32>,
    %c0_1 = arith.constant 0 : index
    %c0_2 = arith.constant 0 : index
    %2 = vector.load %arg1[%c0_1, %c0_2] : memref<128x9xf32, #tpu.memory_space<vmem>>, vector<128x9xf32>
    %c0_3 = arith.constant 0 : index
    %c0_4 = arith.constant 0 : index
    %3 = vector.load %arg0[%c0_3, %c0_4] : memref<128x36xbf16, #tpu.memory_space<vmem>>, vector<128x36xbf16>
    %c0_5 = arith.constant 0 : index
    %c0_6 = arith.constant 0 : index
    %4 = vector.load %arg2[%c0_5, %c0_6] : memref<36x64xbf16, #tpu.memory_space<vmem>>, vector<36x64xbf16>
    %cst_7 = arith.constant dense<0.000000e+00> : vector<128x64xf32>
    %5 = tpu.matmul %3, %4, %cst_7 {dimension_numbers = #tpu.dot_dimension_numbers<[1], [0], [0], [1], [0, 0, 1, 1], [], []>} : vector<128x36xbf16>, vector<36x64xbf16>, vector<128x64xf32> -> vector<128x64xf32>
    %c0_8 = arith.constant 0 : index
    %c0_9 = arith.constant 0 : index
    %6 = vector.load %arg4[%c0_8, %c0_9] : memref<21x64xf32, #tpu.memory_space<vmem>>, vector<1x64xf32>
    %c0_10 = arith.constant 0 : index
    %c0_11 = arith.constant 0 : index
    %7 = vector.load %arg5[%c0_10, %c0_11] : memref<21x64xf32, #tpu.memory_space<vmem>>, vector<1x64xf32>
    %cst_12 = arith.constant dense<0.000000e+00> : vector<64xf32>
    %8 = vector.multi_reduction <add>, %5, %cst_12 [0] : vector<128x64xf32> to vector<64xf32>
    %9 = vector.shape_cast %8 : vector<64xf32> to vector<1x64xf32>
    %cst_13 = arith.constant 1.280000e+02 : f32
    %10 = vector.broadcast %cst_13 : f32 to vector<1x64xf32>
    %11 = arith.divf %9, %10 : vector<1x64xf32>
    %12 = vector.broadcast %11 : vector<1x64xf32> to vector<128x64xf32>
    %13 = arith.subf %5, %12 : vector<128x64xf32>
    %14 = arith.mulf %13, %13 : vector<128x64xf32>
    %cst_14 = arith.constant dense<0.000000e+00> : vector<64xf32>
    %15 = vector.multi_reduction <add>, %14, %cst_14 [0] : vector<128x64xf32> to vector<64xf32>
    %16 = vector.shape_cast %15 : vector<64xf32> to vector<1x64xf32>
    %cst_15 = arith.constant 1.280000e+02 : f32
    %17 = vector.broadcast %cst_15 : f32 to vector<1x64xf32>
    %18 = arith.divf %16, %17 : vector<1x64xf32>
    %19 = vector.broadcast %11 : vector<1x64xf32> to vector<128x64xf32>
    %20 = arith.subf %5, %19 : vector<128x64xf32>
    %cst_16 = arith.constant 9.99999974E-6 : f32
    %21 = vector.broadcast %cst_16 : f32 to vector<1x64xf32>
    %22 = arith.addf %18, %21 : vector<1x64xf32>
    %23 = math.rsqrt %22 : vector<1x64xf32>
    %24 = arith.mulf %6, %23 : vector<1x64xf32>
    %25 = vector.broadcast %24 : vector<1x64xf32> to vector<128x64xf32>
    %26 = arith.mulf %20, %25 : vector<128x64xf32>
    %27 = vector.broadcast %7 : vector<1x64xf32> to vector<128x64xf32>
    %28 = arith.addf %26, %27 : vector<128x64xf32>
    %cst_17 = arith.constant 0.000000e+00 : f32
    %29 = vector.broadcast %cst_17 : f32 to vector<128x64xf32>
    %30 = arith.maximumf %28, %29 : vector<128x64xf32>
    %c0_i32 = arith.constant 0 : i32
    %c10_i32 = arith.constant 10 : i32
    %31 = arith.addi %c0_i32, %c10_i32 : i32
    %c1_i32 = arith.constant 1 : i32
    %32 = scf.for %arg18 = %c0_i32 to %31 step %c1_i32 iter_args(%arg19 = %30) -> (vector<128x64xf32>)  : i32 {
      %c2_i32 = arith.constant 2 : i32
      %113 = arith.muli %c2_i32, %arg18 : i32
      %c2_i32_57 = arith.constant 2 : i32
      %114 = arith.muli %c2_i32_57, %arg18 : i32
      %c1_i32_58 = arith.constant 1 : i32
      %115 = arith.addi %114, %c1_i32_58 : i32
      %c16 = arith.constant 16 : index
      %c0_59 = arith.constant 0 : index
      %116 = vector.load %arg17[%c16, %c0_59] : memref<160x64xf32, #tpu.memory_space<vmem>>, vector<128x64xf32>
      tpu.vector_store %arg17[%c16, %c0_59], %arg19 {strides = array<i32>} : memref<160x64xf32, #tpu.memory_space<vmem>>, vector<128x64xf32>,
      %cst_60 = arith.constant 0.000000e+00 : f32
      %117 = vector.broadcast %cst_60 : f32 to vector<128x64xf32>
      %c7 = arith.constant 7 : index
      %c0_61 = arith.constant 0 : index
      %118 = vector.load %arg17[%c7, %c0_61] : memref<160x64xf32, #tpu.memory_space<vmem>>, vector<128x64xf32>
      %119 = vector.extract_strided_slice %2 {offsets = [0, 0], sizes = [128, 1], strides = [1, 1]} : vector<128x9xf32> to vector<128x1xf32>
      %120 = vector.broadcast %119 : vector<128x1xf32> to vector<128x64xf32>
      %121 = arith.mulf %118, %120 : vector<128x64xf32>
      %122 = arith.truncf %121 : vector<128x64xf32> to vector<128x64xbf16>
      %c9_i32 = arith.constant 9 : i32
      %123 = arith.muli %113, %c9_i32 : i32
      %c0_i32_62 = arith.constant 0 : i32
      %124 = arith.addi %123, %c0_i32_62 : i32
      %125 = arith.index_cast %124 : i32 to index
      %c0_63 = arith.constant 0 : index
      %c0_64 = arith.constant 0 : index
      %126 = vector.load %arg3[%125, %c0_63, %c0_64] : memref<180x64x64xbf16, #tpu.memory_space<vmem>>, vector<1x64x64xbf16>
      %127 = vector.shape_cast %126 : vector<1x64x64xbf16> to vector<64x64xbf16>
      %cst_65 = arith.constant dense<0.000000e+00> : vector<128x64xf32>
      %128 = tpu.matmul %122, %127, %cst_65 {dimension_numbers = #tpu.dot_dimension_numbers<[1], [0], [0], [1], [0, 0, 1, 1], [], []>} : vector<128x64xbf16>, vector<64x64xbf16>, vector<128x64xf32> -> vector<128x64xf32>
      %129 = arith.addf %117, %128 : vector<128x64xf32>
      %c8 = arith.constant 8 : index
      %c0_66 = arith.constant 0 : index
      %130 = vector.load %arg17[%c8, %c0_66] : memref<160x64xf32, #tpu.memory_space<vmem>>, vector<128x64xf32>
      %131 = vector.extract_strided_slice %2 {offsets = [0, 1], sizes = [128, 1], strides = [1, 1]} : vector<128x9xf32> to vector<128x1xf32>
      %132 = vector.broadcast %131 : vector<128x1xf32> to vector<128x64xf32>
      %133 = arith.mulf %130, %132 : vector<128x64xf32>
      %134 = arith.truncf %133 : vector<128x64xf32> to vector<128x64xbf16>
      %c9_i32_67 = arith.constant 9 : i32
      %135 = arith.muli %113, %c9_i32_67 : i32
      %c1_i32_68 = arith.constant 1 : i32
      %136 = arith.addi %135, %c1_i32_68 : i32
      %137 = arith.index_cast %136 : i32 to index
      %c0_69 = arith.constant 0 : index
      %c0_70 = arith.constant 0 : index
      %138 = vector.load %arg3[%137, %c0_69, %c0_70] : memref<180x64x64xbf16, #tpu.memory_space<vmem>>, vector<1x64x64xbf16>
      %139 = vector.shape_cast %138 : vector<1x64x64xbf16> to vector<64x64xbf16>
      %cst_71 = arith.constant dense<0.000000e+00> : vector<128x64xf32>
      %140 = tpu.matmul %134, %139, %cst_71 {dimension_numbers = #tpu.dot_dimension_numbers<[1], [0], [0], [1], [0, 0, 1, 1], [], []>} : vector<128x64xbf16>, vector<64x64xbf16>, vector<128x64xf32> -> vector<128x64xf32>
      %141 = arith.addf %129, %140 : vector<128x64xf32>
      %c9 = arith.constant 9 : index
      %c0_72 = arith.constant 0 : index
      %142 = vector.load %arg17[%c9, %c0_72] : memref<160x64xf32, #tpu.memory_space<vmem>>, vector<128x64xf32>
      %143 = vector.extract_strided_slice %2 {offsets = [0, 2], sizes = [128, 1], strides = [1, 1]} : vector<128x9xf32> to vector<128x1xf32>
      %144 = vector.broadcast %143 : vector<128x1xf32> to vector<128x64xf32>
      %145 = arith.mulf %142, %144 : vector<128x64xf32>
      %146 = arith.truncf %145 : vector<128x64xf32> to vector<128x64xbf16>
      %c9_i32_73 = arith.constant 9 : i32
      %147 = arith.muli %113, %c9_i32_73 : i32
      %c2_i32_74 = arith.constant 2 : i32
      %148 = arith.addi %147, %c2_i32_74 : i32
      %149 = arith.index_cast %148 : i32 to index
      %c0_75 = arith.constant 0 : index
      %c0_76 = arith.constant 0 : index
      %150 = vector.load %arg3[%149, %c0_75, %c0_76] : memref<180x64x64xbf16, #tpu.memory_space<vmem>>, vector<1x64x64xbf16>
      %151 = vector.shape_cast %150 : vector<1x64x64xbf16> to vector<64x64xbf16>
      %cst_77 = arith.constant dense<0.000000e+00> : vector<128x64xf32>
      %152 = tpu.matmul %146, %151, %cst_77 {dimension_numbers = #tpu.dot_dimension_numbers<[1], [0], [0], [1], [0, 0, 1, 1], [], []>} : vector<128x64xbf16>, vector<64x64xbf16>, vector<128x64xf32> -> vector<128x64xf32>
      %153 = arith.addf %141, %152 : vector<128x64xf32>
      %c15 = arith.constant 15 : index
      %c0_78 = arith.constant 0 : index
      %154 = vector.load %arg17[%c15, %c0_78] : memref<160x64xf32, #tpu.memory_space<vmem>>, vector<128x64xf32>
      %155 = vector.extract_strided_slice %2 {offsets = [0, 3], sizes = [128, 1], strides = [1, 1]} : vector<128x9xf32> to vector<128x1xf32>
      %156 = vector.broadcast %155 : vector<128x1xf32> to vector<128x64xf32>
      %157 = arith.mulf %154, %156 : vector<128x64xf32>
      %158 = arith.truncf %157 : vector<128x64xf32> to vector<128x64xbf16>
      %c9_i32_79 = arith.constant 9 : i32
      %159 = arith.muli %113, %c9_i32_79 : i32
      %c3_i32 = arith.constant 3 : i32
      %160 = arith.addi %159, %c3_i32 : i32
      %161 = arith.index_cast %160 : i32 to index
      %c0_80 = arith.constant 0 : index
      %c0_81 = arith.constant 0 : index
      %162 = vector.load %arg3[%161, %c0_80, %c0_81] : memref<180x64x64xbf16, #tpu.memory_space<vmem>>, vector<1x64x64xbf16>
      %163 = vector.shape_cast %162 : vector<1x64x64xbf16> to vector<64x64xbf16>
      %cst_82 = arith.constant dense<0.000000e+00> : vector<128x64xf32>
      %164 = tpu.matmul %158, %163, %cst_82 {dimension_numbers = #tpu.dot_dimension_numbers<[1], [0], [0], [1], [0, 0, 1, 1], [], []>} : vector<128x64xbf16>, vector<64x64xbf16>, vector<128x64xf32> -> vector<128x64xf32>
      %165 = arith.addf %153, %164 : vector<128x64xf32>
      %c16_83 = arith.constant 16 : index
      %c0_84 = arith.constant 0 : index
      %166 = vector.load %arg17[%c16_83, %c0_84] : memref<160x64xf32, #tpu.memory_space<vmem>>, vector<128x64xf32>
      %167 = arith.truncf %166 : vector<128x64xf32> to vector<128x64xbf16>
      %c9_i32_85 = arith.constant 9 : i32
      %168 = arith.muli %113, %c9_i32_85 : i32
      %c4_i32 = arith.constant 4 : i32
      %169 = arith.addi %168, %c4_i32 : i32
      %170 = arith.index_cast %169 : i32 to index
      %c0_86 = arith.constant 0 : index
      %c0_87 = arith.constant 0 : index
      %171 = vector.load %arg3[%170, %c0_86, %c0_87] : memref<180x64x64xbf16, #tpu.memory_space<vmem>>, vector<1x64x64xbf16>
      %172 = vector.shape_cast %171 : vector<1x64x64xbf16> to vector<64x64xbf16>
      %cst_88 = arith.constant dense<0.000000e+00> : vector<128x64xf32>
      %173 = tpu.matmul %167, %172, %cst_88 {dimension_numbers = #tpu.dot_dimension_numbers<[1], [0], [0], [1], [0, 0, 1, 1], [], []>} : vector<128x64xbf16>, vector<64x64xbf16>, vector<128x64xf32> -> vector<128x64xf32>
      %174 = arith.addf %165, %173 : vector<128x64xf32>
      %c17 = arith.constant 17 : index
      %c0_89 = arith.constant 0 : index
      %175 = vector.load %arg17[%c17, %c0_89] : memref<160x64xf32, #tpu.memory_space<vmem>>, vector<128x64xf32>
      %176 = vector.extract_strided_slice %2 {offsets = [0, 5], sizes = [128, 1], strides = [1, 1]} : vector<128x9xf32> to vector<128x1xf32>
      %177 = vector.broadcast %176 : vector<128x1xf32> to vector<128x64xf32>
      %178 = arith.mulf %175, %177 : vector<128x64xf32>
      %179 = arith.truncf %178 : vector<128x64xf32> to vector<128x64xbf16>
      %c9_i32_90 = arith.constant 9 : i32
      %180 = arith.muli %113, %c9_i32_90 : i32
      %c5_i32 = arith.constant 5 : i32
      %181 = arith.addi %180, %c5_i32 : i32
      %182 = arith.index_cast %181 : i32 to index
      %c0_91 = arith.constant 0 : index
      %c0_92 = arith.constant 0 : index
      %183 = vector.load %arg3[%182, %c0_91, %c0_92] : memref<180x64x64xbf16, #tpu.memory_space<vmem>>, vector<1x64x64xbf16>
      %184 = vector.shape_cast %183 : vector<1x64x64xbf16> to vector<64x64xbf16>
      %cst_93 = arith.constant dense<0.000000e+00> : vector<128x64xf32>
      %185 = tpu.matmul %179, %184, %cst_93 {dimension_numbers = #tpu.dot_dimension_numbers<[1], [0], [0], [1], [0, 0, 1, 1], [], []>} : vector<128x64xbf16>, vector<64x64xbf16>, vector<128x64xf32> -> vector<128x64xf32>
      %186 = arith.addf %174, %185 : vector<128x64xf32>
      %c23 = arith.constant 23 : index
      %c0_94 = arith.constant 0 : index
      %187 = vector.load %arg17[%c23, %c0_94] : memref<160x64xf32, #tpu.memory_space<vmem>>, vector<128x64xf32>
      %188 = vector.extract_strided_slice %2 {offsets = [0, 6], sizes = [128, 1], strides = [1, 1]} : vector<128x9xf32> to vector<128x1xf32>
      %189 = vector.broadcast %188 : vector<128x1xf32> to vector<128x64xf32>
      %190 = arith.mulf %187, %189 : vector<128x64xf32>
      %191 = arith.truncf %190 : vector<128x64xf32> to vector<128x64xbf16>
      %c9_i32_95 = arith.constant 9 : i32
      %192 = arith.muli %113, %c9_i32_95 : i32
      %c6_i32 = arith.constant 6 : i32
      %193 = arith.addi %192, %c6_i32 : i32
      %194 = arith.index_cast %193 : i32 to index
      %c0_96 = arith.constant 0 : index
      %c0_97 = arith.constant 0 : index
      %195 = vector.load %arg3[%194, %c0_96, %c0_97] : memref<180x64x64xbf16, #tpu.memory_space<vmem>>, vector<1x64x64xbf16>
      %196 = vector.shape_cast %195 : vector<1x64x64xbf16> to vector<64x64xbf16>
      %cst_98 = arith.constant dense<0.000000e+00> : vector<128x64xf32>
      %197 = tpu.matmul %191, %196, %cst_98 {dimension_numbers = #tpu.dot_dimension_numbers<[1], [0], [0], [1], [0, 0, 1, 1], [], []>} : vector<128x64xbf16>, vector<64x64xbf16>, vector<128x64xf32> -> vector<128x64xf32>
      %198 = arith.addf %186, %197 : vector<128x64xf32>
      %c24 = arith.constant 24 : index
      %c0_99 = arith.constant 0 : index
      %199 = vector.load %arg17[%c24, %c0_99] : memref<160x64xf32, #tpu.memory_space<vmem>>, vector<128x64xf32>
      %200 = vector.extract_strided_slice %2 {offsets = [0, 7], sizes = [128, 1], strides = [1, 1]} : vector<128x9xf32> to vector<128x1xf32>
      %201 = vector.broadcast %200 : vector<128x1xf32> to vector<128x64xf32>
      %202 = arith.mulf %199, %201 : vector<128x64xf32>
      %203 = arith.truncf %202 : vector<128x64xf32> to vector<128x64xbf16>
      %c9_i32_100 = arith.constant 9 : i32
      %204 = arith.muli %113, %c9_i32_100 : i32
      %c7_i32 = arith.constant 7 : i32
      %205 = arith.addi %204, %c7_i32 : i32
      %206 = arith.index_cast %205 : i32 to index
      %c0_101 = arith.constant 0 : index
      %c0_102 = arith.constant 0 : index
      %207 = vector.load %arg3[%206, %c0_101, %c0_102] : memref<180x64x64xbf16, #tpu.memory_space<vmem>>, vector<1x64x64xbf16>
      %208 = vector.shape_cast %207 : vector<1x64x64xbf16> to vector<64x64xbf16>
      %cst_103 = arith.constant dense<0.000000e+00> : vector<128x64xf32>
      %209 = tpu.matmul %203, %208, %cst_103 {dimension_numbers = #tpu.dot_dimension_numbers<[1], [0], [0], [1], [0, 0, 1, 1], [], []>} : vector<128x64xbf16>, vector<64x64xbf16>, vector<128x64xf32> -> vector<128x64xf32>
      %210 = arith.addf %198, %209 : vector<128x64xf32>
      %c25 = arith.constant 25 : index
      %c0_104 = arith.constant 0 : index
      %211 = vector.load %arg17[%c25, %c0_104] : memref<160x64xf32, #tpu.memory_space<vmem>>, vector<128x64xf32>
      %212 = vector.extract_strided_slice %2 {offsets = [0, 8], sizes = [128, 1], strides = [1, 1]} : vector<128x9xf32> to vector<128x1xf32>
      %213 = vector.broadcast %212 : vector<128x1xf32> to vector<128x64xf32>
      %214 = arith.mulf %211, %213 : vector<128x64xf32>
      %215 = arith.truncf %214 : vector<128x64xf32> to vector<128x64xbf16>
      %c9_i32_105 = arith.constant 9 : i32
      %216 = arith.muli %113, %c9_i32_105 : i32
      %c8_i32 = arith.constant 8 : i32
      %217 = arith.addi %216, %c8_i32 : i32
      %218 = arith.index_cast %217 : i32 to index
      %c0_106 = arith.constant 0 : index
      %c0_107 = arith.constant 0 : index
      %219 = vector.load %arg3[%218, %c0_106, %c0_107] : memref<180x64x64xbf16, #tpu.memory_space<vmem>>, vector<1x64x64xbf16>
      %220 = vector.shape_cast %219 : vector<1x64x64xbf16> to vector<64x64xbf16>
      %cst_108 = arith.constant dense<0.000000e+00> : vector<128x64xf32>
      %221 = tpu.matmul %215, %220, %cst_108 {dimension_numbers = #tpu.dot_dimension_numbers<[1], [0], [0], [1], [0, 0, 1, 1], [], []>} : vector<128x64xbf16>, vector<64x64xbf16>, vector<128x64xf32> -> vector<128x64xf32>
      %222 = arith.addf %210, %221 : vector<128x64xf32>
      %c1_i32_109 = arith.constant 1 : i32
      %223 = arith.addi %c1_i32_109, %113 : i32
      %224 = arith.index_cast %223 : i32 to index
      %c0_110 = arith.constant 0 : index
      %225 = vector.load %arg4[%224, %c0_110] : memref<21x64xf32, #tpu.memory_space<vmem>>, vector<1x64xf32>
      %c1_i32_111 = arith.constant 1 : i32
      %226 = arith.addi %c1_i32_111, %113 : i32
      %227 = arith.index_cast %226 : i32 to index
      %c0_112 = arith.constant 0 : index
      %228 = vector.load %arg5[%227, %c0_112] : memref<21x64xf32, #tpu.memory_space<vmem>>, vector<1x64xf32>
      %cst_113 = arith.constant dense<0.000000e+00> : vector<64xf32>
      %229 = vector.multi_reduction <add>, %222, %cst_113 [0] : vector<128x64xf32> to vector<64xf32>
      %230 = vector.shape_cast %229 : vector<64xf32> to vector<1x64xf32>
      %cst_114 = arith.constant 1.280000e+02 : f32
      %231 = vector.broadcast %cst_114 : f32 to vector<1x64xf32>
      %232 = arith.divf %230, %231 : vector<1x64xf32>
      %233 = vector.broadcast %232 : vector<1x64xf32> to vector<128x64xf32>
      %234 = arith.subf %222, %233 : vector<128x64xf32>
      %235 = arith.mulf %234, %234 : vector<128x64xf32>
      %cst_115 = arith.constant dense<0.000000e+00> : vector<64xf32>
      %236 = vector.multi_reduction <add>, %235, %cst_115 [0] : vector<128x64xf32> to vector<64xf32>
      %237 = vector.shape_cast %236 : vector<64xf32> to vector<1x64xf32>
      %cst_116 = arith.constant 1.280000e+02 : f32
      %238 = vector.broadcast %cst_116 : f32 to vector<1x64xf32>
      %239 = arith.divf %237, %238 : vector<1x64xf32>
      %240 = vector.broadcast %232 : vector<1x64xf32> to vector<128x64xf32>
      %241 = arith.subf %222, %240 : vector<128x64xf32>
      %cst_117 = arith.constant 9.99999974E-6 : f32
      %242 = vector.broadcast %cst_117 : f32 to vector<1x64xf32>
      %243 = arith.addf %239, %242 : vector<1x64xf32>
      %244 = math.rsqrt %243 : vector<1x64xf32>
      %245 = arith.mulf %225, %244 : vector<1x64xf32>
      %246 = vector.broadcast %245 : vector<1x64xf32> to vector<128x64xf32>
      %247 = arith.mulf %241, %246 : vector<128x64xf32>
      %248 = vector.broadcast %228 : vector<1x64xf32> to vector<128x64xf32>
      %249 = arith.addf %247, %248 : vector<128x64xf32>
      %cst_118 = arith.constant 0.000000e+00 : f32
      %250 = vector.broadcast %cst_118 : f32 to vector<128x64xf32>
      %251 = arith.maximumf %249, %250 : vector<128x64xf32>
      %c16_119 = arith.constant 16 : index
      %c0_120 = arith.constant 0 : index
      %252 = vector.load %arg17[%c16_119, %c0_120] : memref<160x64xf32, #tpu.memory_space<vmem>>, vector<128x64xf32>
      tpu.vector_store %arg17[%c16_119, %c0_120], %251 {strides = array<i32>} : memref<160x64xf32, #tpu.memory_space<vmem>>, vector<128x64xf32>,
      %cst_121 = arith.constant 0.000000e+00 : f32
      %253 = vector.broadcast %cst_121 : f32 to vector<128x64xf32>
      %c7_122 = arith.constant 7 : index
      %c0_123 = arith.constant 0 : index
      %254 = vector.load %arg17[%c7_122, %c0_123] : memref<160x64xf32, #tpu.memory_space<vmem>>, vector<128x64xf32>
      %255 = vector.extract_strided_slice %2 {offsets = [0, 0], sizes = [128, 1], strides = [1, 1]} : vector<128x9xf32> to vector<128x1xf32>
      %256 = vector.broadcast %255 : vector<128x1xf32> to vector<128x64xf32>
      %257 = arith.mulf %254, %256 : vector<128x64xf32>
      %258 = arith.truncf %257 : vector<128x64xf32> to vector<128x64xbf16>
      %c9_i32_124 = arith.constant 9 : i32
      %259 = arith.muli %115, %c9_i32_124 : i32
      %c0_i32_125 = arith.constant 0 : i32
      %260 = arith.addi %259, %c0_i32_125 : i32
      %261 = arith.index_cast %260 : i32 to index
      %c0_126 = arith.constant 0 : index
      %c0_127 = arith.constant 0 : index
      %262 = vector.load %arg3[%261, %c0_126, %c0_127] : memref<180x64x64xbf16, #tpu.memory_space<vmem>>, vector<1x64x64xbf16>
      %263 = vector.shape_cast %262 : vector<1x64x64xbf16> to vector<64x64xbf16>
      %cst_128 = arith.constant dense<0.000000e+00> : vector<128x64xf32>
      %264 = tpu.matmul %258, %263, %cst_128 {dimension_numbers = #tpu.dot_dimension_numbers<[1], [0], [0], [1], [0, 0, 1, 1], [], []>} : vector<128x64xbf16>, vector<64x64xbf16>, vector<128x64xf32> -> vector<128x64xf32>
      %265 = arith.addf %253, %264 : vector<128x64xf32>
      %c8_129 = arith.constant 8 : index
      %c0_130 = arith.constant 0 : index
      %266 = vector.load %arg17[%c8_129, %c0_130] : memref<160x64xf32, #tpu.memory_space<vmem>>, vector<128x64xf32>
      %267 = vector.extract_strided_slice %2 {offsets = [0, 1], sizes = [128, 1], strides = [1, 1]} : vector<128x9xf32> to vector<128x1xf32>
      %268 = vector.broadcast %267 : vector<128x1xf32> to vector<128x64xf32>
      %269 = arith.mulf %266, %268 : vector<128x64xf32>
      %270 = arith.truncf %269 : vector<128x64xf32> to vector<128x64xbf16>
      %c9_i32_131 = arith.constant 9 : i32
      %271 = arith.muli %115, %c9_i32_131 : i32
      %c1_i32_132 = arith.constant 1 : i32
      %272 = arith.addi %271, %c1_i32_132 : i32
      %273 = arith.index_cast %272 : i32 to index
      %c0_133 = arith.constant 0 : index
      %c0_134 = arith.constant 0 : index
      %274 = vector.load %arg3[%273, %c0_133, %c0_134] : memref<180x64x64xbf16, #tpu.memory_space<vmem>>, vector<1x64x64xbf16>
      %275 = vector.shape_cast %274 : vector<1x64x64xbf16> to vector<64x64xbf16>
      %cst_135 = arith.constant dense<0.000000e+00> : vector<128x64xf32>
      %276 = tpu.matmul %270, %275, %cst_135 {dimension_numbers = #tpu.dot_dimension_numbers<[1], [0], [0], [1], [0, 0, 1, 1], [], []>} : vector<128x64xbf16>, vector<64x64xbf16>, vector<128x64xf32> -> vector<128x64xf32>
      %277 = arith.addf %265, %276 : vector<128x64xf32>
      %c9_136 = arith.constant 9 : index
      %c0_137 = arith.constant 0 : index
      %278 = vector.load %arg17[%c9_136, %c0_137] : memref<160x64xf32, #tpu.memory_space<vmem>>, vector<128x64xf32>
      %279 = vector.extract_strided_slice %2 {offsets = [0, 2], sizes = [128, 1], strides = [1, 1]} : vector<128x9xf32> to vector<128x1xf32>
      %280 = vector.broadcast %279 : vector<128x1xf32> to vector<128x64xf32>
      %281 = arith.mulf %278, %280 : vector<128x64xf32>
      %282 = arith.truncf %281 : vector<128x64xf32> to vector<128x64xbf16>
      %c9_i32_138 = arith.constant 9 : i32
      %283 = arith.muli %115, %c9_i32_138 : i32
      %c2_i32_139 = arith.constant 2 : i32
      %284 = arith.addi %283, %c2_i32_139 : i32
      %285 = arith.index_cast %284 : i32 to index
      %c0_140 = arith.constant 0 : index
      %c0_141 = arith.constant 0 : index
      %286 = vector.load %arg3[%285, %c0_140, %c0_141] : memref<180x64x64xbf16, #tpu.memory_space<vmem>>, vector<1x64x64xbf16>
      %287 = vector.shape_cast %286 : vector<1x64x64xbf16> to vector<64x64xbf16>
      %cst_142 = arith.constant dense<0.000000e+00> : vector<128x64xf32>
      %288 = tpu.matmul %282, %287, %cst_142 {dimension_numbers = #tpu.dot_dimension_numbers<[1], [0], [0], [1], [0, 0, 1, 1], [], []>} : vector<128x64xbf16>, vector<64x64xbf16>, vector<128x64xf32> -> vector<128x64xf32>
      %289 = arith.addf %277, %288 : vector<128x64xf32>
      %c15_143 = arith.constant 15 : index
      %c0_144 = arith.constant 0 : index
      %290 = vector.load %arg17[%c15_143, %c0_144] : memref<160x64xf32, #tpu.memory_space<vmem>>, vector<128x64xf32>
      %291 = vector.extract_strided_slice %2 {offsets = [0, 3], sizes = [128, 1], strides = [1, 1]} : vector<128x9xf32> to vector<128x1xf32>
      %292 = vector.broadcast %291 : vector<128x1xf32> to vector<128x64xf32>
      %293 = arith.mulf %290, %292 : vector<128x64xf32>
      %294 = arith.truncf %293 : vector<128x64xf32> to vector<128x64xbf16>
      %c9_i32_145 = arith.constant 9 : i32
      %295 = arith.muli %115, %c9_i32_145 : i32
      %c3_i32_146 = arith.constant 3 : i32
      %296 = arith.addi %295, %c3_i32_146 : i32
      %297 = arith.index_cast %296 : i32 to index
      %c0_147 = arith.constant 0 : index
      %c0_148 = arith.constant 0 : index
      %298 = vector.load %arg3[%297, %c0_147, %c0_148] : memref<180x64x64xbf16, #tpu.memory_space<vmem>>, vector<1x64x64xbf16>
      %299 = vector.shape_cast %298 : vector<1x64x64xbf16> to vector<64x64xbf16>
      %cst_149 = arith.constant dense<0.000000e+00> : vector<128x64xf32>
      %300 = tpu.matmul %294, %299, %cst_149 {dimension_numbers = #tpu.dot_dimension_numbers<[1], [0], [0], [1], [0, 0, 1, 1], [], []>} : vector<128x64xbf16>, vector<64x64xbf16>, vector<128x64xf32> -> vector<128x64xf32>
      %301 = arith.addf %289, %300 : vector<128x64xf32>
      %c16_150 = arith.constant 16 : index
      %c0_151 = arith.constant 0 : index
      %302 = vector.load %arg17[%c16_150, %c0_151] : memref<160x64xf32, #tpu.memory_space<vmem>>, vector<128x64xf32>
      %303 = arith.truncf %302 : vector<128x64xf32> to vector<128x64xbf16>
      %c9_i32_152 = arith.constant 9 : i32
      %304 = arith.muli %115, %c9_i32_152 : i32
      %c4_i32_153 = arith.constant 4 : i32
      %305 = arith.addi %304, %c4_i32_153 : i32
      %306 = arith.index_cast %305 : i32 to index
      %c0_154 = arith.constant 0 : index
      %c0_155 = arith.constant 0 : index
      %307 = vector.load %arg3[%306, %c0_154, %c0_155] : memref<180x64x64xbf16, #tpu.memory_space<vmem>>, vector<1x64x64xbf16>
      %308 = vector.shape_cast %307 : vector<1x64x64xbf16> to vector<64x64xbf16>
      %cst_156 = arith.constant dense<0.000000e+00> : vector<128x64xf32>
      %309 = tpu.matmul %303, %308, %cst_156 {dimension_numbers = #tpu.dot_dimension_numbers<[1], [0], [0], [1], [0, 0, 1, 1], [], []>} : vector<128x64xbf16>, vector<64x64xbf16>, vector<128x64xf32> -> vector<128x64xf32>
      %310 = arith.addf %301, %309 : vector<128x64xf32>
      %c17_157 = arith.constant 17 : index
      %c0_158 = arith.constant 0 : index
      %311 = vector.load %arg17[%c17_157, %c0_158] : memref<160x64xf32, #tpu.memory_space<vmem>>, vector<128x64xf32>
      %312 = vector.extract_strided_slice %2 {offsets = [0, 5], sizes = [128, 1], strides = [1, 1]} : vector<128x9xf32> to vector<128x1xf32>
      %313 = vector.broadcast %312 : vector<128x1xf32> to vector<128x64xf32>
      %314 = arith.mulf %311, %313 : vector<128x64xf32>
      %315 = arith.truncf %314 : vector<128x64xf32> to vector<128x64xbf16>
      %c9_i32_159 = arith.constant 9 : i32
      %316 = arith.muli %115, %c9_i32_159 : i32
      %c5_i32_160 = arith.constant 5 : i32
      %317 = arith.addi %316, %c5_i32_160 : i32
      %318 = arith.index_cast %317 : i32 to index
      %c0_161 = arith.constant 0 : index
      %c0_162 = arith.constant 0 : index
      %319 = vector.load %arg3[%318, %c0_161, %c0_162] : memref<180x64x64xbf16, #tpu.memory_space<vmem>>, vector<1x64x64xbf16>
      %320 = vector.shape_cast %319 : vector<1x64x64xbf16> to vector<64x64xbf16>
      %cst_163 = arith.constant dense<0.000000e+00> : vector<128x64xf32>
      %321 = tpu.matmul %315, %320, %cst_163 {dimension_numbers = #tpu.dot_dimension_numbers<[1], [0], [0], [1], [0, 0, 1, 1], [], []>} : vector<128x64xbf16>, vector<64x64xbf16>, vector<128x64xf32> -> vector<128x64xf32>
      %322 = arith.addf %310, %321 : vector<128x64xf32>
      %c23_164 = arith.constant 23 : index
      %c0_165 = arith.constant 0 : index
      %323 = vector.load %arg17[%c23_164, %c0_165] : memref<160x64xf32, #tpu.memory_space<vmem>>, vector<128x64xf32>
      %324 = vector.extract_strided_slice %2 {offsets = [0, 6], sizes = [128, 1], strides = [1, 1]} : vector<128x9xf32> to vector<128x1xf32>
      %325 = vector.broadcast %324 : vector<128x1xf32> to vector<128x64xf32>
      %326 = arith.mulf %323, %325 : vector<128x64xf32>
      %327 = arith.truncf %326 : vector<128x64xf32> to vector<128x64xbf16>
      %c9_i32_166 = arith.constant 9 : i32
      %328 = arith.muli %115, %c9_i32_166 : i32
      %c6_i32_167 = arith.constant 6 : i32
      %329 = arith.addi %328, %c6_i32_167 : i32
      %330 = arith.index_cast %329 : i32 to index
      %c0_168 = arith.constant 0 : index
      %c0_169 = arith.constant 0 : index
      %331 = vector.load %arg3[%330, %c0_168, %c0_169] : memref<180x64x64xbf16, #tpu.memory_space<vmem>>, vector<1x64x64xbf16>
      %332 = vector.shape_cast %331 : vector<1x64x64xbf16> to vector<64x64xbf16>
      %cst_170 = arith.constant dense<0.000000e+00> : vector<128x64xf32>
      %333 = tpu.matmul %327, %332, %cst_170 {dimension_numbers = #tpu.dot_dimension_numbers<[1], [0], [0], [1], [0, 0, 1, 1], [], []>} : vector<128x64xbf16>, vector<64x64xbf16>, vector<128x64xf32> -> vector<128x64xf32>
      %334 = arith.addf %322, %333 : vector<128x64xf32>
      %c24_171 = arith.constant 24 : index
      %c0_172 = arith.constant 0 : index
      %335 = vector.load %arg17[%c24_171, %c0_172] : memref<160x64xf32, #tpu.memory_space<vmem>>, vector<128x64xf32>
      %336 = vector.extract_strided_slice %2 {offsets = [0, 7], sizes = [128, 1], strides = [1, 1]} : vector<128x9xf32> to vector<128x1xf32>
      %337 = vector.broadcast %336 : vector<128x1xf32> to vector<128x64xf32>
      %338 = arith.mulf %335, %337 : vector<128x64xf32>
      %339 = arith.truncf %338 : vector<128x64xf32> to vector<128x64xbf16>
      %c9_i32_173 = arith.constant 9 : i32
      %340 = arith.muli %115, %c9_i32_173 : i32
      %c7_i32_174 = arith.constant 7 : i32
      %341 = arith.addi %340, %c7_i32_174 : i32
      %342 = arith.index_cast %341 : i32 to index
      %c0_175 = arith.constant 0 : index
      %c0_176 = arith.constant 0 : index
      %343 = vector.load %arg3[%342, %c0_175, %c0_176] : memref<180x64x64xbf16, #tpu.memory_space<vmem>>, vector<1x64x64xbf16>
      %344 = vector.shape_cast %343 : vector<1x64x64xbf16> to vector<64x64xbf16>
      %cst_177 = arith.constant dense<0.000000e+00> : vector<128x64xf32>
      %345 = tpu.matmul %339, %344, %cst_177 {dimension_numbers = #tpu.dot_dimension_numbers<[1], [0], [0], [1], [0, 0, 1, 1], [], []>} : vector<128x64xbf16>, vector<64x64xbf16>, vector<128x64xf32> -> vector<128x64xf32>
      %346 = arith.addf %334, %345 : vector<128x64xf32>
      %c25_178 = arith.constant 25 : index
      %c0_179 = arith.constant 0 : index
      %347 = vector.load %arg17[%c25_178, %c0_179] : memref<160x64xf32, #tpu.memory_space<vmem>>, vector<128x64xf32>
      %348 = vector.extract_strided_slice %2 {offsets = [0, 8], sizes = [128, 1], strides = [1, 1]} : vector<128x9xf32> to vector<128x1xf32>
      %349 = vector.broadcast %348 : vector<128x1xf32> to vector<128x64xf32>
      %350 = arith.mulf %347, %349 : vector<128x64xf32>
      %351 = arith.truncf %350 : vector<128x64xf32> to vector<128x64xbf16>
      %c9_i32_180 = arith.constant 9 : i32
      %352 = arith.muli %115, %c9_i32_180 : i32
      %c8_i32_181 = arith.constant 8 : i32
      %353 = arith.addi %352, %c8_i32_181 : i32
      %354 = arith.index_cast %353 : i32 to index
      %c0_182 = arith.constant 0 : index
      %c0_183 = arith.constant 0 : index
      %355 = vector.load %arg3[%354, %c0_182, %c0_183] : memref<180x64x64xbf16, #tpu.memory_space<vmem>>, vector<1x64x64xbf16>
      %356 = vector.shape_cast %355 : vector<1x64x64xbf16> to vector<64x64xbf16>
      %cst_184 = arith.constant dense<0.000000e+00> : vector<128x64xf32>
      %357 = tpu.matmul %351, %356, %cst_184 {dimension_numbers = #tpu.dot_dimension_numbers<[1], [0], [0], [1], [0, 0, 1, 1], [], []>} : vector<128x64xbf16>, vector<64x64xbf16>, vector<128x64xf32> -> vector<128x64xf32>
      %358 = arith.addf %346, %357 : vector<128x64xf32>
      %c1_i32_185 = arith.constant 1 : i32
      %359 = arith.addi %c1_i32_185, %115 : i32
      %360 = arith.index_cast %359 : i32 to index
      %c0_186 = arith.constant 0 : index
      %361 = vector.load %arg4[%360, %c0_186] : memref<21x64xf32, #tpu.memory_space<vmem>>, vector<1x64xf32>
      %c1_i32_187 = arith.constant 1 : i32
      %362 = arith.addi %c1_i32_187, %115 : i32
      %363 = arith.index_cast %362 : i32 to index
      %c0_188 = arith.constant 0 : index
      %364 = vector.load %arg5[%363, %c0_188] : memref<21x64xf32, #tpu.memory_space<vmem>>, vector<1x64xf32>
      %cst_189 = arith.constant dense<0.000000e+00> : vector<64xf32>
      %365 = vector.multi_reduction <add>, %358, %cst_189 [0] : vector<128x64xf32> to vector<64xf32>
      %366 = vector.shape_cast %365 : vector<64xf32> to vector<1x64xf32>
      %cst_190 = arith.constant 1.280000e+02 : f32
      %367 = vector.broadcast %cst_190 : f32 to vector<1x64xf32>
      %368 = arith.divf %366, %367 : vector<1x64xf32>
      %369 = vector.broadcast %368 : vector<1x64xf32> to vector<128x64xf32>
      %370 = arith.subf %358, %369 : vector<128x64xf32>
      %371 = arith.mulf %370, %370 : vector<128x64xf32>
      %cst_191 = arith.constant dense<0.000000e+00> : vector<64xf32>
      %372 = vector.multi_reduction <add>, %371, %cst_191 [0] : vector<128x64xf32> to vector<64xf32>
      %373 = vector.shape_cast %372 : vector<64xf32> to vector<1x64xf32>
      %cst_192 = arith.constant 1.280000e+02 : f32
      %374 = vector.broadcast %cst_192 : f32 to vector<1x64xf32>
      %375 = arith.divf %373, %374 : vector<1x64xf32>
      %376 = vector.broadcast %368 : vector<1x64xf32> to vector<128x64xf32>
      %377 = arith.subf %358, %376 : vector<128x64xf32>
      %cst_193 = arith.constant 9.99999974E-6 : f32
      %378 = vector.broadcast %cst_193 : f32 to vector<1x64xf32>
      %379 = arith.addf %375, %378 : vector<1x64xf32>
      %380 = math.rsqrt %379 : vector<1x64xf32>
      %381 = arith.mulf %361, %380 : vector<1x64xf32>
      %382 = vector.broadcast %381 : vector<1x64xf32> to vector<128x64xf32>
      %383 = arith.mulf %377, %382 : vector<128x64xf32>
      %384 = vector.broadcast %364 : vector<1x64xf32> to vector<128x64xf32>
      %385 = arith.addf %383, %384 : vector<128x64xf32>
      %386 = arith.addf %385, %arg19 : vector<128x64xf32>
      %cst_194 = arith.constant 0.000000e+00 : f32
      %387 = vector.broadcast %cst_194 : f32 to vector<128x64xf32>
      %388 = arith.maximumf %386, %387 : vector<128x64xf32>
      scf.yield %388 : vector<128x64xf32>
    }
    %c10_i32_18 = arith.constant 10 : i32
    %33 = arith.truncf %32 : vector<128x64xf32> to vector<128x64xbf16>
    %c0_19 = arith.constant 0 : index
    %c0_20 = arith.constant 0 : index
    %34 = vector.load %arg6[%c0_19, %c0_20] : memref<64x3xbf16, #tpu.memory_space<vmem>>, vector<64x3xbf16>
    %cst_21 = arith.constant dense<0.000000e+00> : vector<128x3xf32>
    %35 = tpu.matmul %33, %34, %cst_21 {dimension_numbers = #tpu.dot_dimension_numbers<[1], [0], [0], [1], [0, 0, 1, 1], [], []>} : vector<128x64xbf16>, vector<64x3xbf16>, vector<128x3xf32> -> vector<128x3xf32>
    %c0_22 = arith.constant 0 : index
    %c0_23 = arith.constant 0 : index
    %36 = vector.load %arg7[%c0_22, %c0_23] : memref<1x3xf32, #tpu.memory_space<vmem>>, vector<1x3xf32>
    %c0_24 = arith.constant 0 : index
    %c0_25 = arith.constant 0 : index
    %37 = vector.load %arg8[%c0_24, %c0_25] : memref<1x3xf32, #tpu.memory_space<vmem>>, vector<1x3xf32>
    %cst_26 = arith.constant dense<0.000000e+00> : vector<3xf32>
    %38 = vector.multi_reduction <add>, %35, %cst_26 [0] : vector<128x3xf32> to vector<3xf32>
    %39 = vector.shape_cast %38 : vector<3xf32> to vector<1x3xf32>
    %cst_27 = arith.constant 1.280000e+02 : f32
    %40 = vector.broadcast %cst_27 : f32 to vector<1x3xf32>
    %41 = arith.divf %39, %40 : vector<1x3xf32>
    %42 = vector.broadcast %41 : vector<1x3xf32> to vector<128x3xf32>
    %43 = arith.subf %35, %42 : vector<128x3xf32>
    %44 = arith.mulf %43, %43 : vector<128x3xf32>
    %cst_28 = arith.constant dense<0.000000e+00> : vector<3xf32>
    %45 = vector.multi_reduction <add>, %44, %cst_28 [0] : vector<128x3xf32> to vector<3xf32>
    %46 = vector.shape_cast %45 : vector<3xf32> to vector<1x3xf32>
    %cst_29 = arith.constant 1.280000e+02 : f32
    %47 = vector.broadcast %cst_29 : f32 to vector<1x3xf32>
    %48 = arith.divf %46, %47 : vector<1x3xf32>
    %49 = vector.broadcast %41 : vector<1x3xf32> to vector<128x3xf32>
    %50 = arith.subf %35, %49 : vector<128x3xf32>
    %cst_30 = arith.constant 9.99999974E-6 : f32
    %51 = vector.broadcast %cst_30 : f32 to vector<1x3xf32>
    %52 = arith.addf %48, %51 : vector<1x3xf32>
    %53 = math.rsqrt %52 : vector<1x3xf32>
    %54 = arith.mulf %36, %53 : vector<1x3xf32>
    %55 = vector.broadcast %54 : vector<1x3xf32> to vector<128x3xf32>
    %56 = arith.mulf %50, %55 : vector<128x3xf32>
    %57 = vector.broadcast %37 : vector<1x3xf32> to vector<128x3xf32>
    %58 = arith.addf %56, %57 : vector<128x3xf32>
    %cst_31 = arith.constant 0.000000e+00 : f32
    %59 = vector.broadcast %cst_31 : f32 to vector<128x3xf32>
    %60 = arith.maximumf %58, %59 : vector<128x3xf32>
    %61 = vector.extract_strided_slice %60 {offsets = [0, 0], sizes = [128, 2], strides = [1, 1]} : vector<128x3xf32> to vector<128x2xf32>
    %62 = vector.shape_cast %61 : vector<128x2xf32> to vector<2x64x2xf32>
    %63 = vector.extract_strided_slice %62 {offsets = [0, 0, 0], sizes = [2, 64, 1], strides = [1, 1, 1]} : vector<2x64x2xf32> to vector<2x64x1xf32>
    %c0_32 = arith.constant 0 : index
    %c0_33 = arith.constant 0 : index
    %c0_34 = arith.constant 0 : index
    %64 = vector.load %arg9[%c0_32, %c0_33, %c0_34] : memref<2x64x256xf32, #tpu.memory_space<vmem>>, vector<1x64x256xf32>
    %65 = vector.shape_cast %64 : vector<1x64x256xf32> to vector<64x256xf32>
    %66 = vector.shape_cast %65 : vector<64x256xf32> to vector<1x64x256xf32>
    %67 = vector.broadcast %63 : vector<2x64x1xf32> to vector<2x64x256xf32>
    %68 = vector.broadcast %66 : vector<1x64x256xf32> to vector<2x64x256xf32>
    %69 = arith.mulf %67, %68 : vector<2x64x256xf32>
    %70 = vector.extract_strided_slice %62 {offsets = [0, 0, 1], sizes = [2, 64, 1], strides = [1, 1, 1]} : vector<2x64x2xf32> to vector<2x64x1xf32>
    %c1 = arith.constant 1 : index
    %c0_35 = arith.constant 0 : index
    %c0_36 = arith.constant 0 : index
    %71 = vector.load %arg9[%c1, %c0_35, %c0_36] : memref<2x64x256xf32, #tpu.memory_space<vmem>>, vector<1x64x256xf32>
    %72 = vector.shape_cast %71 : vector<1x64x256xf32> to vector<64x256xf32>
    %73 = vector.shape_cast %72 : vector<64x256xf32> to vector<1x64x256xf32>
    %74 = vector.broadcast %70 : vector<2x64x1xf32> to vector<2x64x256xf32>
    %75 = vector.broadcast %73 : vector<1x64x256xf32> to vector<2x64x256xf32>
    %76 = arith.mulf %74, %75 : vector<2x64x256xf32>
    %77 = arith.addf %69, %76 : vector<2x64x256xf32>
    %cst_37 = arith.constant dense<0.000000e+00> : vector<2x256xf32>
    %78 = vector.multi_reduction <add>, %77, %cst_37 [1] : vector<2x64x256xf32> to vector<2x256xf32>
    %c0_38 = arith.constant 0 : index
    %c0_39 = arith.constant 0 : index
    %79 = vector.load %arg10[%c0_38, %c0_39] : memref<1x256xf32, #tpu.memory_space<vmem>>, vector<1x256xf32>
    %80 = vector.broadcast %79 : vector<1x256xf32> to vector<2x256xf32>
    %81 = arith.addf %78, %80 : vector<2x256xf32>
    %cst_40 = arith.constant dense<0xFF800000> : vector<2xf32>
    %82 = vector.multi_reduction <maximumf>, %81, %cst_40 [1] : vector<2x256xf32> to vector<2xf32>
    %83 = vector.shape_cast %82 : vector<2xf32> to vector<2x1xf32>
    %84 = vector.broadcast %83 : vector<2x1xf32> to vector<2x256xf32>
    %85 = arith.subf %81, %84 : vector<2x256xf32>
    %86 = math.exp %85 : vector<2x256xf32>
    %cst_41 = arith.constant dense<0.000000e+00> : vector<2xf32>
    %87 = vector.multi_reduction <add>, %86, %cst_41 [1] : vector<2x256xf32> to vector<2xf32>
    %88 = vector.shape_cast %87 : vector<2xf32> to vector<2x1xf32>
    %89 = math.log %88 : vector<2x1xf32>
    %90 = vector.broadcast %89 : vector<2x1xf32> to vector<2x256xf32>
    %91 = arith.subf %85, %90 : vector<2x256xf32>
    %c0_42 = arith.constant 0 : index
    %c0_43 = arith.constant 0 : index
    %92 = vector.load %arg15[%c0_42, %c0_43] : memref<2x256xf32, #tpu.memory_space<vmem>>, vector<2x256xf32>
    tpu.vector_store %arg15[%c0_42, %c0_43], %91 {strides = array<i32>} : memref<2x256xf32, #tpu.memory_space<vmem>>, vector<2x256xf32>,
    %93 = vector.extract_strided_slice %60 {offsets = [0, 2], sizes = [128, 1], strides = [1, 1]} : vector<128x3xf32> to vector<128x1xf32>
    %94 = vector.shape_cast %93 : vector<128x1xf32> to vector<2x64x1xf32>
    %c0_44 = arith.constant 0 : index
    %c0_45 = arith.constant 0 : index
    %95 = vector.load %arg11[%c0_44, %c0_45] : memref<64x256xf32, #tpu.memory_space<vmem>>, vector<64x256xf32>
    %96 = vector.shape_cast %95 : vector<64x256xf32> to vector<1x64x256xf32>
    %97 = vector.broadcast %94 : vector<2x64x1xf32> to vector<2x64x256xf32>
    %98 = vector.broadcast %96 : vector<1x64x256xf32> to vector<2x64x256xf32>
    %99 = arith.mulf %97, %98 : vector<2x64x256xf32>
    %cst_46 = arith.constant dense<0.000000e+00> : vector<2x256xf32>
    %100 = vector.multi_reduction <add>, %99, %cst_46 [1] : vector<2x64x256xf32> to vector<2x256xf32>
    %c0_47 = arith.constant 0 : index
    %c0_48 = arith.constant 0 : index
    %101 = vector.load %arg12[%c0_47, %c0_48] : memref<1x256xf32, #tpu.memory_space<vmem>>, vector<1x256xf32>
    %102 = vector.broadcast %101 : vector<1x256xf32> to vector<2x256xf32>
    %103 = arith.addf %100, %102 : vector<2x256xf32>
    %cst_49 = arith.constant 0.000000e+00 : f32
    %104 = vector.broadcast %cst_49 : f32 to vector<2x256xf32>
    %105 = arith.maximumf %103, %104 : vector<2x256xf32>
    %c0_50 = arith.constant 0 : index
    %c0_51 = arith.constant 0 : index
    %106 = vector.load %arg13[%c0_50, %c0_51] : memref<256x1xf32, #tpu.memory_space<vmem>>, vector<256x1xf32>
    %cst_52 = arith.constant dense<0.000000e+00> : vector<2x1xf32>
    %107 = tpu.matmul %105, %106, %cst_52 {dimension_numbers = #tpu.dot_dimension_numbers<[1], [0], [0], [1], [0, 0, 1, 1], [], []>} : vector<2x256xf32>, vector<256x1xf32>, vector<2x1xf32> -> vector<2x1xf32>
    %c0_53 = arith.constant 0 : index
    %c0_54 = arith.constant 0 : index
    %108 = vector.load %arg14[%c0_53, %c0_54] : memref<1x1xf32, #tpu.memory_space<vmem>>, vector<1x1xf32>
    %109 = vector.broadcast %108 : vector<1x1xf32> to vector<2x1xf32>
    %110 = arith.addf %107, %109 : vector<2x1xf32>
    %111 = math.tanh %110 : vector<2x1xf32>
    %c0_55 = arith.constant 0 : index
    %c0_56 = arith.constant 0 : index
    %112 = vector.load %arg16[%c0_55, %c0_56] : memref<2x1xf32, #tpu.memory_space<vmem>>, vector<2x1xf32>
    tpu.vector_store %arg16[%c0_55, %c0_56], %111 {strides = array<i32>} : memref<2x1xf32, #tpu.memory_space<vmem>>, vector<2x1xf32>,
    return
  }
}

</mosaic_0001>

<bundles_post_ra>
// kernel: policy_value_forward.1
= control target key start
LH: loop header
LB: loop body
LE: loop exit
PB: predicated region body
PF: predicated region fallthrough
CT: control target
= control target key end

     0   :  { %s11439_s0 = inlined_call_operand.vmem [shape: bf16[128,36], index: 0, kind: input, shape index: {}]   ;;  %s11440_s1 = inlined_call_operand.vmem [shape: f32[128,9], index: 1, kind: input, shape index: {}]   ;;  %s11441_s2 = inlined_call_operand.vmem [shape: bf16[36,64], index: 2, kind: input, shape index: {}]   ;;  %s11442_s3 = inlined_call_operand.vmem [shape: bf16[180,64,64], index: 3, kind: input, shape index: {}]   ;;  %s11443_s4 = inlined_call_operand.vmem [shape: f32[21,64], index: 4, kind: input, shape index: {}]   ;;  %s11444_s5 = inlined_call_operand.vmem [shape: f32[21,64], index: 5, kind: input, shape index: {}]   ;;  %s11445_s6 = inlined_call_operand.vmem [shape: bf16[64,3], index: 6, kind: input, shape index: {}]   ;;  %s11446_s7 = inlined_call_operand.vmem [shape: f32[1,3], index: 7, kind: input, shape index: {}]   ;;  %s11447_s8 = inlined_call_operand.vmem [shape: f32[1,3], index: 8, kind: input, shape index: {}]   ;;  %s11448_s9 = inlined_call_operand.vmem [shape: f32[2,64,256], index: 9, kind: input, shape index: {}]   ;;  %s11449_s10 = inlined_call_operand.vmem [shape: f32[1,256], index: 10, kind: input, shape index: {}]   ;;  %s11450_s11 = inlined_call_operand.vmem [shape: f32[64,256], index: 11, kind: input, shape index: {}]   ;;  %s11451_s12 = inlined_call_operand.vmem [shape: f32[1,256], index: 12, kind: input, shape index: {}]   ;;  %s11452_s13 = inlined_call_operand.vmem [shape: f32[256,1], index: 13, kind: input, shape index: {}]   ;;  %s11453_s14 = inlined_call_operand.<no memory space> [shape: f32[1,1], index: 14, kind: input, shape index: {}]   ;;  %s11454_s15 = inlined_call_operand.hbm [shape: f32[2,256], index: 15, kind: output, shape index: {0}]   ;;  %s11455_s16 = inlined_call_operand.vmem [shape: f32[2,1], index: 16, kind: output, shape index: {1}]  }
   0x1   :  { %11702 = sst [smem:[#allocation154_spill]] %s11439_s0  ;;  %v22_v0 = vstv %s11453_s14 }
   0x2   :  { %23 = vst [vmem:[#allocation3] sm:$0x1] %v22_v0 }
   0x3   :  { %24 = vsyncpa [#allocation5], 0  ;;  %v8442_v1 = vld [vmem:[%s11440_s1] sm:$0xff]  ;;  %v8447_v2 = vld [vmem:[%s11440_s1 + $0x8] sm:$0xff]  ;;  %vm56_vm0 = vcmask 523264   ;;  %v8337_v9 = vmov 0.0  }
   0x4   :  { %11703 = vst [vmem:[#allocation7_spill] sm:$0xff] %v8442_v1  ;;  %11704 = vst [vmem:[#allocation8_spill] sm:$0xff] %v8447_v2  ;;  %v8452_v3 = vld [vmem:[%s11440_s1 + $0x10] sm:$0xff]  ;;  %v8457_v4 = vld [vmem:[%s11440_s1 + $0x18] sm:$0xff]  ;;  %vm169_vm1 = vcmask 293888   ;;  %s11719_s14 = sld [smem:[#allocation154_spill]] }
   0x5   :  { %11705 = vst [vmem:[#allocation9_spill] sm:$0xff] %v8452_v3  ;;  %11706 = vst [vmem:[#allocation10_spill] sm:$0xff] %v8457_v4  ;;  %v8462_v5 = vld [vmem:[%s11440_s1 + $0x20] sm:$0xff]  ;;  %v8467_v6 = vld [vmem:[%s11440_s1 + $0x28] sm:$0xff]  ;;  %vm194_vm2 = vcmask 1041408  }
   0x6   :  { %11707 = vst [vmem:[#allocation11_spill] sm:$0xff] %v8462_v5  ;;  %11708 = vst [vmem:[#allocation12_spill] sm:$0xff] %v8467_v6  ;;  %v8472_v7 = vld [vmem:[%s11440_s1 + $0x30] sm:$0xff]  ;;  %v8477_v8 = vld [vmem:[%s11440_s1 + $0x38] sm:$0xff] }
   0x7   :  { %11709 = vst [vmem:[#allocation13_spill] sm:$0xff] %v8472_v7  ;;  %11710 = vst [vmem:[#allocation14_spill] sm:$0xff] %v8477_v8  ;;  %v8502_v10 = vld [vmem:[%s11440_s1 + $0x40] sm:$0xff]  ;;  %v8507_v11 = vld [vmem:[%s11440_s1 + $0x48] sm:$0xff] }
   0x8   :  { %57 = vst.msk [vmem:[#allocation2] sm:$0xff] %vm56_vm0, %v8337_v9  ;;  %58 = vst.msk [vmem:[#allocation2 + $0x8] sm:$0xff] %vm56_vm0, %v8337_v9  ;;  %v8512_v12 = vld [vmem:[%s11440_s1 + $0x50] sm:$0xff]  ;;  %v8517_v13 = vld [vmem:[%s11440_s1 + $0x58] sm:$0xff] }
   0x9   :  { %59 = vst.msk [vmem:[#allocation2 + $0x10] sm:$0xff] %vm56_vm0, %v8337_v9  ;;  %60 = vst.msk [vmem:[#allocation2 + $0x18] sm:$0xff] %vm56_vm0, %v8337_v9  ;;  %v8522_v14 = vld [vmem:[%s11440_s1 + $0x60] sm:$0xff]  ;;  %v8527_v15 = vld [vmem:[%s11440_s1 + $0x68] sm:$0xff] }
   0xa   :  { %61 = vst.msk [vmem:[#allocation2 + $0x20] sm:$0xff] %vm56_vm0, %v8337_v9  ;;  %62 = vst.msk [vmem:[#allocation2 + $0x28] sm:$0xff] %vm56_vm0, %v8337_v9  ;;  %v8532_v16 = vld [vmem:[%s11440_s1 + $0x70] sm:$0xff]  ;;  %v8537_v17 = vld [vmem:[%s11440_s1 + $0x78] sm:$0xff]  ;;  %s8743_s1 = smov 0  }
   0xb   :  { %63 = vst.msk [vmem:[#allocation2 + $0x30] sm:$0xff] %vm56_vm0, %v8337_v9  ;;  %64 = vst.msk [vmem:[#allocation2 + $0x38] sm:$0xff] %vm56_vm0, %v8337_v9  ;;  %v8027_v18 = vld [vmem:[%s11441_s2] sm:$0xff]   ;;  %v8028_v19 = vld [vmem:[%s11441_s2 + $0x8] sm:$0xff]  }
   0xc   :  { %65 = vst.msk [vmem:[#allocation2 + $0x40] sm:$0xff] %vm56_vm0, %v8337_v9  ;;  %66 = vst.msk [vmem:[#allocation2 + $0x48] sm:$0xff] %vm56_vm0, %v8337_v9  ;;  %7103 = vmatprep.subr.bf16.mxu0 %v8027_v18  ;;  %v8029_v20 = vld [vmem:[%s11441_s2 + $0x10] ss:$0 sps:$4 sm:$0x33]   ;;  %v8030_v21 = vld [vmem:[%s11719_s14] sm:$0xff]   ;;  %7613 = vmatprep.subr.bf16.mxu1 %v8027_v18 }
   0xd   :  { %67 = vst.msk [vmem:[#allocation2 + $0x50] sm:$0xff] %vm56_vm0, %v8337_v9  ;;  %68 = vst.msk [vmem:[#allocation2 + $0x58] sm:$0xff] %vm56_vm0, %v8337_v9  ;;  %7104 = vmatpush3.bf16.msra.mxu0 %v8027_v18  ;;  %7616 = vmatpush3.bf16.msra.mxu1 %v8027_v18  ;;  %v8034_v22 = vld [vmem:[%s11719_s14 + $0x20] sm:$0xff]   ;;  %v196_v23 = vsel %vm194_vm2, %v8029_v20, 0  ;;  %v8031_v24 = vld [vmem:[%s11719_s14 + $0x8] sm:$0xff]  }
   0xe   :  { %69 = vst.msk [vmem:[#allocation2 + $0x60] sm:$0xff] %vm56_vm0, %v8337_v9  ;;  %70 = vst.msk [vmem:[#allocation2 + $0x68] sm:$0xff] %vm56_vm0, %v8337_v9  ;;  %7105 = vmatprep.subr.bf16.mxu0 %v8028_v19  ;;  %7109 = vmatprep.mubr.msk.bf16.mxu0 %vm169_vm1, %v8030_v21  ;;  %v8035_v25 = vld [vmem:[%s11719_s14 + $0x28] sm:$0xff]   ;;  %v8032_v26 = vld [vmem:[%s11719_s14 + $0x10] sm:$0xff]  }
   0xf   :  { %71 = vst.msk [vmem:[#allocation2 + $0x70] sm:$0xff] %vm56_vm0, %v8337_v9  ;;  %72 = vst.msk [vmem:[#allocation2 + $0x78] sm:$0xff] %vm56_vm0, %v8337_v9  ;;  %7614 = vmatprep.subr.bf16.mxu1 %v8028_v19  ;;  %7117 = vmatprep.mubr.msk.bf16.mxu1 %vm169_vm1, %v8034_v22  ;;  %v8036_v27 = vld [vmem:[%s11719_s14 + $0x30] sm:$0xff]   ;;  %v8033_v28 = vld [vmem:[%s11719_s14 + $0x18] sm:$0xff]  }
  0x10   :  { %73 = vst.msk [vmem:[#allocation2 + $0x80] sm:$0xff] %vm56_vm0, %v8337_v9  ;;  %74 = vst.msk [vmem:[#allocation2 + $0x88] sm:$0xff] %vm56_vm0, %v8337_v9  ;;  %v8037_v29 = vld [vmem:[%s11719_s14 + $0x38] sm:$0xff]  }
  0x11   :  { %75 = vst.msk [vmem:[#allocation2 + $0x90] sm:$0xff] %vm56_vm0, %v8337_v9  ;;  %76 = vst.msk [vmem:[#allocation2 + $0x98] sm:$0xff] %vm56_vm0, %v8337_v9  ;;  %7106 = vmatpush3.bf16.msra.mxu0 %v8028_v19  ;;  %7617 = vmatpush3.bf16.msra.mxu1 %v8028_v19 }
  0x12   :  { %11711 = vst [vmem:[#allocation15_spill] sm:$0xff] %v8502_v10  ;;  %11712 = vst [vmem:[#allocation16_spill] sm:$0xff] %v8507_v11  ;;  %7875 = vmatprep.subr.msk.bf16.mxu0 %vm194_vm2, %v8029_v20  ;;  %7876 = vmatprep.subr.msk.bf16.mxu1 %vm194_vm2, %v8029_v20 }
  0x13   :  { %11713 = vst [vmem:[#allocation17_spill] sm:$0xff] %v8512_v12  ;;  %11714 = vst [vmem:[#allocation18_spill] sm:$0xff] %v8517_v13 }
  0x14   :  { %11715 = vst [vmem:[#allocation19_spill] sm:$0xff] %v8522_v14  ;;  %11716 = vst [vmem:[#allocation20_spill] sm:$0xff] %v8527_v15 }
  0x15   :  { %11717 = vst [vmem:[#allocation21_spill] sm:$0xff] %v8532_v16  ;;  %11718 = vst [vmem:[#allocation22_spill] sm:$0xff] %v8537_v17  ;;  %7108 = vmatpush3.bf16.msra.mxu0 %v196_v23  ;;  %7618 = vmatpush3.bf16.msra.mxu1 %v196_v23 }
  0x18   :  { %7110 = vmatmul.mubr.msk.bf16.vlgmr.msra.gmra.mrb[0].mxu0 %vm169_vm1, %v8031_v24  ;;  %7118 = vmatmul.mubr.msk.bf16.vlgmr.msra.gmra.mrb[0].mxu1 %vm169_vm1, %v8035_v25 }
  0x19   :  { %7113 = vmatprep.mubr.msk.bf16.mxu0 %vm169_vm1, %v8032_v26  ;;  %7121 = vmatprep.mubr.msk.bf16.mxu1 %vm169_vm1, %v8036_v27 }
  0x20   :  { %7114 = vmatmul.mubr.msk.bf16.gmra.mrb[4].mxu0 %vm169_vm1, %v8033_v28  ;;  %7122 = vmatmul.mubr.msk.bf16.gmra.mrb[4].mxu1 %vm169_vm1, %v8037_v29 }
  0xeb   :  { %v7111_v30 = vpop.f32.mrb[0].mxu0  ;;  %v8583_v31 = vpop.f32.mrb[0].mxu1 }
  0xec   :  { %v232_v32 = vpop.f32.mrb[1].mxu0  ;;  %v264_v33 = vpop.f32.mrb[1].mxu1  ;;  %v300_v41 = vsel %vm56_vm0, %v7111_v30, 0.0  ;;  %v316_v9 = vsel %vm56_vm0, %v8583_v31, 0.0 }
  0xed   :  { %v7112_v34 = vpop.f32.mrb[2].mxu0  ;;  %v7120_v35 = vpop.f32.mrb[2].mxu1  ;;  %v297_v38 = vsel %vm56_vm0, %v232_v32, 0.0  ;;  %v312_v60 = vsel %vm56_vm0, %v264_v33, 0.0 }
  0xee   :  { %v235_v36 = vpop.f32.mrb[3].mxu0  ;;  %v267_v37 = vpop.f32.mrb[3].mxu1  ;;  %v302_v43 = vsel %vm56_vm0, %v7112_v34, 0.0  ;;  %v318_v19 = vsel %vm56_vm0, %v7120_v35, 0.0 }
  0xef   :  { %v298_v39 = vsel %vm56_vm0, %v235_v36, 0.0  ;;  %v314_v63 = vsel %vm56_vm0, %v267_v37, 0.0 }
  0xf0   :  { %v299_v40 = vadd.f32 %v298_v39, %v297_v38 }
  0xf2   :  { %v301_v42 = vadd.f32 %v300_v41, %v299_v40 }
  0xf3   :  { %v7115_v44 = vpop.f32.mrb[4].mxu0  ;;  %v7123_v45 = vpop.f32.mrb[4].mxu1 }
  0xf4   :  { %v248_v46 = vpop.f32.mrb[5].mxu0  ;;  %v303_v47 = vadd.f32 %v302_v43, %v301_v42  ;;  %v280_v48 = vpop.f32.mrb[5].mxu1  ;;  %v308_v57 = vsel %vm56_vm0, %v7115_v44, 0.0  ;;  %v324_v25 = vsel %vm56_vm0, %v7123_v45, 0.0 }
  0xf5   :  { %v304_v49 = vsel %vm56_vm0, %v248_v46, 0.0  ;;  %v7116_v50 = vpop.f32.mrb[6].mxu0  ;;  %v7124_v51 = vpop.f32.mrb[6].mxu1  ;;  %v320_v20 = vsel %vm56_vm0, %v280_v48, 0.0 }
  0xf6   :  { %v305_v52 = vadd.f32 %v304_v49, %v303_v47  ;;  %v251_v53 = vpop.f32.mrb[7].mxu0  ;;  %v283_v54 = vpop.f32.mrb[7].mxu1  ;;  %v310_v59 = vsel %vm56_vm0, %v7116_v50, 0.0  ;;  %v326_v27 = vsel %vm56_vm0, %v7124_v51, 0.0 }
  0xf7   :  { %v306_v55 = vsel %vm56_vm0, %v251_v53, 0.0  ;;  %v322_v23 = vsel %vm56_vm0, %v283_v54, 0.0 }
  0xf8   :  { %v307_v56 = vadd.f32 %v306_v55, %v305_v52 }
  0xfa   :  { %v309_v58 = vadd.f32 %v308_v57, %v307_v56 }
  0xfc   :  { %v311_v61 = vadd.f32 %v310_v59, %v309_v58 }
  0xfe   :  { %v313_v62 = vadd.f32 %v312_v60, %v311_v61 }
 0x100   :  { %v315_v0 = vadd.f32 %v314_v63, %v313_v62 }
 0x102   :  { %v317_v18 = vadd.f32 %v316_v9, %v315_v0 }
 0x104   :  { %v319_v21 = vadd.f32 %v318_v19, %v317_v18 }
 0x106   :  { %v321_v22 = vadd.f32 %v320_v20, %v319_v21 }
 0x108   :  { %v323_v24 = vadd.f32 %v322_v23, %v321_v22 }
 0x10a   :  { %v325_v26 = vadd.f32 %v324_v25, %v323_v24 }
 0x10c   :  { %v327_v28 = vadd.f32 %v326_v27, %v325_v26 }
 0x10e   :  { %v328_v29 = vrot.slane %v327_v28, 4 }
 0x110   :  { %v329_v38 = vadd.f32 %v328_v29, %v327_v28 }
 0x112   :  { %v330_v39 = vrot.slane %v329_v38, 2 }
 0x114   :  { %v331_v40 = vadd.f32 %v330_v39, %v329_v38 }
 0x116   :  { %v332_v41 = vrot.slane %v331_v40, 1 }
 0x118   :  { %v333_v42 = vadd.f32 %v332_v41, %v331_v40 }
 0x11a   :  { %v335_v43 = vmul.f32 0.0078125, %v333_v42 }
 0x11c   :  { %v8602_v47 = vsub.f32 %v232_v32, %v335_v43  ;;  %v8604_v49 = vsub.f32 %v235_v36, %v335_v43  ;;  %v8606_v52 = vsub.f32 %v7111_v30, %v335_v43  ;;  %v8608_v55 = vsub.f32 %v7112_v34, %v335_v43 }
 0x11d   :  { %v8610_v56 = vsub.f32 %v248_v46, %v335_v43  ;;  %v8612_v57 = vsub.f32 %v251_v53, %v335_v43  ;;  %v8614_v58 = vsub.f32 %v7115_v44, %v335_v43  ;;  %v8616_v59 = vsub.f32 %v7116_v50, %v335_v43 }
 0x11e   :  { %v8618_v60 = vsub.f32 %v264_v33, %v335_v43  ;;  %v8620_v61 = vsub.f32 %v267_v37, %v335_v43  ;;  %v8623_v32 = vsub.f32 %v8583_v31, %v335_v43  ;;  %v8625_v36 = vsub.f32 %v7120_v35, %v335_v43 }
 0x11f   :  { %v8627_v30 = vsub.f32 %v280_v48, %v335_v43  ;;  %v8629_v34 = vsub.f32 %v283_v54, %v335_v43  ;;  %v8631_v46 = vsub.f32 %v7123_v45, %v335_v43  ;;  %v8633_v53 = vsub.f32 %v7124_v51, %v335_v43 }
 0x120   :  { %v352_v44 = vmul.f32 %v8602_v47, %v8602_v47  ;;  %v353_v33 = vmul.f32 %v8604_v49, %v8604_v49  ;;  %v354_v31 = vmul.f32 %v8606_v52, %v8606_v52  ;;  %v355_v35 = vmul.f32 %v8608_v55, %v8608_v55 }
 0x121   :  { %v356_v50 = vmul.f32 %v8610_v56, %v8610_v56  ;;  %v357_v62 = vmul.f32 %v8612_v57, %v8612_v57  ;;  %v358_v9 = vmul.f32 %v8614_v58, %v8614_v58  ;;  %v359_v20 = vmul.f32 %v8616_v59, %v8616_v59 }
 0x122   :  { %v368_v37 = vsel %vm56_vm0, %v352_v44, 0.0  ;;  %v369_v48 = vsel %vm56_vm0, %v353_v33, 0.0  ;;  %v371_v51 = vsel %vm56_vm0, %v354_v31, 0.0  ;;  %v373_v63 = vsel %vm56_vm0, %v355_v35, 0.0 }
 0x123   :  { %v370_v45 = vadd.f32 %v369_v48, %v368_v37  ;;  %v375_v18 = vsel %vm56_vm0, %v356_v50, 0.0  ;;  %v377_v21 = vsel %vm56_vm0, %v357_v62, 0.0  ;;  %v360_v23 = vmul.f32 %v8618_v60, %v8618_v60 }
 0x124   :  { %v379_v24 = vsel %vm56_vm0, %v358_v9, 0.0  ;;  %v361_v26 = vmul.f32 %v8620_v61, %v8620_v61  ;;  %v381_v27 = vsel %vm56_vm0, %v359_v20, 0.0  ;;  %v362_v29 = vmul.f32 %v8623_v32, %v8623_v32 }
 0x125   :  { %v372_v54 = vadd.f32 %v371_v51, %v370_v45  ;;  %v383_v38 = vsel %vm56_vm0, %v360_v23, 0.0  ;;  %v363_v40 = vmul.f32 %v8625_v36, %v8625_v36  ;;  %v364_v43 = vmul.f32 %v8627_v30, %v8627_v30 }
 0x126   :  { %v385_v41 = vsel %vm56_vm0, %v361_v26, 0.0  ;;  %v387_v44 = vsel %vm56_vm0, %v362_v29, 0.0  ;;  %v365_v31 = vmul.f32 %v8629_v34, %v8629_v34  ;;  %v366_v48 = vmul.f32 %v8631_v46, %v8631_v46  ;;  %v295_v29 = vld [vmem:[%s11443_s4] sm:$0x1] }
 0x127   :  { %v374_v0 = vadd.f32 %v373_v63, %v372_v54  ;;  %v389_v35 = vsel %vm56_vm0, %v363_v40, 0.0  ;;  %v391_v45 = vsel %vm56_vm0, %v364_v43, 0.0  ;;  %v367_v51 = vmul.f32 %v8633_v53, %v8633_v53 }
 0x128   :  { %v393_v54 = vsel %vm56_vm0, %v365_v31, 0.0  ;;  %v395_v63 = vsel %vm56_vm0, %v366_v48, 0.0  ;;  %v6399_v31 = vld [vmem:[%s11444_s5] ss:$0 sm:$0xff] }
 0x129   :  { %v376_v19 = vadd.f32 %v375_v18, %v374_v0  ;;  %v397_v9 = vsel %vm56_vm0, %v367_v51, 0.0 }
 0x12b   :  { %v378_v22 = vadd.f32 %v377_v21, %v376_v19 }
 0x12d   :  { %v380_v25 = vadd.f32 %v379_v24, %v378_v22 }
 0x12f   :  { %v382_v28 = vadd.f32 %v381_v27, %v380_v25  ;;  %v409_v27 = vlaneseq }
 0x131   :  { %v384_v39 = vadd.f32 %v383_v38, %v382_v28  ;;  %v8683_v28 = vshrl.u32 %v409_v27, 7 }
 0x133   :  { %v386_v42 = vadd.f32 %v385_v41, %v384_v39  ;;  %11720 = vst [vmem:[#allocation23_spill] sm:$0xff] %v8683_v28  ;;  %v8689_v38 = vsub.s32 0, %v8683_v28 }
 0x135   :  { %v388_v33 = vadd.f32 %v387_v44, %v386_v42  ;;  %11721 = vst [vmem:[#allocation24_spill] sm:$0xff] %v8689_v38 }
 0x137   :  { %v390_v37 = vadd.f32 %v389_v35, %v388_v33 }
 0x139   :  { %v392_v50 = vadd.f32 %v391_v45, %v390_v37 }
 0x13b   :  { %v394_v62 = vadd.f32 %v393_v54, %v392_v50 }
 0x13d   :  { %v396_v0 = vadd.f32 %v395_v63, %v394_v62 }
 0x13f   :  { %v398_v18 = vadd.f32 %v397_v9, %v396_v0 }
 0x141   :  { %v399_v19 = vrot.slane %v398_v18, 4 }
 0x143   :  { %v400_v20 = vadd.f32 %v399_v19, %v398_v18 }
 0x145   :  { %v401_v21 = vrot.slane %v400_v20, 2 }
 0x147   :  { %v402_v22 = vadd.f32 %v401_v21, %v400_v20 }
 0x149   :  { %v403_v23 = vrot.slane %v402_v22, 1 }
 0x14b   :  { %v404_v24 = vadd.f32 %v403_v23, %v402_v22 }
 0x14d   :  { %v405_v25 = vmul.f32 0.0078125, %v404_v24 }
 0x14f   :  { %v406_v26 = vadd.f32 1e-05, %v405_v25 }
 0x151   :  { %8038 = vrsqrt.f32 %v406_v26 }
 0x15b   :  { %v8039_v39 = vpop.eup %8038 }
 0x15c   :  { %v408_v40 = vmul.f32 %v8039_v39, %v295_v29 }
 0x15e   :  { %v412_v41 = vrot.slane %v408_v40, %v8689_v38 }
 0x160   :  { %v413_v42 = vmul.f32 %v412_v41, %v8602_v47  ;;  %v414_v43 = vmul.f32 %v412_v41, %v8604_v49  ;;  %v415_v44 = vmul.f32 %v412_v41, %v8606_v52  ;;  %v416_v33 = vmul.f32 %v412_v41, %v8608_v55 }
 0x161   :  { %v417_v35 = vmul.f32 %v412_v41, %v8610_v56  ;;  %v418_v37 = vmul.f32 %v412_v41, %v8612_v57  ;;  %v419_v48 = vmul.f32 %v412_v41, %v8614_v58  ;;  %v420_v45 = vmul.f32 %v412_v41, %v8616_v59 }
 0x162   :  { %v421_v47 = vmul.f32 %v412_v41, %v8618_v60  ;;  %v422_v49 = vmul.f32 %v412_v41, %v8620_v61  ;;  %v423_v52 = vmul.f32 %v412_v41, %v8623_v32  ;;  %v424_v55 = vmul.f32 %v412_v41, %v8625_v36 }
 0x163   :  { %v425_v50 = vmul.f32 %v412_v41, %v8627_v30  ;;  %v426_v51 = vmul.f32 %v412_v41, %v8629_v34  ;;  %v427_v56 = vmul.f32 %v412_v41, %v8631_v46  ;;  %v428_v57 = vmul.f32 %v412_v41, %v8633_v53 }
 0x164   :  { %v433_v54 = vadd.f32 %v6399_v31, %v413_v42  ;;  %v434_v58 = vadd.f32 %v6399_v31, %v414_v43  ;;  %v435_v62 = vadd.f32 %v6399_v31, %v415_v44  ;;  %v436_v59 = vadd.f32 %v6399_v31, %v416_v33 }
 0x165   :  { %v437_v63 = vadd.f32 %v6399_v31, %v417_v35  ;;  %v438_v60 = vadd.f32 %v6399_v31, %v418_v37  ;;  %v439_v0 = vadd.f32 %v6399_v31, %v419_v48  ;;  %v440_v61 = vadd.f32 %v6399_v31, %v420_v45 }
 0x166   :  { %v441_v9 = vadd.f32 %v6399_v31, %v421_v47  ;;  %v442_v32 = vadd.f32 %v6399_v31, %v422_v49  ;;  %v443_v18 = vadd.f32 %v6399_v31, %v423_v52  ;;  %v444_v36 = vadd.f32 %v6399_v31, %v424_v55 }
 0x167   :  { %v445_v19 = vadd.f32 %v6399_v31, %v425_v50  ;;  %v446_v30 = vadd.f32 %v6399_v31, %v426_v51  ;;  %v447_v20 = vadd.f32 %v6399_v31, %v427_v56  ;;  %v448_v34 = vadd.f32 %v6399_v31, %v428_v57 }
 0x168   :  { %v449_v21 = vmax.f32 %v433_v54, 0.0   ;;  %v450_v46 = vmax.f32 %v434_v58, 0.0   ;;  %v451_v22 = vmax.f32 %v435_v62, 0.0   ;;  %v452_v53 = vmax.f32 %v436_v59, 0.0  }
 0x169   :  { %v453_v23 = vmax.f32 %v437_v63, 0.0   ;;  %v454_v24 = vmax.f32 %v438_v60, 0.0   ;;  %v455_v25 = vmax.f32 %v439_v0, 0.0   ;;  %v456_v26 = vmax.f32 %v440_v61, 0.0  }
 0x16a   :  { %v457_v27 = vmax.f32 %v441_v9, 0.0   ;;  %v458_v29 = vmax.f32 %v442_v32, 0.0   ;;  %v459_v39 = vmax.f32 %v443_v18, 0.0   ;;  %v460_v40 = vmax.f32 %v444_v36, 0.0  }
 0x16b   :  { %v461_v41 = vmax.f32 %v445_v19, 0.0   ;;  %v462_v42 = vmax.f32 %v446_v30, 0.0   ;;  %v463_v43 = vmax.f32 %v447_v20, 0.0   ;;  %v464_v44 = vmax.f32 %v448_v34, 0.0  }
 0x16c LB: > { %v11722_v16 = vld [vmem:[#allocation21_spill] sm:$0xff]  ;;  %v11723_v14 = vld [vmem:[#allocation19_spill] sm:$0xff]  ;;  %v11726_v17 = vld [vmem:[#allocation22_spill] sm:$0xff]  ;;  %11738 = vst [vmem:[#allocation25_spill] sm:$0xff] %v8271_v44  ;;  %v8338_v33 = vmov 1   ;;  %s6828_s0 = smul.u32 576, %s8335_s1  ;;  %v8331_v21 = vphi %v449_v21, %v12205_v21   ;;  %v8327_v46 = vphi %v450_v46, %v12204_v46   ;;  %v8323_v22 = vphi %v451_v22, %v12203_v22   ;;  %v8319_v53 = vphi %v452_v53, %v12202_v53   ;;  %v8315_v23 = vphi %v453_v23, %v12201_v23   ;;  %v8311_v24 = vphi %v454_v24, %v12200_v24   ;;  %v8307_v25 = vphi %v455_v25, %v12199_v25   ;;  %v8303_v26 = vphi %v456_v26, %v12198_v26   ;;  %v8299_v27 = vphi %v457_v27, %v12197_v27   ;;  %v8295_v29 = vphi %v458_v29, %v12196_v29   ;;  %v8291_v39 = vphi %v459_v39, %v12195_v39   ;;  %v8287_v40 = vphi %v460_v40, %v12194_v40   ;;  %v8283_v41 = vphi %v461_v41, %v12193_v41   ;;  %v8279_v42 = vphi %v462_v42, %v12192_v42   ;;  %v8275_v43 = vphi %v463_v43, %v12191_v43   ;;  %v8271_v44 = vphi %v464_v44, %v12190_v44   ;;  %s8335_s1 = sphi %s8743_s1, %s470_s1  }
 0x16d   : > { %v11724_v12 = vld [vmem:[#allocation17_spill] sm:$0xff]  ;;  %v11725_v10 = vld [vmem:[#allocation15_spill] sm:$0xff]  ;;  %v11730_v15 = vld [vmem:[#allocation20_spill] sm:$0xff]  ;;  %11739 = vst [vmem:[#allocation26_spill] sm:$0xff] %v8275_v43  ;;  %8041 = vset.pattern.permute.xlu1 %v8338_v33  ;;  %8040 = vset.pattern.permute.xlu0 %v8338_v33  ;;  %v8339_v47 = vmov 0   ;;  %v8340_v49 = vmov 2  }
 0x16e   : > { %v11727_v7 = vld [vmem:[#allocation13_spill] sm:$0xff]  ;;  %v11728_v5 = vld [vmem:[#allocation11_spill] sm:$0xff]  ;;  %v11731_v2 = vld [vmem:[#allocation8_spill] sm:$0xff]  ;;  %11740 = vst [vmem:[#allocation27_spill] sm:$0xff] %v8279_v42  ;;  %s8810_s18 = scalar_lea.vmem %s11442_s3, %s6828_s0  ;;  %v8341_v52 = vmov 3   ;;  %v8342_v56 = vmov 5  }
 0x16f   : > { %v11729_v3 = vld [vmem:[#allocation9_spill] sm:$0xff]  ;;  %v11732_v13 = vld [vmem:[#allocation18_spill] sm:$0xff]  ;;  %v11733_v11 = vld [vmem:[#allocation16_spill] sm:$0xff]  ;;  %11741 = vst [vmem:[#allocation28_spill] sm:$0xff] %v8283_v41  ;;  %s6582_s19 = sshll.u32 %s8335_s1, 1  ;;  %s470_s1 = sadd.s32 1, %s8335_s1  }
 0x170   : > { %v11734_v8 = vld [vmem:[#allocation14_spill] sm:$0xff]  ;;  %v11735_v6 = vld [vmem:[#allocation12_spill] sm:$0xff]  ;;  %v11737_v1 = vld [vmem:[#allocation7_spill] sm:$0xff]  ;;  %11742 = vst [vmem:[#allocation29_spill] sm:$0xff] %v8287_v40  ;;  %662 = vperm.xlu1 %8041, %v11729_v3   ;;  %s9806_s22 = scalar_lea.vmem %s11443_s4, %s6582_s19  ;;  %s9812_s25 = scalar_lea.vmem %s11444_s5, %s6582_s19 }
 0x171   : > { %v11736_v4 = vld [vmem:[#allocation10_spill] sm:$0xff]  ;;  %11743 = vst [vmem:[#allocation30_spill] sm:$0xff] %v8291_v39  ;;  %11744 = vst [vmem:[#allocation31_spill] sm:$0xff] %v8295_v29  ;;  %654 = vperm.xlu0 %8040, %v11737_v1   ;;  %v8057_v35 = vld [vmem:[%s8810_s18 + $0x28] sm:$0xff]   ;;  %p10822_p0 = scmp.ge.s32.totalorder %s470_s1, 10  }
 0x172   : > { %11745 = vst [vmem:[#allocation32_spill] sm:$0xff] %v8299_v27  ;;  %11746 = vst [vmem:[#allocation33_spill] sm:$0xff] %v8303_v26  ;;  %v8056_v31 = vld [vmem:[%s8810_s18 + $0x20] sm:$0xff]   ;;  %v8058_v37 = vld [vmem:[%s8810_s18 + $0x30] sm:$0xff]   ;;  %vm5309_vm3 = vcmask (%p10822_p0), 23552   ;;  %vm5827_vm4 = vcmask (%p10822_p0), 1041409  }
 0x173   : > { %11747 = vst [vmem:[#allocation34_spill] sm:$0xff] %v8307_v25  ;;  %11748 = vst [vmem:[#allocation35_spill] sm:$0xff] %v8311_v24  ;;  %7125 = vmatprep.subr.bf16.mxu0 %v8056_v31  ;;  %v8059_v48 = vld [vmem:[%s8810_s18 + $0x38] sm:$0xff]   ;;  %v8837_v45 = vld [vmem:[%s8810_s18] sm:$0xff]   ;;  %vm6217_vm5 = vcmask (%p10822_p0), 1024   ;;  %vm5905_vm6 = vcmask (%p10822_p0), 1043459  }
 0x174   : > { %11749 = vst [vmem:[#allocation36_spill] sm:$0xff] %v8315_v23  ;;  %11750 = vst [vmem:[#allocation37_spill] sm:$0xff] %v8319_v53  ;;  %666 = vperm.xlu1 %8041, %v11736_v4   ;;  %7126 = vmatpush3.bf16.msra.mxu0 %v8056_v31  ;;  %v637_v51 = vld [vmem:[#allocation2 + $0x8] sm:$0xff]  ;;  %vm5907_vm7 = vcmask (%p10822_p0), 1045509   ;;  %vm5909_vm8 = vcmask (%p10822_p0), 1047559  }
 0x175   : > { %11751 = vst [vmem:[#allocation38_spill] sm:$0xff] %v8323_v22  ;;  %11752 = vst [vmem:[#allocation39_spill] sm:$0xff] %v8327_v46  ;;  %658 = vperm.xlu0 %8040, %v11731_v2   ;;  %7127 = vmatprep.subr.bf16.mxu0 %v8057_v35  ;;  %v8061_v20 = vld [vmem:[%s8810_s18 + $0x8] sm:$0xff]  }
 0x176   : > { %11753 = vst [vmem:[#allocation40_spill] sm:$0xff] %v8331_v21  ;;  %490 = vst.msk [vmem:[#allocation2 + $0x18] sm:$0xff] %vm56_vm0, %v8327_v46 }
 0x177   : > { %491 = vst.msk [vmem:[#allocation2 + $0x20] sm:$0xff] %vm56_vm0, %v8323_v22  ;;  %493 = vst.msk [vmem:[#allocation2 + $0x30] sm:$0xff] %vm56_vm0, %v8315_v23 }
 0x178   : > { %492 = vst.msk [vmem:[#allocation2 + $0x28] sm:$0xff] %vm56_vm0, %v8319_v53  ;;  %489 = vst.msk [vmem:[#allocation2 + $0x10] sm:$0xff] %vm56_vm0, %v8331_v21  ;;  %674 = vperm.xlu1 %8041, %v11735_v6   ;;  %7128 = vmatpush3.bf16.msra.mxu0 %v8057_v35 }
 0x179   : > { %495 = vst.msk [vmem:[#allocation2 + $0x40] sm:$0xff] %vm56_vm0, %v8307_v25  ;;  %494 = vst.msk [vmem:[#allocation2 + $0x38] sm:$0xff] %vm56_vm0, %v8311_v24  ;;  %670 = vperm.xlu0 %8040, %v11728_v5   ;;  %7129 = vmatprep.subr.bf16.mxu0 %v8058_v37 }
 0x17a   : > { %497 = vst.msk [vmem:[#allocation2 + $0x50] sm:$0xff] %vm56_vm0, %v8299_v27  ;;  %496 = vst.msk [vmem:[#allocation2 + $0x48] sm:$0xff] %vm56_vm0, %v8303_v26  ;;  %v3089_v26 = vld [vmem:[#allocation2 + $0x7] sm:$0xff] }
 0x17b   : > { %499 = vst.msk [vmem:[#allocation2 + $0x60] sm:$0xff] %vm56_vm0, %v8291_v39  ;;  %498 = vst.msk [vmem:[#allocation2 + $0x58] sm:$0xff] %vm56_vm0, %v8295_v29 }
 0x17c   : > { %682 = vperm.xlu1 %8041, %v11734_v8   ;;  %7130 = vmatpush3.bf16.msra.mxu0 %v8058_v37  ;;  %501 = vst.msk [vmem:[#allocation2 + $0x70] sm:$0xff] %vm56_vm0, %v8283_v41  ;;  %500 = vst.msk [vmem:[#allocation2 + $0x68] sm:$0xff] %vm56_vm0, %v8287_v40 }
 0x17d   : > { %678 = vperm.xlu0 %8040, %v11727_v7   ;;  %7131 = vmatprep.subr.bf16.mxu0 %v8059_v48  ;;  %503 = vst.msk [vmem:[#allocation2 + $0x80] sm:$0xff] %vm56_vm0, %v8275_v43  ;;  %502 = vst.msk [vmem:[#allocation2 + $0x78] sm:$0xff] %vm56_vm0, %v8279_v42  ;;  %v8910_v57 = vld [vmem:[#allocation2 + $0x18] sm:$0xff] }
 0x17e   : > { %504 = vst.msk [vmem:[#allocation2 + $0x88] sm:$0xff] %vm56_vm0, %v8271_v44  ;;  %v8912_v54 = vld [vmem:[#allocation2 + $0x20] sm:$0xff]  ;;  %v8929_v9 = vld [vmem:[#allocation2 + $0x30] sm:$0xff] }
 0x17f   : > { %v8914_v58 = vld [vmem:[#allocation2 + $0x10] sm:$0xff]  ;;  %v8931_v32 = vld [vmem:[#allocation2 + $0x28] sm:$0xff]  ;;  %v9038_v53 = vld [vmem:[#allocation2 + $0x1f] sm:$0xff] }
 0x180   : > { %690 = vperm.xlu1 %8041, %v11733_v11   ;;  %7132 = vmatpush3.bf16.msra.mxu0 %v8059_v48  ;;  %v8945_v31 = vld [vmem:[#allocation2 + $0x40] sm:$0xff]  ;;  %v8947_v35 = vld [vmem:[#allocation2 + $0x38] sm:$0xff]  ;;  %v9024_v27 = vld [vmem:[#allocation2 + $0xf] sm:$0xff] }
 0x181   : > { %686 = vperm.xlu0 %8040, %v11725_v10   ;;  %7149 = vmatprep.subr.bf16.mxu0 %v8837_v45  ;;  %v9053_v21 = vld [vmem:[#allocation2 + $0x2f] sm:$0xff]  ;;  %v9197_v38 = vld [vmem:[#allocation2 + $0x39] sm:$0xff] }
 0x182   : > { %11797 = vst [vmem:[#allocation84_spill] sm:$0xff] %v9197_v38 }
 0x183   : > { %v8994_v44 = vld [vmem:[#allocation2 + $0x70] sm:$0xff] }
 0x184   : > { %698 = vperm.xlu1 %8041, %v11732_v13   ;;  %v9011_v40 = vld [vmem:[#allocation2 + $0x78] sm:$0xff] }
 0x185   : > { %694 = vperm.xlu0 %8040, %v11724_v12  }
 0x188   : > { %706 = vperm.xlu1 %8041, %v11730_v15  }
 0x189   : > { %702 = vperm.xlu0 %8040, %v11723_v14  }
 0x18c   : > { %714 = vperm.xlu1 %8041, %v11726_v17  }
 0x18d   : > { %710 = vperm.xlu0 %8040, %v11722_v16  }
 0x190   : > { %8043 = vset.pattern.permute.xlu1 %v8339_v47 }
 0x191   : > { %8042 = vset.pattern.permute.xlu0 %v8339_v47  ;;  %528 = vperm.xlu1 %8043, %v11731_v2  }
 0x192   : > { %523 = vperm.xlu0 %8042, %v11737_v1  }
 0x195   : > { %533 = vperm.xlu1 %8043, %v11729_v3  }
 0x196   : > { %538 = vperm.xlu0 %8042, %v11736_v4  }
 0x199   : > { %543 = vperm.xlu1 %8043, %v11728_v5  }
 0x19a   : > { %548 = vperm.xlu0 %8042, %v11735_v6  }
 0x19d   : > { %553 = vperm.xlu1 %8043, %v11727_v7  }
 0x19e   : > { %558 = vperm.xlu0 %8042, %v11734_v8  }
 0x1a1   : > { %563 = vperm.xlu1 %8043, %v11725_v10  }
 0x1a2   : > { %568 = vperm.xlu0 %8042, %v11733_v11  }
 0x1a5   : > { %573 = vperm.xlu1 %8043, %v11724_v12  }
 0x1a6   : > { %578 = vperm.xlu0 %8042, %v11732_v13  }
 0x1a9   : > { %583 = vperm.xlu1 %8043, %v11723_v14  }
 0x1aa   : > { %588 = vperm.xlu0 %8042, %v11730_v15  }
 0x1ad   : > { %593 = vperm.xlu1 %8043, %v11722_v16  }
 0x1ae   : > { %598 = vperm.xlu0 %8042, %v11726_v17  }
 0x1b1   : > { %8044 = vset.pattern.permute.xlu1 %v8340_v49 }
 0x1b2   : > { %8045 = vset.pattern.permute.xlu0 %v8340_v49  ;;  %1060 = vperm.xlu1 %8044, %v11737_v1   ;;  %v8062_v49 = vld [vmem:[%s8810_s18 + $0x10] sm:$0xff]  }
 0x1b3   : > { %1064 = vperm.xlu0 %8045, %v11731_v2  }
 0x1b6   : > { %1068 = vperm.xlu1 %8044, %v11729_v3  }
 0x1b7   : > { %1076 = vperm.xlu0 %8045, %v11728_v5  }
 0x1ba   : > { %1072 = vperm.xlu1 %8044, %v11736_v4  }
 0x1bb   : > { %1084 = vperm.xlu0 %8045, %v11727_v7  }
 0x1be   : > { %1080 = vperm.xlu1 %8044, %v11735_v6  }
 0x1bf   : > { %1092 = vperm.xlu0 %8045, %v11725_v10  }
 0x1c2   : > { %1088 = vperm.xlu1 %8044, %v11734_v8  }
 0x1c3   : > { %1100 = vperm.xlu0 %8045, %v11724_v12  }
 0x1c6   : > { %1096 = vperm.xlu1 %8044, %v11733_v11  }
 0x1c7   : > { %1108 = vperm.xlu0 %8045, %v11723_v14  }
 0x1ca   : > { %1104 = vperm.xlu1 %8044, %v11732_v13  }
 0x1cb   : > { %1116 = vperm.xlu0 %8045, %v11722_v16  }
 0x1ce   : > { %1112 = vperm.xlu1 %8044, %v11730_v15  }
 0x1cf   : > { %8046 = vset.pattern.permute.xlu0 %v8341_v52 }
 0x1d0   : > { %1337 = vperm.xlu0 %8046, %v11737_v1  }
 0x1d2   : > { %1120 = vperm.xlu1 %8044, %v11726_v17  }
 0x1d4   : > { %1349 = vperm.xlu0 %8046, %v11736_v4  }
 0x1d6   : > { %8047 = vset.pattern.permute.xlu1 %v8341_v52 }
 0x1d7   : > { %1341 = vperm.xlu1 %8047, %v11731_v2  }
 0x1d8   : > { %1357 = vperm.xlu0 %8046, %v11735_v6  }
 0x1db   : > { %1345 = vperm.xlu1 %8047, %v11729_v3  }
 0x1dc   : > { %1365 = vperm.xlu0 %8046, %v11734_v8  }
 0x1df   : > { %1353 = vperm.xlu1 %8047, %v11728_v5  }
 0x1e0   : > { %1373 = vperm.xlu0 %8046, %v11733_v11  }
 0x1e3   : > { %1361 = vperm.xlu1 %8047, %v11727_v7  }
 0x1e4   : > { %1381 = vperm.xlu0 %8046, %v11732_v13  }
 0x1e7   : > { %1369 = vperm.xlu1 %8047, %v11725_v10  }
 0x1e8   : > { %1389 = vperm.xlu0 %8046, %v11730_v15  }
 0x1eb   : > { %1377 = vperm.xlu1 %8047, %v11724_v12  }
 0x1ec   : > { %1397 = vperm.xlu0 %8046, %v11726_v17  }
 0x1ef   : > { %v8904_v55 = vpop.permute.xlu1 %662  ;;  %1385 = vperm.xlu1 %8047, %v11723_v14  }
 0x1f0   : > { %11754 = vst [vmem:[#allocation41_spill] sm:$0xff] %v8904_v55  ;;  %v8906_v50 = vpop.permute.xlu0 %654  ;;  %8049 = vset.pattern.permute.xlu0 %v8342_v56  ;;  %v719_v60 = vmul.f32 %v8904_v55, %v8910_v57  ;;  %v8069_v55 = vld [vmem:[%s8810_s18 + $0x68] sm:$0xff]  }
 0x1f1   : > { %11755 = vst [vmem:[#allocation42_spill] sm:$0xff] %v8906_v50  ;;  %1815 = vperm.xlu0 %8049, %v11731_v2   ;;  %v717_v62 = vmul.f32 %v8906_v50, %v637_v51 }
 0x1f3   : > { %v8917_v59 = vpop.permute.xlu1 %666  ;;  %1393 = vperm.xlu1 %8047, %v11722_v16  }
 0x1f4   : > { %11756 = vst [vmem:[#allocation43_spill] sm:$0xff] %v8917_v59  ;;  %v8919_v63 = vpop.permute.xlu0 %658  ;;  %v720_v0 = vmul.f32 %v8917_v59, %v8912_v54 }
 0x1f5   : > { %11757 = vst [vmem:[#allocation44_spill] sm:$0xff] %v8919_v63  ;;  %v718_v61 = vmul.f32 %v8919_v63, %v8914_v58  ;;  %1827 = vperm.xlu0 %8049, %v11728_v5  }
 0x1f6   : > { %v734_v36 = vpack.c.bf16 %v720_v0, %v719_v60 }
 0x1f7   : > { %v733_v18 = vpack.c.bf16 %v718_v61, %v717_v62  ;;  %v8933_v19 = vpop.permute.xlu1 %674  ;;  %8048 = vset.pattern.permute.xlu1 %v8342_v56  ;;  %v8962_v56 = vld [vmem:[#allocation2 + $0x50] sm:$0xff]  ;;  %v8063_v61 = vld [vmem:[%s8810_s18 + $0x18] sm:$0xff]  }
 0x1f8   : > { %11758 = vst [vmem:[#allocation45_spill] sm:$0xff] %v8933_v19  ;;  %v8935_v30 = vpop.permute.xlu0 %670  ;;  %v722_v34 = vmul.f32 %v8933_v19, %v8929_v9  ;;  %1811 = vperm.xlu1 %8048, %v11737_v1   ;;  %v9148_v19 = vld [vmem:[#allocation2 + $0x11] sm:$0xff] }
 0x1f9   : > { %11759 = vst [vmem:[#allocation46_spill] sm:$0xff] %v8935_v30  ;;  %v721_v33 = vmul.f32 %v8935_v30, %v8931_v32  ;;  %7133 = vmatprep.mubr.msk.bf16.mxu0 %vm56_vm0, %v733_v18  ;;  %1835 = vperm.xlu0 %8049, %v11727_v7   ;;  %v9167_v30 = vld [vmem:[#allocation2 + $0x19] sm:$0xff] }
 0x1fa   : > { %7134 = vmatmul.mubr.msk.bf16.vlgmr.msra.gmra.mrb[0].mxu0 %vm56_vm0, %v734_v36 }
 0x1fb   : > { %v735_v37 = vpack.c.bf16 %v722_v34, %v721_v33  ;;  %7150 = vmatpush3.bf16.msra.mxu0 %v8837_v45  ;;  %v8951_v48 = vpop.permute.xlu1 %682  ;;  %v8964_v45 = vld [vmem:[#allocation2 + $0x48] sm:$0xff]  ;;  %v8978_v34 = vld [vmem:[#allocation2 + $0x60] sm:$0xff] }
 0x1fc   : > { %11760 = vst [vmem:[#allocation47_spill] sm:$0xff] %v8951_v48  ;;  %v8953_v47 = vpop.permute.xlu0 %678  ;;  %7151 = vmatprep.subr.bf16.mxu0 %v8061_v20  ;;  %v724_v52 = vmul.f32 %v8951_v48, %v8945_v31  ;;  %1819 = vperm.xlu1 %8048, %v11729_v3  }
 0x1fd   : > { %11761 = vst [vmem:[#allocation48_spill] sm:$0xff] %v8953_v47  ;;  %v723_v51 = vmul.f32 %v8953_v47, %v8947_v35  ;;  %7137 = vmatprep.mubr.msk.bf16.mxu0 %vm56_vm0, %v735_v37  ;;  %1843 = vperm.xlu0 %8049, %v11725_v10   ;;  %v1043_v47 = vld [vmem:[#allocation2 + $0x9] sm:$0xff] }
 0x1ff   : > { %v736_v62 = vpack.c.bf16 %v724_v52, %v723_v51  ;;  %7152 = vmatpush3.bf16.msra.mxu0 %v8061_v20  ;;  %v8967_v60 = vpop.permute.xlu1 %690  ;;  %v8980_v20 = vld [vmem:[#allocation2 + $0x58] sm:$0xff]  ;;  %v8064_v51 = vld [vmem:[%s8810_s18 + $0x40] sm:$0xff]  }
 0x200   : > { %11762 = vst [vmem:[#allocation49_spill] sm:$0xff] %v8967_v60  ;;  %v8969_v0 = vpop.permute.xlu0 %686  ;;  %7153 = vmatprep.subr.bf16.mxu0 %v8062_v49  ;;  %v726_v18 = vmul.f32 %v8967_v60, %v8962_v56  ;;  %1823 = vperm.xlu1 %8048, %v11736_v4   ;;  %v9133_v60 = vld [vmem:[#allocation2 + $0x77] sm:$0xff] }
 0x201   : > { %11763 = vst [vmem:[#allocation50_spill] sm:$0xff] %v8969_v0  ;;  %v725_v36 = vmul.f32 %v8969_v0, %v8964_v45  ;;  %1851 = vperm.xlu0 %8049, %v11724_v12  }
 0x202   : > { %7138 = vmatmul.mubr.msk.bf16.gmra.mrb[4].mxu0 %vm56_vm0, %v736_v62 }
 0x203   : > { %v737_v33 = vpack.c.bf16 %v726_v18, %v725_v36  ;;  %7154 = vmatpush3.bf16.msra.mxu0 %v8062_v49  ;;  %v8983_v37 = vpop.permute.xlu1 %698  ;;  %v8996_v18 = vld [vmem:[#allocation2 + $0x68] sm:$0xff] }
 0x204   : > { %11764 = vst [vmem:[#allocation51_spill] sm:$0xff] %v8983_v37  ;;  %v8985_v52 = vpop.permute.xlu0 %694  ;;  %7155 = vmatprep.subr.bf16.mxu0 %v8063_v61  ;;  %v728_v28 = vmul.f32 %v8983_v37, %v8978_v34  ;;  %1831 = vperm.xlu1 %8048, %v11735_v6  }
 0x205   : > { %11765 = vst [vmem:[#allocation52_spill] sm:$0xff] %v8985_v52  ;;  %v727_v62 = vmul.f32 %v8985_v52, %v8980_v20  ;;  %7141 = vmatprep.mubr.msk.bf16.mxu0 %vm56_vm0, %v737_v33  ;;  %1859 = vperm.xlu0 %8049, %v11723_v14   ;;  %v9009_v33 = vld [vmem:[#allocation2 + $0x80] sm:$0xff] }
 0x206   : > { %v9117_v52 = vld [vmem:[#allocation2 + $0x67] sm:$0xff] }
 0x207   : > { %v738_v49 = vpack.c.bf16 %v728_v28, %v727_v62  ;;  %7156 = vmatpush3.bf16.msra.mxu0 %v8063_v61  ;;  %v8999_v36 = vpop.permute.xlu1 %706 }
 0x208   : > { %11766 = vst [vmem:[#allocation53_spill] sm:$0xff] %v8999_v36  ;;  %v9001_v43 = vpop.permute.xlu0 %702  ;;  %7173 = vmatprep.subr.bf16.mxu0 %v8064_v51  ;;  %v730_v42 = vmul.f32 %v8999_v36, %v8994_v44  ;;  %1839 = vperm.xlu1 %8048, %v11734_v8  }
 0x209   : > { %11767 = vst [vmem:[#allocation54_spill] sm:$0xff] %v9001_v43  ;;  %v729_v41 = vmul.f32 %v9001_v43, %v8996_v18  ;;  %1867 = vperm.xlu0 %8049, %v11722_v16   ;;  %v9101_v43 = vld [vmem:[#allocation2 + $0x5f] sm:$0xff] }
 0x20a   : > { %7142 = vmatmul.mubr.msk.bf16.gmra.mrb[8].mxu0 %vm56_vm0, %v738_v49  ;;  %v8343_v49 = vmov 6  }
 0x20b   : > { %v739_v28 = vpack.c.bf16 %v730_v42, %v729_v41  ;;  %v9014_v61 = vpop.permute.xlu1 %714 }
 0x20c   : > { %11768 = vst [vmem:[#allocation55_spill] sm:$0xff] %v9014_v61  ;;  %v9016_v62 = vpop.permute.xlu0 %710  ;;  %v732_v39 = vmul.f32 %v9014_v61, %v9009_v33  ;;  %1847 = vperm.xlu1 %8048, %v11733_v11   ;;  %v9069_v61 = vld [vmem:[#allocation2 + $0x3f] sm:$0xff] }
 0x20d   : > { %11769 = vst [vmem:[#allocation56_spill] sm:$0xff] %v9016_v62  ;;  %v731_v29 = vmul.f32 %v9016_v62, %v9011_v40  ;;  %7145 = vmatprep.mubr.msk.bf16.mxu0 %vm56_vm0, %v739_v28  ;;  %8050 = vset.pattern.permute.xlu0 %v8343_v49  ;;  %v9036_v28 = vld [vmem:[#allocation2 + $0x17] sm:$0xff] }
 0x20e   : > { %2088 = vperm.xlu0 %8050, %v11737_v1  }
 0x20f   : > { %v740_v41 = vpack.c.bf16 %v732_v39, %v731_v29 }
 0x210   : > { %1855 = vperm.xlu1 %8048, %v11732_v13   ;;  %v9028_v42 = vpop.permute.xlu1 %528 }
 0x211   : > { %11770 = vst [vmem:[#allocation57_spill] sm:$0xff] %v9028_v42  ;;  %v9030_v25 = vpop.permute.xlu0 %523  ;;  %v602_v24 = vmul.f32 %v9028_v42, %v9024_v27 }
 0x212   : > { %11771 = vst [vmem:[#allocation58_spill] sm:$0xff] %v9030_v25  ;;  %v601_v23 = vmul.f32 %v3089_v26, %v9030_v25  ;;  %7146 = vmatmul.mubr.msk.bf16.gmra.mrb[12].mxu0 %vm56_vm0, %v740_v41  ;;  %2100 = vperm.xlu0 %8050, %v11736_v4   ;;  %v9051_v41 = vld [vmem:[#allocation2 + $0x27] sm:$0xff] }
 0x214   : > { %v617_v29 = vpack.c.bf16 %v602_v24, %v601_v23  ;;  %1863 = vperm.xlu1 %8048, %v11730_v15   ;;  %v9042_v39 = vpop.permute.xlu1 %533  ;;  %v8065_v24 = vld [vmem:[%s8810_s18 + $0x48] sm:$0xff]  }
 0x215   : > { %11772 = vst [vmem:[#allocation59_spill] sm:$0xff] %v9042_v39  ;;  %v9044_v22 = vpop.permute.xlu0 %538  ;;  %v603_v46 = vmul.f32 %v9042_v39, %v9036_v28  ;;  %v9067_v39 = vld [vmem:[#allocation2 + $0x37] sm:$0xff] }
 0x216   : > { %11773 = vst [vmem:[#allocation60_spill] sm:$0xff] %v9044_v22  ;;  %v604_v26 = vmul.f32 %v9044_v22, %v9038_v53  ;;  %7157 = vmatprep.mubr.msk.bf16.mxu0 %vm56_vm0, %v617_v29  ;;  %2108 = vperm.xlu0 %8050, %v11735_v6  }
 0x218   : > { %v618_v23 = vpack.c.bf16 %v604_v26, %v603_v46  ;;  %1871 = vperm.xlu1 %8048, %v11726_v17   ;;  %v9058_v25 = vpop.permute.xlu1 %543  ;;  %v8066_v26 = vld [vmem:[%s8810_s18 + $0x50] sm:$0xff]  }
 0x219   : > { %11774 = vst [vmem:[#allocation61_spill] sm:$0xff] %v9058_v25  ;;  %v9060_v42 = vpop.permute.xlu0 %548  ;;  %v605_v22 = vmul.f32 %v9058_v25, %v9051_v41 }
 0x21a   : > { %11775 = vst [vmem:[#allocation62_spill] sm:$0xff] %v9060_v42  ;;  %v606_v29 = vmul.f32 %v9060_v42, %v9053_v21  ;;  %7158 = vmatmul.mubr.msk.bf16.vlgmr.msra.gmra.mrb[0].mxu0 %vm56_vm0, %v618_v23  ;;  %2116 = vperm.xlu0 %8050, %v11734_v8  }
 0x21b   : > { %7174 = vmatpush3.bf16.msra.mxu0 %v8064_v51  ;;  %v9083_v51 = vld [vmem:[#allocation2 + $0x47] sm:$0xff] }
 0x21c   : > { %v619_v46 = vpack.c.bf16 %v606_v29, %v605_v22  ;;  %7175 = vmatprep.subr.bf16.mxu0 %v8065_v24  ;;  %8051 = vset.pattern.permute.xlu1 %v8343_v49  ;;  %v9073_v62 = vpop.permute.xlu1 %553  ;;  %v9085_v22 = vld [vmem:[#allocation2 + $0x4f] sm:$0xff]  ;;  %v8067_v29 = vld [vmem:[%s8810_s18 + $0x58] sm:$0xff]  }
 0x21d   : > { %11776 = vst [vmem:[#allocation63_spill] sm:$0xff] %v9073_v62  ;;  %v9075_v25 = vpop.permute.xlu0 %558  ;;  %v607_v42 = vmul.f32 %v9073_v62, %v9067_v39  ;;  %2092 = vperm.xlu1 %8051, %v11731_v2  }
 0x21e   : > { %11777 = vst [vmem:[#allocation64_spill] sm:$0xff] %v9075_v25  ;;  %v608_v23 = vmul.f32 %v9075_v25, %v9069_v61  ;;  %7161 = vmatprep.mubr.msk.bf16.mxu0 %vm56_vm0, %v619_v46  ;;  %2124 = vperm.xlu0 %8050, %v11733_v11  }
 0x21f   : > { %7176 = vmatpush3.bf16.msra.mxu0 %v8065_v24  ;;  %v9099_v24 = vld [vmem:[#allocation2 + $0x57] sm:$0xff] }
 0x220   : > { %v620_v49 = vpack.c.bf16 %v608_v23, %v607_v42  ;;  %7177 = vmatprep.subr.bf16.mxu0 %v8066_v26  ;;  %v9089_v36 = vpop.permute.xlu1 %563  ;;  %v9105_v23 = vld [vmem:[%s8810_s18 + $0x60] sm:$0xff]  }
 0x221   : > { %11778 = vst [vmem:[#allocation65_spill] sm:$0xff] %v9089_v36  ;;  %v9091_v62 = vpop.permute.xlu0 %568  ;;  %v609_v25 = vmul.f32 %v9089_v36, %v9083_v51  ;;  %2096 = vperm.xlu1 %8051, %v11729_v3  }
 0x222   : > { %11779 = vst [vmem:[#allocation66_spill] sm:$0xff] %v9091_v62  ;;  %v610_v46 = vmul.f32 %v9091_v62, %v9085_v22  ;;  %7162 = vmatmul.mubr.msk.bf16.gmra.mrb[4].mxu0 %vm56_vm0, %v620_v49  ;;  %2132 = vperm.xlu0 %8050, %v11732_v13  }
 0x223   : > { %7178 = vmatpush3.bf16.msra.mxu0 %v8066_v26 }
 0x224   : > { %v621_v42 = vpack.c.bf16 %v610_v46, %v609_v25  ;;  %7179 = vmatprep.subr.bf16.mxu0 %v8067_v29  ;;  %v9107_v37 = vpop.permute.xlu1 %573  ;;  %v9119_v25 = vld [vmem:[#allocation2 + $0x6f] sm:$0xff] }
 0x225   : > { %11780 = vst [vmem:[#allocation67_spill] sm:$0xff] %v9107_v37  ;;  %v9109_v36 = vpop.permute.xlu0 %578  ;;  %v611_v62 = vmul.f32 %v9107_v37, %v9099_v24  ;;  %2104 = vperm.xlu1 %8051, %v11728_v5  }
 0x226   : > { %11781 = vst [vmem:[#allocation68_spill] sm:$0xff] %v9109_v36  ;;  %v612_v49 = vmul.f32 %v9109_v36, %v9101_v43  ;;  %7165 = vmatprep.mubr.msk.bf16.mxu0 %vm56_vm0, %v621_v42  ;;  %2140 = vperm.xlu0 %8050, %v11730_v15  }
 0x227   : > { %7180 = vmatpush3.bf16.msra.mxu0 %v8067_v29  ;;  %v9135_v29 = vld [vmem:[#allocation2 + $0x7f] sm:$0xff] }
 0x228   : > { %v622_v26 = vpack.c.bf16 %v612_v49, %v611_v62  ;;  %7197 = vmatprep.subr.bf16.mxu0 %v9105_v23  ;;  %v9123_v46 = vpop.permute.xlu1 %583 }
 0x229   : > { %11782 = vst [vmem:[#allocation69_spill] sm:$0xff] %v9123_v46  ;;  %v9125_v37 = vpop.permute.xlu0 %588  ;;  %v613_v36 = vmul.f32 %v9123_v46, %v9117_v52  ;;  %2112 = vperm.xlu1 %8051, %v11727_v7  }
 0x22a   : > { %11783 = vst [vmem:[#allocation70_spill] sm:$0xff] %v9125_v37  ;;  %v614_v42 = vmul.f32 %v9125_v37, %v9119_v25  ;;  %7166 = vmatmul.mubr.msk.bf16.gmra.mrb[8].mxu0 %vm56_vm0, %v622_v26  ;;  %2148 = vperm.xlu0 %8050, %v11726_v17   ;;  %v8344_v26 = vmov 7  }
 0x22c   : > { %v623_v62 = vpack.c.bf16 %v614_v42, %v613_v36  ;;  %v9138_v49 = vpop.permute.xlu1 %593 }
 0x22d   : > { %11784 = vst [vmem:[#allocation71_spill] sm:$0xff] %v9138_v49  ;;  %v9140_v0 = vpop.permute.xlu0 %598  ;;  %v615_v46 = vmul.f32 %v9138_v49, %v9133_v60  ;;  %2120 = vperm.xlu1 %8051, %v11725_v10  }
 0x22e   : > { %11785 = vst [vmem:[#allocation72_spill] sm:$0xff] %v9140_v0  ;;  %v616_v37 = vmul.f32 %v9140_v0, %v9135_v29  ;;  %7169 = vmatprep.mubr.msk.bf16.mxu0 %vm56_vm0, %v623_v62  ;;  %8053 = vset.pattern.permute.xlu0 %v8344_v26 }
 0x22f   : > { %2369 = vperm.xlu0 %8053, %v11731_v2  }
 0x230   : > { %v624_v48 = vpack.c.bf16 %v616_v37, %v615_v46 }
 0x231   : > { %2128 = vperm.xlu1 %8051, %v11724_v12   ;;  %v9152_v36 = vpop.permute.xlu1 %1060 }
 0x232   : > { %11786 = vst [vmem:[#allocation73_spill] sm:$0xff] %v9152_v36  ;;  %v9154_v42 = vpop.permute.xlu0 %1064  ;;  %7170 = vmatmul.mubr.msk.bf16.gmra.mrb[12].mxu0 %vm56_vm0, %v624_v48  ;;  %v1123_v0 = vmul.f32 %v9152_v36, %v1043_v47  ;;  %v9169_v48 = vld [vmem:[#allocation2 + $0x21] sm:$0xff]  ;;  %v9181_v36 = vld [vmem:[#allocation2 + $0x29] sm:$0xff] }
 0x233   : > { %11787 = vst [vmem:[#allocation74_spill] sm:$0xff] %v9154_v42  ;;  %v1124_v62 = vmul.f32 %v9154_v42, %v9148_v19  ;;  %2381 = vperm.xlu0 %8053, %v11728_v5   ;;  %11790 = vst [vmem:[#allocation77_spill] sm:$0xff] %v9169_v48 }
 0x234   : > { %11793 = vst [vmem:[#allocation80_spill] sm:$0xff] %v9181_v36 }
 0x235   : > { %v1139_v37 = vpack.c.bf16 %v1124_v62, %v1123_v0  ;;  %2136 = vperm.xlu1 %8051, %v11723_v14   ;;  %v9162_v46 = vpop.permute.xlu1 %1068 }
 0x236   : > { %11788 = vst [vmem:[#allocation75_spill] sm:$0xff] %v9162_v46  ;;  %v9164_v49 = vpop.permute.xlu0 %1076  ;;  %v1125_v62 = vmul.f32 %v9162_v46, %v9167_v30 }
 0x237   : > { %11789 = vst [vmem:[#allocation76_spill] sm:$0xff] %v9164_v49  ;;  %7181 = vmatprep.mubr.msk.bf16.mxu0 %vm56_vm0, %v1139_v37  ;;  %2389 = vperm.xlu0 %8053, %v11727_v7   ;;  %v9183_v37 = vld [vmem:[#allocation2 + $0x31] sm:$0xff]  ;;  %v1127_v46 = vmul.f32 %v9164_v49, %v9181_v36 }
 0x238   : > { %11794 = vst [vmem:[#allocation81_spill] sm:$0xff] %v9183_v37 }
 0x239   : > { %2144 = vperm.xlu1 %8051, %v11722_v16   ;;  %v9173_v47 = vpop.permute.xlu1 %1072 }
 0x23a   : > { %11791 = vst [vmem:[#allocation78_spill] sm:$0xff] %v9173_v47  ;;  %v9175_v0 = vpop.permute.xlu0 %1084  ;;  %v1126_v42 = vmul.f32 %v9173_v47, %v9169_v48 }
 0x23b   : > { %11792 = vst [vmem:[#allocation79_spill] sm:$0xff] %v9175_v0  ;;  %2397 = vperm.xlu0 %8053, %v11725_v10  }
 0x23c   : > { %v1140_v59 = vpack.c.bf16 %v1126_v42, %v1125_v62  ;;  %v9200_v42 = vld [vmem:[#allocation2 + $0x41] sm:$0xff]  ;;  %v8070_v62 = vld [vmem:[%s8810_s18 + $0x70] sm:$0xff]  }
 0x23d   : > { %8052 = vset.pattern.permute.xlu1 %v8344_v26  ;;  %v9187_v63 = vpop.permute.xlu1 %1080  ;;  %11798 = vst [vmem:[#allocation85_spill] sm:$0xff] %v9200_v42 }
 0x23e   : > { %11795 = vst [vmem:[#allocation82_spill] sm:$0xff] %v9187_v63  ;;  %v9189_v50 = vpop.permute.xlu0 %1092  ;;  %v1128_v47 = vmul.f32 %v9187_v63, %v9183_v37  ;;  %2365 = vperm.xlu1 %8052, %v11737_v1   ;;  %7182 = vmatmul.mubr.msk.bf16.vlgmr.msra.gmra.mrb[0].mxu0 %vm56_vm0, %v1140_v59  ;;  %v1129_v63 = vmul.f32 %v9175_v0, %v9197_v38  ;;  %v9216_v37 = vld [vmem:[#allocation2 + $0x51] sm:$0xff] }
 0x23f   : > { %11796 = vst [vmem:[#allocation83_spill] sm:$0xff] %v9189_v50  ;;  %7198 = vmatpush3.bf16.msra.mxu0 %v9105_v23  ;;  %2405 = vperm.xlu0 %8053, %v11724_v12   ;;  %v9214_v23 = vld [vmem:[#allocation2 + $0x49] sm:$0xff]  ;;  %11802 = vst [vmem:[#allocation89_spill] sm:$0xff] %v9216_v37 }
 0x240   : > { %v1141_v26 = vpack.c.bf16 %v1128_v47, %v1127_v46  ;;  %7199 = vmatprep.subr.bf16.mxu0 %v8069_v55  ;;  %11801 = vst [vmem:[#allocation88_spill] sm:$0xff] %v9214_v23  ;;  %v8071_v47 = vld [vmem:[%s8810_s18 + $0x78] sm:$0xff]  }
 0x241   : > { %v9204_v49 = vpop.permute.xlu1 %1088 }
 0x242   : > { %11799 = vst [vmem:[#allocation86_spill] sm:$0xff] %v9204_v49  ;;  %v9206_v36 = vpop.permute.xlu0 %1100  ;;  %v1130_v59 = vmul.f32 %v9204_v49, %v9200_v42  ;;  %2373 = vperm.xlu1 %8052, %v11729_v3   ;;  %7185 = vmatprep.mubr.msk.bf16.mxu0 %vm56_vm0, %v1141_v26  ;;  %v1131_v49 = vmul.f32 %v9189_v50, %v9214_v23  ;;  %v9232_v42 = vld [vmem:[#allocation2 + $0x61] sm:$0xff] }
 0x243   : > { %11800 = vst [vmem:[#allocation87_spill] sm:$0xff] %v9206_v36  ;;  %7200 = vmatpush3.bf16.msra.mxu0 %v8069_v55  ;;  %2413 = vperm.xlu0 %8053, %v11723_v14   ;;  %v9230_v55 = vld [vmem:[#allocation2 + $0x59] sm:$0xff] }
 0x244   : > { %v1142_v46 = vpack.c.bf16 %v1130_v59, %v1129_v63  ;;  %7201 = vmatprep.subr.bf16.mxu0 %v8070_v62  ;;  %v8072_v59 = vld [vmem:[%s8810_s18 + $0x80] sm:$0xff]  }
 0x245   : > { %v9220_v48 = vpop.permute.xlu1 %1096 }
 0x246   : > { %11803 = vst [vmem:[#allocation90_spill] sm:$0xff] %v9220_v48  ;;  %v9222_v0 = vpop.permute.xlu0 %1108  ;;  %v1132_v26 = vmul.f32 %v9220_v48, %v9216_v37  ;;  %2377 = vperm.xlu1 %8052, %v11736_v4   ;;  %7186 = vmatmul.mubr.msk.bf16.gmra.mrb[4].mxu0 %vm56_vm0, %v1142_v46  ;;  %v1133_v48 = vmul.f32 %v9206_v36, %v9230_v55  ;;  %v9248_v37 = vld [vmem:[#allocation2 + $0x71] sm:$0xff] }
 0x247   : > { %11804 = vst [vmem:[#allocation91_spill] sm:$0xff] %v9222_v0  ;;  %7202 = vmatpush3.bf16.msra.mxu0 %v8070_v62  ;;  %2421 = vperm.xlu0 %8053, %v11722_v16   ;;  %v9246_v62 = vld [vmem:[#allocation2 + $0x69] sm:$0xff]  ;;  %11807 = vst [vmem:[#allocation94_spill] sm:$0xff] %v9248_v37 }
 0x248   : > { %v1143_v63 = vpack.c.bf16 %v1132_v26, %v1131_v49  ;;  %7203 = vmatprep.subr.bf16.mxu0 %v8071_v47  ;;  %v8345_v49 = vmov 8  }
 0x249   : > { %v9236_v38 = vpop.permute.xlu1 %1104 }
 0x24a   : > { %11805 = vst [vmem:[#allocation92_spill] sm:$0xff] %v9236_v38  ;;  %v9238_v50 = vpop.permute.xlu0 %1116  ;;  %v1134_v46 = vmul.f32 %v9236_v38, %v9232_v42  ;;  %2385 = vperm.xlu1 %8052, %v11735_v6   ;;  %7189 = vmatprep.mubr.msk.bf16.mxu0 %vm56_vm0, %v1143_v63  ;;  %v1135_v38 = vmul.f32 %v9222_v0, %v9246_v62 }
 0x24b   : > { %11806 = vst [vmem:[#allocation93_spill] sm:$0xff] %v9238_v50  ;;  %7204 = vmatpush3.bf16.msra.mxu0 %v8071_v47  ;;  %8054 = vset.pattern.permute.xlu0 %v8345_v49  ;;  %v9261_v47 = vld [vmem:[#allocation2 + $0x79] sm:$0xff] }
 0x24c   : > { %v1144_v26 = vpack.c.bf16 %v1134_v46, %v1133_v48  ;;  %2642 = vperm.xlu0 %8054, %v11737_v1   ;;  %7221 = vmatprep.subr.bf16.mxu0 %v8072_v59  ;;  %v9263_v48 = vld [vmem:[#allocation2 + $0x81] sm:$0xff]  ;;  %v1137_v0 = vmul.f32 %v9238_v50, %v9261_v47 }
 0x24d   : > { %v9251_v23 = vpop.permute.xlu1 %1112 }
 0x24e   : > { %11808 = vst [vmem:[#allocation95_spill] sm:$0xff] %v9251_v23  ;;  %v1136_v36 = vmul.f32 %v9251_v23, %v9248_v37  ;;  %2393 = vperm.xlu1 %8052, %v11734_v8   ;;  %7190 = vmatmul.mubr.msk.bf16.gmra.mrb[8].mxu0 %vm56_vm0, %v1144_v26 }
 0x24f   : > { %v9258_v63 = vpop.permute.xlu0 %1337 }
 0x250   : > { %11809 = vst [vmem:[#allocation96_spill] sm:$0xff] %v9258_v63  ;;  %v1145_v46 = vpack.c.bf16 %v1136_v36, %v1135_v38  ;;  %2654 = vperm.xlu0 %8054, %v11736_v4   ;;  %v1400_v38 = vmul.f32 %v9258_v63, %v9024_v27  ;;  %v8083_v63 = vld [vmem:[%s8810_s18 + $0xd8] sm:$0xff]  }
 0x251   : > { %v9266_v1 = vpop.permute.xlu1 %1120 }
 0x252   : > { %11810 = vst [vmem:[#allocation97_spill] sm:$0xff] %v9266_v1  ;;  %v1138_v23 = vmul.f32 %v9266_v1, %v9263_v48  ;;  %2401 = vperm.xlu1 %8052, %v11733_v11   ;;  %7193 = vmatprep.mubr.msk.bf16.mxu0 %vm56_vm0, %v1145_v46 }
 0x253   : > { %v9273_v37 = vpop.permute.xlu0 %1349 }
 0x254   : > { %11811 = vst [vmem:[#allocation98_spill] sm:$0xff] %v9273_v37  ;;  %v1146_v26 = vpack.c.bf16 %v1138_v23, %v1137_v0  ;;  %2662 = vperm.xlu0 %8054, %v11735_v6   ;;  %v1403_v46 = vmul.f32 %v9273_v37, %v9051_v41 }
 0x256   : > { %2409 = vperm.xlu1 %8052, %v11732_v13   ;;  %v9280_v36 = vpop.permute.xlu1 %1341  ;;  %7194 = vmatmul.mubr.msk.bf16.gmra.mrb[12].mxu0 %vm56_vm0, %v1146_v26 }
 0x257   : > { %11812 = vst [vmem:[#allocation99_spill] sm:$0xff] %v9280_v36  ;;  %v9282_v4 = vpop.permute.xlu0 %1357  ;;  %v1401_v1 = vmul.f32 %v9280_v36, %v9036_v28 }
 0x258   : > { %11813 = vst [vmem:[#allocation100_spill] sm:$0xff] %v9282_v4  ;;  %2670 = vperm.xlu0 %8054, %v11734_v8   ;;  %v8073_v8 = vld [vmem:[%s8810_s18 + $0x88] sm:$0xff]   ;;  %v1405_v36 = vmul.f32 %v9282_v4, %v9067_v39 }
 0x259   : > { %v1416_v0 = vpack.c.bf16 %v1401_v1, %v1400_v38 }
 0x25a   : > { %2417 = vperm.xlu1 %8052, %v11730_v15   ;;  %v9289_v23 = vpop.permute.xlu1 %1345 }
 0x25b   : > { %11814 = vst [vmem:[#allocation101_spill] sm:$0xff] %v9289_v23  ;;  %v9291_v27 = vpop.permute.xlu0 %1365  ;;  %v1402_v6 = vmul.f32 %v9289_v23, %v9038_v53  ;;  %7205 = vmatprep.mubr.msk.bf16.mxu0 %vm56_vm0, %v1416_v0  ;;  %v8074_v0 = vld [vmem:[%s8810_s18 + $0x90] sm:$0xff]  }
 0x25c   : > { %11815 = vst [vmem:[#allocation102_spill] sm:$0xff] %v9291_v27  ;;  %2678 = vperm.xlu0 %8054, %v11733_v11   ;;  %v1407_v4 = vmul.f32 %v9291_v27, %v9083_v51  ;;  %v11843_v27 = vld [vmem:[#allocation88_spill] sm:$0xff]  ;;  %v11845_v23 = vld [vmem:[#allocation89_spill] sm:$0xff] }
 0x25d   : > { %v1417_v26 = vpack.c.bf16 %v1403_v46, %v1402_v6 }
 0x25e   : > { %2425 = vperm.xlu1 %8052, %v11726_v17   ;;  %v9301_v1 = vpop.permute.xlu1 %1353 }
 0x25f   : > { %11816 = vst [vmem:[#allocation103_spill] sm:$0xff] %v9301_v1  ;;  %v9303_v38 = vpop.permute.xlu0 %1373  ;;  %v1404_v37 = vmul.f32 %v9301_v1, %v9053_v21  ;;  %7206 = vmatmul.mubr.msk.bf16.vlgmr.msra.gmra.mrb[0].mxu0 %vm56_vm0, %v1417_v26 }
 0x260   : > { %11817 = vst [vmem:[#allocation104_spill] sm:$0xff] %v9303_v38  ;;  %7222 = vmatpush3.bf16.msra.mxu0 %v8072_v59  ;;  %2686 = vperm.xlu0 %8054, %v11732_v13   ;;  %v8075_v59 = vld [vmem:[%s8810_s18 + $0x98] sm:$0xff]   ;;  %v1409_v26 = vmul.f32 %v9303_v38, %v9099_v24 }
 0x261   : > { %v1418_v6 = vpack.c.bf16 %v1405_v36, %v1404_v37  ;;  %7223 = vmatprep.subr.bf16.mxu0 %v8073_v8  ;;  %v11842_v38 = vld [vmem:[#allocation85_spill] sm:$0xff] }
 0x262   : > { %8055 = vset.pattern.permute.xlu1 %v8345_v49  ;;  %v9312_v46 = vpop.permute.xlu1 %1361 }
 0x263   : > { %11818 = vst [vmem:[#allocation105_spill] sm:$0xff] %v9312_v46  ;;  %v9314_v11 = vpop.permute.xlu0 %1381  ;;  %v1406_v1 = vmul.f32 %v9312_v46, %v9069_v61  ;;  %2646 = vperm.xlu1 %8055, %v11731_v2   ;;  %7209 = vmatprep.mubr.msk.bf16.mxu0 %vm56_vm0, %v1418_v6 }
 0x264   : > { %11819 = vst [vmem:[#allocation106_spill] sm:$0xff] %v9314_v11  ;;  %7224 = vmatpush3.bf16.msra.mxu0 %v8073_v8  ;;  %2694 = vperm.xlu0 %8054, %v11730_v15   ;;  %v8076_v8 = vld [vmem:[%s8810_s18 + $0xa0] sm:$0xff]   ;;  %v1411_v6 = vmul.f32 %v9314_v11, %v9117_v52 }
 0x265   : > { %v1419_v37 = vpack.c.bf16 %v1407_v4, %v1406_v1  ;;  %7225 = vmatprep.subr.bf16.mxu0 %v8074_v0 }
 0x266   : > { %v9324_v49 = vpop.permute.xlu1 %1369 }
 0x267   : > { %11820 = vst [vmem:[#allocation107_spill] sm:$0xff] %v9324_v49  ;;  %v9326_v36 = vpop.permute.xlu0 %1389  ;;  %v1408_v13 = vmul.f32 %v9324_v49, %v9085_v22  ;;  %2650 = vperm.xlu1 %8055, %v11729_v3   ;;  %7210 = vmatmul.mubr.msk.bf16.gmra.mrb[4].mxu0 %vm56_vm0, %v1419_v37 }
 0x268   : > { %11821 = vst [vmem:[#allocation108_spill] sm:$0xff] %v9326_v36  ;;  %7226 = vmatpush3.bf16.msra.mxu0 %v8074_v0  ;;  %2702 = vperm.xlu0 %8054, %v11726_v17   ;;  %v1413_v37 = vmul.f32 %v9326_v36, %v9133_v60  ;;  %v11839_v36 = vld [vmem:[#allocation84_spill] sm:$0xff] }
 0x269   : > { %v1420_v4 = vpack.c.bf16 %v1409_v26, %v1408_v13  ;;  %7227 = vmatprep.subr.bf16.mxu0 %v8075_v59 }
 0x26a   : > { %v9336_v1 = vpop.permute.xlu1 %1377 }
 0x26b   : > { %11822 = vst [vmem:[#allocation109_spill] sm:$0xff] %v9336_v1  ;;  %v1410_v2 = vmul.f32 %v9336_v1, %v9101_v43  ;;  %v9342_v15 = vpop.permute.xlu0 %1397  ;;  %2658 = vperm.xlu1 %8055, %v11728_v5   ;;  %7213 = vmatprep.mubr.msk.bf16.mxu0 %vm56_vm0, %v1420_v4  ;;  %v9356_v5 = vld [vmem:[#allocation2 + $0x87] sm:$0xff] }
 0x26c   : > { %11823 = vst [vmem:[#allocation110_spill] sm:$0xff] %v9342_v15  ;;  %7228 = vmatpush3.bf16.msra.mxu0 %v8075_v59 }
 0x26d   : > { %v1421_v0 = vpack.c.bf16 %v1411_v6, %v1410_v2  ;;  %7245 = vmatprep.subr.bf16.mxu0 %v8076_v8  ;;  %v1415_v2 = vmul.f32 %v9342_v15, %v9356_v5 }
 0x26e   : > { %v9346_v13 = vpop.permute.xlu1 %1385 }
 0x26f   : > { %11824 = vst [vmem:[#allocation111_spill] sm:$0xff] %v9346_v13  ;;  %v1412_v26 = vmul.f32 %v9346_v13, %v9119_v25  ;;  %2666 = vperm.xlu1 %8055, %v11727_v7   ;;  %7214 = vmatmul.mubr.msk.bf16.gmra.mrb[8].mxu0 %vm56_vm0, %v1421_v0  ;;  %v1613_v0 = vpack.c.bf16 %v8910_v57, %v8914_v58  ;;  %v8081_v13 = vld [vmem:[%s8810_s18 + $0xc8] sm:$0xff]  }
 0x270   : > { %v9354_v3 = vpop.permute.xlu0 %1815  ;;  %v1615_v57 = vpack.c.bf16 %v8947_v35, %v8929_v9  ;;  %v1616_v9 = vpack.c.bf16 %v8964_v45, %v8945_v31  ;;  %v1617_v35 = vpack.c.bf16 %v8980_v20, %v8962_v56  ;;  %v1618_v56 = vpack.c.bf16 %v8996_v18, %v8978_v34 }
 0x271   : > { %v1422_v4 = vpack.c.bf16 %v1413_v37, %v1412_v26  ;;  %v1619_v45 = vpack.c.bf16 %v9011_v40, %v8994_v44  ;;  %v1875_v40 = vmul.f32 %v9354_v3, %v9167_v30 }
 0x272   : > { %v9358_v59 = vpop.permute.xlu1 %1393 }
 0x273   : > { %11825 = vst [vmem:[#allocation112_spill] sm:$0xff] %v9358_v59  ;;  %v1414_v6 = vmul.f32 %v9358_v59, %v9135_v29  ;;  %2674 = vperm.xlu1 %8055, %v11725_v10   ;;  %7217 = vmatprep.mubr.msk.bf16.mxu0 %vm56_vm0, %v1422_v4  ;;  %v1614_v10 = vpack.c.bf16 %v8931_v32, %v8912_v54  ;;  %v8078_v54 = vld [vmem:[%s8810_s18 + $0xb0] sm:$0xff]  }
 0x274   : > { %v9366_v7 = vpop.permute.xlu0 %1827  ;;  %v11838_v59 = vld [vmem:[#allocation81_spill] sm:$0xff] }
 0x275   : > { %v1423_v17 = vpack.c.bf16 %v1415_v2, %v1414_v6  ;;  %v8077_v2 = vld [vmem:[%s8810_s18 + $0xa8] sm:$0xff]  }
 0x277   : > { %2682 = vperm.xlu1 %8055, %v11724_v12   ;;  %v9371_v37 = vpop.permute.xlu1 %1811  ;;  %7218 = vmatmul.mubr.msk.bf16.gmra.mrb[12].mxu0 %vm56_vm0, %v1423_v17  ;;  %v8080_v12 = vld [vmem:[%s8810_s18 + $0xc0] sm:$0xff]  }
 0x278   : > { %7229 = vmatprep.mubr.msk.bf16.mxu0 %vm56_vm0, %v1613_v0  ;;  %v9375_v26 = vpop.permute.xlu0 %1835  ;;  %v1874_v34 = vmul.f32 %v9371_v37, %v9148_v19 }
 0x279   : > { %11826 = vst [vmem:[#allocation113_spill] sm:$0xff] %v9375_v26  ;;  %v1880_v49 = vmul.f32 %v9375_v26, %v11842_v38 }
 0x27b   : > { %2690 = vperm.xlu1 %8055, %v11723_v14   ;;  %v9378_v4 = vpop.permute.xlu1 %1819  ;;  %v11837_v14 = vld [vmem:[#allocation80_spill] sm:$0xff] }
 0x27c   : > { %v9384_v58 = vpop.permute.xlu0 %1843 }
 0x27d   : > { %11827 = vst [vmem:[#allocation114_spill] sm:$0xff] %v9384_v58 }
 0x27f   : > { %2698 = vperm.xlu1 %8055, %v11722_v16   ;;  %v9388_v17 = vpop.permute.xlu1 %1823  ;;  %7230 = vmatmul.mubr.msk.bf16.vlgmr.msra.gmra.mrb[0].mxu0 %vm56_vm0, %v1614_v10  ;;  %v8079_v10 = vld [vmem:[%s8810_s18 + $0xb8] sm:$0xff]  }
 0x280   : > { %7246 = vmatpush3.bf16.msra.mxu0 %v8076_v8  ;;  %7233 = vmatprep.mubr.msk.bf16.mxu0 %vm56_vm0, %v1615_v57  ;;  %v9392_v6 = vpop.permute.xlu0 %1851  ;;  %v1877_v16 = vmul.f32 %v9388_v17, %v11837_v14 }
 0x281   : > { %11828 = vst [vmem:[#allocation115_spill] sm:$0xff] %v9392_v6  ;;  %7247 = vmatprep.subr.bf16.mxu0 %v8077_v2 }
 0x283   : > { %v9395_v32 = vpop.permute.xlu1 %1831 }
 0x284   : > { %7248 = vmatpush3.bf16.msra.mxu0 %v8077_v2  ;;  %v9401_v0 = vpop.permute.xlu0 %1859 }
 0x285   : > { %11829 = vst [vmem:[#allocation116_spill] sm:$0xff] %v9401_v0  ;;  %7249 = vmatprep.subr.bf16.mxu0 %v8078_v54 }
 0x287   : > { %v9404_v8 = vpop.permute.xlu1 %1839  ;;  %7234 = vmatmul.mubr.msk.bf16.gmra.mrb[4].mxu0 %vm56_vm0, %v1616_v9 }
 0x288   : > { %11830 = vst [vmem:[#allocation117_spill] sm:$0xff] %v9404_v8  ;;  %7237 = vmatprep.mubr.msk.bf16.mxu0 %vm56_vm0, %v1617_v35  ;;  %7250 = vmatpush3.bf16.msra.mxu0 %v8078_v54  ;;  %v9408_v57 = vpop.permute.xlu0 %1867  ;;  %v9423_v54 = vld [vmem:[#allocation2 + $0x88] sm:$0xff]  ;;  %v1881_v46 = vmul.f32 %v9404_v8, %v11843_v27 }
 0x289   : > { %11831 = vst [vmem:[#allocation118_spill] sm:$0xff] %v9408_v57  ;;  %7251 = vmatprep.subr.bf16.mxu0 %v8079_v10  ;;  %v1620_v18 = vpack.c.bf16 %v9423_v54, %v9009_v33  ;;  %v1878_v33 = vmul.f32 %v9366_v7, %v11838_v59 }
 0x28b   : > { %v9411_v31 = vpop.permute.xlu1 %1847 }
 0x28c   : > { %11832 = vst [vmem:[#allocation119_spill] sm:$0xff] %v9411_v31  ;;  %7252 = vmatpush3.bf16.msra.mxu0 %v8079_v10  ;;  %v1890_v10 = vpack.c.bf16 %v1875_v40, %v1874_v34  ;;  %v1879_v34 = vmul.f32 %v9395_v32, %v11839_v36 }
 0x28d   : > { %v9417_v20 = vpop.permute.xlu0 %2088  ;;  %7269 = vmatprep.subr.bf16.mxu0 %v8080_v12 }
 0x28e   : > { %v1892_v11 = vpack.c.bf16 %v1879_v34, %v1878_v33  ;;  %v1882_v33 = vmul.f32 %v9384_v58, %v11845_v23  ;;  %v1884_v58 = vmul.f32 %v9392_v6, %v9232_v42  ;;  %v9493_v6 = vld [vmem:[#allocation2 + $0x89] sm:$0xff] }
 0x28f   : > { %v9419_v2 = vpop.permute.xlu1 %1855  ;;  %7238 = vmatmul.mubr.msk.bf16.gmra.mrb[8].mxu0 %vm56_vm0, %v1618_v56 }
 0x290   : > { %11833 = vst [vmem:[#allocation120_spill] sm:$0xff] %v9419_v2  ;;  %7241 = vmatprep.mubr.msk.bf16.mxu0 %vm56_vm0, %v1619_v45  ;;  %v11836_v45 = vld [vmem:[#allocation77_spill] sm:$0xff] }
 0x291   : > { %v9425_v9 = vpop.permute.xlu0 %2100  ;;  %v1876_v19 = vmul.f32 %v9378_v4, %v11836_v45 }
 0x293   : > { %v9431_v44 = vpop.permute.xlu1 %1863 }
 0x294   : > { %11834 = vst [vmem:[#allocation121_spill] sm:$0xff] %v9431_v44 }
 0x295   : > { %v9435_v35 = vpop.permute.xlu0 %2108 }
 0x297   : > { %v9437_v56 = vpop.permute.xlu1 %1871  ;;  %7242 = vmatmul.mubr.msk.bf16.gmra.mrb[12].mxu0 %vm56_vm0, %v1620_v18  ;;  %v1891_v18 = vpack.c.bf16 %v1877_v16, %v1876_v19  ;;  %v8082_v19 = vld [vmem:[%s8810_s18 + $0xd0] sm:$0xff]  }
 0x298   : > { %11835 = vst [vmem:[#allocation122_spill] sm:$0xff] %v9437_v56  ;;  %7253 = vmatprep.mubr.msk.bf16.mxu0 %vm56_vm0, %v1890_v10 }
 0x299   : > { %v9445_v15 = vpop.permute.xlu0 %2116 }
 0x29c   : > { %v9451_v40 = vpop.permute.xlu1 %2092 }
 0x29d   : > { %11840 = vst [vmem:[#allocation77_spill] sm:$0xff] %v9451_v40  ;;  %v9454_v10 = vpop.permute.xlu0 %2124 }
 0x29e   : > { %11841 = vst [vmem:[#allocation80_spill] sm:$0xff] %v9454_v10 }
 0x29f   : > { %7254 = vmatmul.mubr.msk.bf16.vlgmr.msra.gmra.mrb[0].mxu0 %vm56_vm0, %v1891_v18 }
 0x2a0   : > { %7270 = vmatpush3.bf16.msra.mxu0 %v8080_v12  ;;  %v9457_v1 = vpop.permute.xlu1 %2096  ;;  %7257 = vmatprep.mubr.msk.bf16.mxu0 %vm56_vm0, %v1892_v11  ;;  %v1883_v12 = vmul.f32 %v9411_v31, %v9230_v55  ;;  %v1893_v11 = vpack.c.bf16 %v1881_v46, %v1880_v49  ;;  %v1885_v31 = vmul.f32 %v9419_v2, %v9246_v62  ;;  %v8084_v46 = vld [vmem:[%s8810_s18 + $0xe0] sm:$0xff]  }
 0x2a1   : > { %7271 = vmatprep.subr.bf16.mxu0 %v8081_v13  ;;  %v9464_v16 = vpop.permute.xlu0 %2132  ;;  %v11847_v49 = vld [vmem:[#allocation94_spill] sm:$0xff] }
 0x2a2   : > { %11844 = vst [vmem:[#allocation81_spill] sm:$0xff] %v9464_v16  ;;  %v1894_v50 = vpack.c.bf16 %v1883_v12, %v1882_v33  ;;  %v1887_v33 = vmul.f32 %v9431_v44, %v9261_v47  ;;  %v1888_v44 = vmul.f32 %v9408_v57, %v9263_v48 }
 0x2a4   : > { %v9471_v34 = vpop.permute.xlu1 %2104  ;;  %7272 = vmatpush3.bf16.msra.mxu0 %v8081_v13  ;;  %v1886_v13 = vmul.f32 %v9401_v0, %v11847_v49  ;;  %v1889_v0 = vmul.f32 %v9437_v56, %v9493_v6  ;;  %v2156_v56 = vmul.f32 %v9435_v35, %v9069_v61 }
 0x2a5   : > { %7273 = vmatprep.subr.bf16.mxu0 %v8082_v19  ;;  %v9473_v18 = vpop.permute.xlu0 %2140 }
 0x2a6   : > { %11846 = vst [vmem:[#allocation84_spill] sm:$0xff] %v9473_v18 }
 0x2a7   : > { %7258 = vmatmul.mubr.msk.bf16.gmra.mrb[4].mxu0 %vm56_vm0, %v1893_v11 }
 0x2a8   : > { %v9477_v8 = vpop.permute.xlu1 %2112  ;;  %7261 = vmatprep.mubr.msk.bf16.mxu0 %vm56_vm0, %v1894_v50  ;;  %7274 = vmatpush3.bf16.msra.mxu0 %v8082_v19  ;;  %v1895_v50 = vpack.c.bf16 %v1885_v31, %v1884_v58  ;;  %v1896_v19 = vpack.c.bf16 %v1887_v33, %v1886_v13  ;;  %v2152_v58 = vmul.f32 %v9451_v40, %v9038_v53 }
 0x2a9   : > { %7275 = vmatprep.subr.bf16.mxu0 %v8083_v63  ;;  %v9489_v12 = vpop.permute.xlu0 %2148  ;;  %v1897_v33 = vpack.c.bf16 %v1889_v0, %v1888_v44  ;;  %v2153_v53 = vmul.f32 %v9457_v1, %v9051_v41  ;;  %v2155_v0 = vmul.f32 %v9471_v34, %v9067_v39  ;;  %v2157_v61 = vmul.f32 %v9477_v8, %v9083_v51  ;;  %v8086_v41 = vld [vmem:[%s8810_s18 + $0xf0] sm:$0xff]  }
 0x2aa   : > { %11848 = vst [vmem:[#allocation85_spill] sm:$0xff] %v9489_v12 }
 0x2ac   : > { %v9491_v11 = vpop.permute.xlu1 %2120  ;;  %7276 = vmatpush3.bf16.msra.mxu0 %v8083_v63  ;;  %v2151_v63 = vmul.f32 %v9417_v20, %v9036_v28  ;;  %v2154_v28 = vmul.f32 %v9425_v9, %v9053_v21  ;;  %v2158_v21 = vmul.f32 %v9445_v15, %v9085_v22  ;;  %v8087_v22 = vld [vmem:[%s8810_s18 + $0xf8] sm:$0xff]  }
 0x2ad   : > { %11849 = vst [vmem:[#allocation88_spill] sm:$0xff] %v9491_v11  ;;  %7293 = vmatprep.subr.bf16.mxu0 %v8084_v46 }
 0x2ae   : > { %v9495_v26 = vpop.permute.xlu0 %2369 }
 0x2af   : > { %11850 = vst [vmem:[#allocation89_spill] sm:$0xff] %v9495_v26  ;;  %7262 = vmatmul.mubr.msk.bf16.gmra.mrb[8].mxu0 %vm56_vm0, %v1895_v50  ;;  %v2167_v50 = vpack.c.bf16 %v2152_v58, %v2151_v63  ;;  %v2168_v63 = vpack.c.bf16 %v2154_v28, %v2153_v53  ;;  %v2159_v28 = vmul.f32 %v9491_v11, %v9099_v24 }
 0x2b0   : > { %v9498_v2 = vpop.permute.xlu1 %2128  ;;  %7265 = vmatprep.mubr.msk.bf16.mxu0 %vm56_vm0, %v1896_v19  ;;  %v2170_v53 = vpack.c.bf16 %v2158_v21, %v2157_v61  ;;  %v2164_v21 = vmul.f32 %v9473_v18, %v9135_v29 }
 0x2b1   : > { %11851 = vst [vmem:[#allocation94_spill] sm:$0xff] %v9498_v2  ;;  %v2161_v24 = vmul.f32 %v9498_v2, %v9117_v52  ;;  %v2349_v52 = vld [vmem:[#allocation2 + $0x20] sm:$0xff]  ;;  %v2352_v2 = vld [vmem:[#allocation2 + $0x38] sm:$0xff] }
 0x2b2   : > { %v9509_v31 = vpop.permute.xlu0 %2381 }
 0x2b3   : > { %11852 = vst [vmem:[#allocation123_spill] sm:$0xff] %v9509_v31 }
 0x2b4   : > { %v9511_v13 = vpop.permute.xlu1 %2136 }
 0x2b5   : > { %11853 = vst [vmem:[#allocation124_spill] sm:$0xff] %v9511_v13  ;;  %v2163_v61 = vmul.f32 %v9511_v13, %v9133_v60  ;;  %v2350_v13 = vld [vmem:[#allocation2 + $0x28] sm:$0xff] }
 0x2b6   : > { %v9513_v19 = vpop.permute.xlu0 %2389 }
 0x2b7   : > { %11854 = vst [vmem:[#allocation125_spill] sm:$0xff] %v9513_v19  ;;  %7266 = vmatmul.mubr.msk.bf16.gmra.mrb[12].mxu0 %vm56_vm0, %v1897_v33  ;;  %v8085_v33 = vld [vmem:[%s8810_s18 + $0xe8] sm:$0xff]  }
 0x2b8   : > { %v9516_v57 = vpop.permute.xlu1 %2144  ;;  %7277 = vmatprep.mubr.msk.bf16.mxu0 %vm56_vm0, %v2167_v50  ;;  %v2169_v50 = vpack.c.bf16 %v2156_v56, %v2155_v0  ;;  %v2160_v56 = vmul.f32 %v9454_v10, %v9101_v43  ;;  %v2162_v43 = vmul.f32 %v9464_v16, %v9119_v25  ;;  %v2173_v25 = vpack.c.bf16 %v2164_v21, %v2163_v61  ;;  %v2086_v16 = vld [vmem:[#allocation2 + $0x8f] sm:$0xff]  ;;  %v2353_v10 = vld [vmem:[#allocation2 + $0x40] sm:$0xff] }
 0x2b9   : > { %11855 = vst [vmem:[#allocation126_spill] sm:$0xff] %v9516_v57  ;;  %v2165_v60 = vmul.f32 %v9516_v57, %v9356_v5  ;;  %v8089_v57 = vld [vmem:[%s8810_s18 + $0x108] sm:$0xff]  }
 0x2ba   : > { %v9527_v44 = vpop.permute.xlu0 %2397  ;;  %v2171_v51 = vpack.c.bf16 %v2160_v56, %v2159_v28 }
 0x2bd   : > { %v9529_v58 = vpop.permute.xlu1 %2365 }
 0x2be   : > { %11856 = vst [vmem:[#allocation127_spill] sm:$0xff] %v9529_v58  ;;  %v9532_v40 = vpop.permute.xlu0 %2405 }
 0x2bf   : > { %11857 = vst [vmem:[#allocation128_spill] sm:$0xff] %v9532_v40  ;;  %7278 = vmatmul.mubr.msk.bf16.vlgmr.msra.gmra.mrb[0].mxu0 %vm56_vm0, %v2168_v63 }
 0x2c0   : > { %7294 = vmatpush3.bf16.msra.mxu0 %v8084_v46  ;;  %7281 = vmatprep.mubr.msk.bf16.mxu0 %vm56_vm0, %v2169_v50  ;;  %v8088_v50 = vld [vmem:[%s8810_s18 + $0x100] sm:$0xff]  }
 0x2c1   : > { %v9540_v39 = vpop.permute.xlu1 %2373  ;;  %7295 = vmatprep.subr.bf16.mxu0 %v8085_v33 }
 0x2c2   : > { %v9547_v46 = vpop.permute.xlu0 %2413 }
 0x2c3   : > { %11858 = vst [vmem:[#allocation129_spill] sm:$0xff] %v9547_v46 }
 0x2c4   : > { %7296 = vmatpush3.bf16.msra.mxu0 %v8085_v33 }
 0x2c5   : > { %v9549_v0 = vpop.permute.xlu1 %2377  ;;  %7297 = vmatprep.subr.bf16.mxu0 %v8086_v41 }
 0x2c6   : > { %v9552_v63 = vpop.permute.xlu0 %2421 }
 0x2c7   : > { %11859 = vst [vmem:[#allocation130_spill] sm:$0xff] %v9552_v63  ;;  %7282 = vmatmul.mubr.msk.bf16.gmra.mrb[4].mxu0 %vm56_vm0, %v2170_v53  ;;  %v2348_v53 = vld [vmem:[#allocation2 + $0x18] sm:$0xff] }
 0x2c8   : > { %7285 = vmatprep.mubr.msk.bf16.mxu0 %vm56_vm0, %v2171_v51  ;;  %7298 = vmatpush3.bf16.msra.mxu0 %v8086_v41  ;;  %v2172_v41 = vpack.c.bf16 %v2162_v43, %v2161_v24  ;;  %v2429_v43 = vmul.f32 %v9495_v26, %v2349_v52  ;;  %v2166_v24 = vmul.f32 %v9489_v12, %v2086_v16  ;;  %v2354_v26 = vld [vmem:[#allocation2 + $0x48] sm:$0xff] }
 0x2c9   : > { %v9560_v33 = vpop.permute.xlu1 %2385  ;;  %7299 = vmatprep.subr.bf16.mxu0 %v8087_v22 }
 0x2ca   : > { %11860 = vst [vmem:[#allocation131_spill] sm:$0xff] %v9560_v33  ;;  %v2174_v61 = vpack.c.bf16 %v2166_v24, %v2165_v60  ;;  %v2432_v60 = vmul.f32 %v9509_v31, %v2352_v2 }
 0x2cb   : > { %v9567_v56 = vpop.permute.xlu0 %2642 }
 0x2cc   : > { %11861 = vst [vmem:[#allocation132_spill] sm:$0xff] %v9567_v56  ;;  %7300 = vmatpush3.bf16.msra.mxu0 %v8087_v22  ;;  %v2428_v22 = vmul.f32 %v9529_v58, %v2348_v53  ;;  %v2430_v53 = vmul.f32 %v9540_v39, %v2350_v13  ;;  %v2356_v13 = vld [vmem:[#allocation2 + $0x58] sm:$0xff] }
 0x2cd   : > { %v9569_v28 = vpop.permute.xlu1 %2393  ;;  %7317 = vmatprep.subr.bf16.mxu0 %v8088_v50 }
 0x2ce   : > { %11862 = vst [vmem:[#allocation133_spill] sm:$0xff] %v9569_v28  ;;  %v2444_v18 = vpack.c.bf16 %v2429_v43, %v2428_v22  ;;  %v2433_v22 = vmul.f32 %v9560_v33, %v2353_v10  ;;  %v2363_v43 = vld [vmem:[#allocation2 + $0x90] sm:$0xff]  ;;  %v2434_v10 = vmul.f32 %v9513_v19, %v2354_v26  ;;  %v8091_v33 = vld [vmem:[%s8810_s18 + $0x118] sm:$0xff]  }
 0x2cf   : > { %7286 = vmatmul.mubr.msk.bf16.gmra.mrb[8].mxu0 %vm56_vm0, %v2172_v41  ;;  %v9572_v51 = vpop.permute.xlu0 %2654  ;;  %v2359_v26 = vld [vmem:[#allocation2 + $0x70] sm:$0xff]  ;;  %v2360_v19 = vld [vmem:[#allocation2 + $0x78] sm:$0xff] }
 0x2d0   : > { %11863 = vst [vmem:[#allocation134_spill] sm:$0xff] %v9572_v51  ;;  %7289 = vmatprep.mubr.msk.bf16.mxu0 %vm56_vm0, %v2173_v25  ;;  %v2351_v25 = vld [vmem:[#allocation2 + $0x30] sm:$0xff]  ;;  %v2446_v58 = vpack.c.bf16 %v2433_v22, %v2432_v60  ;;  %v2436_v60 = vmul.f32 %v9527_v44, %v2356_v13 }
 0x2d1   : > { %v9577_v29 = vpop.permute.xlu1 %2401  ;;  %v2431_v16 = vmul.f32 %v9549_v0, %v2351_v25  ;;  %v2357_v25 = vld [vmem:[#allocation2 + $0x60] sm:$0xff] }
 0x2d2   : > { %11864 = vst [vmem:[#allocation135_spill] sm:$0xff] %v9577_v29  ;;  %v2437_v22 = vmul.f32 %v9577_v29, %v2357_v25 }
 0x2d3   : > { %v9582_v21 = vpop.permute.xlu0 %2662  ;;  %v2445_v12 = vpack.c.bf16 %v2431_v16, %v2430_v53  ;;  %v8090_v16 = vld [vmem:[%s8810_s18 + $0x110] sm:$0xff]  }
 0x2d4   : > { %11865 = vst [vmem:[#allocation136_spill] sm:$0xff] %v9582_v21  ;;  %v2448_v31 = vpack.c.bf16 %v2437_v22, %v2436_v60 }
 0x2d5   : > { %v9584_v41 = vpop.permute.xlu1 %2409 }
 0x2d6   : > { %11866 = vst [vmem:[#allocation137_spill] sm:$0xff] %v9584_v41 }
 0x2d7   : > { %7290 = vmatmul.mubr.msk.bf16.gmra.mrb[12].mxu0 %vm56_vm0, %v2174_v61  ;;  %v9587_v5 = vpop.permute.xlu0 %2670 }
 0x2d8   : > { %11867 = vst [vmem:[#allocation138_spill] sm:$0xff] %v9587_v5  ;;  %7301 = vmatprep.mubr.msk.bf16.mxu0 %vm56_vm0, %v2444_v18  ;;  %v2355_v18 = vld [vmem:[#allocation2 + $0x50] sm:$0xff] }
 0x2d9   : > { %v9592_v52 = vpop.permute.xlu1 %2417  ;;  %v2435_v53 = vmul.f32 %v9569_v28, %v2355_v18  ;;  %v2361_v18 = vld [vmem:[#allocation2 + $0x80] sm:$0xff] }
 0x2da   : > { %11868 = vst [vmem:[#allocation139_spill] sm:$0xff] %v9592_v52  ;;  %v2441_v60 = vmul.f32 %v9592_v52, %v2361_v18 }
 0x2db   : > { %v9596_v24 = vpop.permute.xlu0 %2678 }
 0x2dc   : > { %11869 = vst [vmem:[#allocation140_spill] sm:$0xff] %v9596_v24 }
 0x2dd   : > { %v2426_v61 = vpop.permute.xlu1 %2425 }
 0x2de   : > { %v9599_v11 = vmul.f32 %v2426_v61, %v2363_v43 }
 0x2df   : > { %7302 = vmatmul.mubr.msk.bf16.vlgmr.msra.gmra.mrb[0].mxu0 %vm56_vm0, %v2445_v12  ;;  %v9602_v2 = vpop.permute.xlu0 %2686  ;;  %v2447_v12 = vpack.c.bf16 %v2435_v53, %v2434_v10  ;;  %v2440_v53 = vmul.f32 %v9547_v46, %v2360_v19  ;;  %v2442_v19 = vmul.f32 %v9552_v63, %v9423_v54 }
 0x2e0   : > { %11870 = vst [vmem:[#allocation141_spill] sm:$0xff] %v9599_v11  ;;  %11871 = vst [vmem:[#allocation142_spill] sm:$0xff] %v9602_v2  ;;  %7318 = vmatpush3.bf16.msra.mxu0 %v8088_v50  ;;  %7305 = vmatprep.mubr.msk.bf16.mxu0 %vm56_vm0, %v2446_v58  ;;  %v2640_v50 = vld [vmem:[#allocation2 + $0x91] sm:$0xff]  ;;  %v2358_v58 = vld [vmem:[#allocation2 + $0x68] sm:$0xff] }
 0x2e1   : > { %7319 = vmatprep.subr.bf16.mxu0 %v8089_v57  ;;  %v2438_v25 = vmul.f32 %v9532_v40, %v2358_v58  ;;  %v2710_v58 = vmul.f32 %v9582_v21, %v11842_v38  ;;  %v2714_v38 = vmul.f32 %v9596_v24, %v9232_v42 }
 0x2e2   : > { %v9610_v43 = vpop.permute.xlu1 %2646 }
 0x2e3   : > { %11872 = vst [vmem:[#allocation143_spill] sm:$0xff] %v9610_v43  ;;  %v9612_v61 = vpop.permute.xlu0 %2694 }
 0x2e4   : > { %11873 = vst [vmem:[#allocation144_spill] sm:$0xff] %v9612_v61  ;;  %7320 = vmatpush3.bf16.msra.mxu0 %v8089_v57  ;;  %v2439_v57 = vmul.f32 %v9584_v41, %v2359_v26 }
 0x2e5   : > { %7321 = vmatprep.subr.bf16.mxu0 %v8090_v16 }
 0x2e6   : > { %v9621_v10 = vpop.permute.xlu1 %2650  ;;  %v2449_v22 = vpack.c.bf16 %v2439_v57, %v2438_v25 }
 0x2e7   : > { %7306 = vmatmul.mubr.msk.bf16.gmra.mrb[4].mxu0 %vm56_vm0, %v2447_v12  ;;  %v2703_v28 = vpop.permute.xlu0 %2702  ;;  %11875 = vst [vmem:[#allocation146_spill] sm:$0xff] %v9621_v10  ;;  %v2450_v12 = vpack.c.bf16 %v2441_v60, %v2440_v53 }
 0x2e8   : > { %7309 = vmatprep.mubr.msk.bf16.mxu0 %vm56_vm0, %v2448_v31  ;;  %7322 = vmatpush3.bf16.msra.mxu0 %v8090_v16  ;;  %v9617_v13 = vmul.f32 %v2703_v28, %v2640_v50  ;;  %v2705_v31 = vmul.f32 %v9567_v56, %v9167_v30  ;;  %v2706_v28 = vmul.f32 %v9610_v43, %v11836_v45 }
 0x2e9   : > { %7323 = vmatprep.subr.bf16.mxu0 %v8091_v33  ;;  %v2708_v30 = vmul.f32 %v9572_v51, %v11838_v59  ;;  %v2707_v45 = vmul.f32 %v9621_v10, %v11837_v14  ;;  %v2712_v59 = vmul.f32 %v9587_v5, %v11845_v23  ;;  %v2716_v23 = vmul.f32 %v9602_v2, %v11847_v49 }
 0x2ea   : > { %11874 = vst [vmem:[#allocation145_spill] sm:$0xff] %v9617_v13  ;;  %v9625_v29 = vpop.permute.xlu1 %2658  ;;  %v2721_v16 = vpack.c.bf16 %v2706_v28, %v2705_v31 }
 0x2eb   : > { %11876 = vst [vmem:[#allocation147_spill] sm:$0xff] %v9625_v29  ;;  %v2709_v54 = vmul.f32 %v9625_v29, %v11839_v36  ;;  %v2722_v18 = vpack.c.bf16 %v2708_v30, %v2707_v45  ;;  %v8093_v30 = vld [vmem:[%s8810_s18 + $0x148] sm:$0xff]  }
 0x2ec   : > { %7324 = vmatpush3.bf16.msra.mxu0 %v8091_v33  ;;  %v2451_v33 = vpack.c.bf16 %v9599_v11, %v2442_v19 }
 0x2ed   : > { %v2723_v25 = vpack.c.bf16 %v2710_v58, %v2709_v54  ;;  %v8094_v58 = vld [vmem:[%s8810_s18 + $0x150] sm:$0xff]  }
 0x2ee   : > { %v9636_v50 = vpop.permute.xlu1 %2666 }
 0x2ef   : > { %7310 = vmatmul.mubr.msk.bf16.gmra.mrb[8].mxu0 %vm56_vm0, %v2449_v22  ;;  %11877 = vst [vmem:[#allocation148_spill] sm:$0xff] %v9636_v50  ;;  %v2711_v14 = vmul.f32 %v9636_v50, %v11843_v27 }
 0x2f0   : > { %7313 = vmatprep.mubr.msk.bf16.mxu0 %vm56_vm0, %v2450_v12 }
 0x2f1   : > { %v2724_v53 = vpack.c.bf16 %v2712_v59, %v2711_v14  ;;  %v8095_v59 = vld [vmem:[%s8810_s18 + $0x158] sm:$0xff]  }
 0x2f2   : > { %v9648_v26 = vpop.permute.xlu1 %2674 }
 0x2f3   : > { %11878 = vst [vmem:[#allocation149_spill] sm:$0xff] %v9648_v26  ;;  %v2713_v36 = vmul.f32 %v9648_v26, %v9230_v55  ;;  %v2718_v55 = vmul.f32 %v9612_v61, %v9263_v48 }
 0x2f5   : > { %v2725_v60 = vpack.c.bf16 %v2714_v38, %v2713_v36 }
 0x2f6   : > { %v9656_v57 = vpop.permute.xlu1 %2682 }
 0x2f7   : > { %7314 = vmatmul.mubr.msk.bf16.gmra.mrb[12].mxu0 %vm56_vm0, %v2451_v33  ;;  %11879 = vst [vmem:[#allocation150_spill] sm:$0xff] %v9656_v57  ;;  %v2715_v27 = vmul.f32 %v9656_v57, %v9246_v62 }
 0x2f8   : > { %7325 = vmatprep.mubr.msk.bf16.mxu0 %vm56_vm0, %v2721_v16 }
 0x2f9   : > { %v2726_v12 = vpack.c.bf16 %v2716_v23, %v2715_v27 }
 0x2fa   : > { %v9662_v22 = vpop.permute.xlu1 %2690 }
 0x2fb   : > { %11880 = vst [vmem:[#allocation151_spill] sm:$0xff] %v9662_v22  ;;  %v2717_v42 = vmul.f32 %v9662_v22, %v9261_v47  ;;  %v8092_v47 = vld [vmem:[%s8810_s18 + $0x140] sm:$0xff]  }
 0x2fc   : > { %7341 = vmatprep.subr.bf16.mxu1 %v8092_v47 }
 0x2fd   : > { %v2727_v31 = vpack.c.bf16 %v2718_v55, %v2717_v42  ;;  %7342 = vmatpush3.bf16.msra.mxu1 %v8092_v47 }
 0x2fe   : > { %v9674_v28 = vpop.permute.xlu1 %2698  ;;  %7343 = vmatprep.subr.bf16.mxu1 %v8093_v30 }
 0x2ff   : > { %7326 = vmatmul.mubr.msk.bf16.vlgmr.msra.gmra.mrb[0].mxu0 %vm56_vm0, %v2722_v18  ;;  %11881 = vst [vmem:[#allocation152_spill] sm:$0xff] %v9674_v28  ;;  %v2719_v49 = vmul.f32 %v9674_v28, %v9493_v6 }
 0x300   : > { %7329 = vmatprep.mubr.msk.bf16.mxu0 %vm56_vm0, %v2723_v25 }
 0x301   : > { %v2728_v62 = vpack.c.bf16 %v9617_v13, %v2719_v49  ;;  %7344 = vmatpush3.bf16.msra.mxu1 %v8093_v30 }
 0x302   : > { %7345 = vmatprep.subr.bf16.mxu1 %v8094_v58 }
 0x305   : > { %7346 = vmatpush3.bf16.msra.mxu1 %v8094_v58 }
 0x306   : > { %7347 = vmatprep.subr.bf16.mxu1 %v8095_v59 }
 0x307   : > { %7330 = vmatmul.mubr.msk.bf16.gmra.mrb[4].mxu0 %vm56_vm0, %v2724_v53 }
 0x308   : > { %7333 = vmatprep.mubr.msk.bf16.mxu0 %vm56_vm0, %v2725_v60 }
 0x309   : > { %7348 = vmatpush3.bf16.msra.mxu1 %v8095_v59 }
 0x30f   : > { %7334 = vmatmul.mubr.msk.bf16.gmra.mrb[8].mxu0 %vm56_vm0, %v2726_v12 }
 0x310   : > { %7337 = vmatprep.mubr.msk.bf16.mxu0 %vm56_vm0, %v2727_v31  ;;  %v9705_v31 = vld [vmem:[%s8810_s18 + $0x120] sm:$0xff]  }
 0x311   : > { %7365 = vmatprep.subr.bf16.mxu1 %v9705_v31 }
 0x317   : > { %7338 = vmatmul.mubr.msk.bf16.gmra.mrb[12].mxu0 %vm56_vm0, %v2728_v62 }
 0x3d2   : > { %v9683_v19 = vpop.f32.mrb[0].mxu0 }
 0x3d3   : > { %v9685_v48 = vpop.f32.mrb[1].mxu0  ;;  %v2909_v18 = vsel %vm56_vm0, %v9683_v19, 0.0 }
 0x3d4   : > { %v9687_v16 = vpop.f32.mrb[2].mxu0  ;;  %v2906_v6 = vsel %vm56_vm0, %v9685_v48, 0.0 }
 0x3d5   : > { %v9689_v33 = vpop.f32.mrb[3].mxu0  ;;  %v2911_v14 = vsel %vm56_vm0, %v9687_v16, 0.0 }
 0x3d6   : > { %v2907_v45 = vsel %vm56_vm0, %v9689_v33, 0.0 }
 0x3d7   : > { %v2908_v54 = vadd.f32 %v2907_v45, %v2906_v6 }
 0x3d9   : > { %v2910_v25 = vadd.f32 %v2909_v18, %v2908_v54 }
 0x3da   : > { %v7331_v38 = vpop.f32.mrb[4].mxu0 }
 0x3db   : > { %v2839_v36 = vpop.f32.mrb[5].mxu0  ;;  %v2912_v53 = vadd.f32 %v2911_v14, %v2910_v25  ;;  %v2917_v49 = vsel %vm56_vm0, %v7331_v38, 0.0 }
 0x3dc   : > { %v2913_v60 = vsel %vm56_vm0, %v2839_v36, 0.0  ;;  %v7332_v23 = vpop.f32.mrb[6].mxu0 }
 0x3dd   : > { %v2914_v27 = vadd.f32 %v2913_v60, %v2912_v53  ;;  %v2842_v42 = vpop.f32.mrb[7].mxu0  ;;  %v2919_v47 = vsel %vm56_vm0, %v7332_v23, 0.0 }
 0x3de   : > { %v2915_v55 = vsel %vm56_vm0, %v2842_v42, 0.0 }
 0x3df   : > { %v2916_v12 = vadd.f32 %v2915_v55, %v2914_v27 }
 0x3e1   : > { %v2918_v62 = vadd.f32 %v2917_v49, %v2916_v12 }
 0x3e2   : > { %v7335_v30 = vpop.f32.mrb[8].mxu0 }
 0x3e3   : > { %v2855_v6 = vpop.f32.mrb[9].mxu0  ;;  %v2920_v45 = vadd.f32 %v2919_v47, %v2918_v62  ;;  %v2925_v60 = vsel %vm56_vm0, %v7335_v30, 0.0 }
 0x3e4   : > { %v2921_v58 = vsel %vm56_vm0, %v2855_v6, 0.0  ;;  %v7336_v54 = vpop.f32.mrb[10].mxu0 }
 0x3e5   : > { %v2922_v18 = vadd.f32 %v2921_v58, %v2920_v45  ;;  %v2858_v25 = vpop.f32.mrb[11].mxu0  ;;  %v2927_v59 = vsel %vm56_vm0, %v7336_v54, 0.0 }
 0x3e6   : > { %v2923_v14 = vsel %vm56_vm0, %v2858_v25, 0.0 }
 0x3e7   : > { %v2924_v53 = vadd.f32 %v2923_v14, %v2922_v18 }
 0x3e9   : > { %v2926_v27 = vadd.f32 %v2925_v60, %v2924_v53 }
 0x3ea   : > { %v7339_v55 = vpop.f32.mrb[12].mxu0 }
 0x3eb   : > { %v2871_v12 = vpop.f32.mrb[13].mxu0  ;;  %v2928_v49 = vadd.f32 %v2927_v59, %v2926_v27  ;;  %v2933_v58 = vsel %vm56_vm0, %v7339_v55, 0.0 }
 0x3ec   : > { %v2929_v13 = vsel %vm56_vm0, %v2871_v12, 0.0  ;;  %v7340_v28 = vpop.f32.mrb[14].mxu0 }
 0x3ed   : > { %v2930_v62 = vadd.f32 %v2929_v13, %v2928_v49  ;;  %v2874_v47 = vpop.f32.mrb[15].mxu0  ;;  %v2935_v18 = vsel %vm56_vm0, %v7340_v28, 0.0 }
 0x3ee   : > { %v2931_v61 = vsel %vm56_vm0, %v2874_v47, 0.0 }
 0x3ef   : > { %v2932_v45 = vadd.f32 %v2931_v61, %v2930_v62 }
 0x3f1   : > { %v2934_v22 = vadd.f32 %v2933_v58, %v2932_v45 }
 0x3f3   : > { %v2936_v14 = vadd.f32 %v2935_v18, %v2934_v22 }
 0x3f5   : > { %v2937_v53 = vrot.slane %v2936_v14, 4 }
 0x3f7   : > { %v2938_v60 = vadd.f32 %v2937_v53, %v2936_v14 }
 0x3f9   : > { %v2939_v2 = vrot.slane %v2938_v60, 2 }
 0x3fb   : > { %v2940_v57 = vadd.f32 %v2939_v2, %v2938_v60 }
 0x3fd   : > { %v2941_v24 = vrot.slane %v2940_v57, 1 }
 0x3ff   : > { %v2942_v27 = vadd.f32 %v2941_v24, %v2940_v57 }
 0x401   : > { %v2943_v59 = vmul.f32 0.0078125, %v2942_v27 }
 0x403   : > { %v9719_v26 = vsub.f32 %v9685_v48, %v2943_v59  ;;  %v9722_v13 = vsub.f32 %v9689_v33, %v2943_v59  ;;  %v9725_v61 = vsub.f32 %v9683_v19, %v2943_v59  ;;  %v9728_v49 = vsub.f32 %v9687_v16, %v2943_v59 }
 0x404   : > { %v9730_v22 = vsub.f32 %v2839_v36, %v2943_v59  ;;  %v9732_v62 = vsub.f32 %v2842_v42, %v2943_v59  ;;  %v9734_v2 = vsub.f32 %v7331_v38, %v2943_v59  ;;  %v9736_v24 = vsub.f32 %v7332_v23, %v2943_v59 }
 0x405   : > { %v9738_v57 = vsub.f32 %v2855_v6, %v2943_v59  ;;  %v9740_v48 = vsub.f32 %v2858_v25, %v2943_v59  ;;  %v9742_v33 = vsub.f32 %v7335_v30, %v2943_v59  ;;  %v9744_v45 = vsub.f32 %v7336_v54, %v2943_v59 }
 0x406   : > { %v9746_v19 = vsub.f32 %v2871_v12, %v2943_v59  ;;  %v9748_v16 = vsub.f32 %v2874_v47, %v2943_v59  ;;  %v9750_v36 = vsub.f32 %v7339_v55, %v2943_v59  ;;  %v9752_v42 = vsub.f32 %v7340_v28, %v2943_v59 }
 0x407   : > { %v2960_v38 = vmul.f32 %v9719_v26, %v9719_v26  ;;  %v2961_v23 = vmul.f32 %v9722_v13, %v9722_v13  ;;  %v2962_v30 = vmul.f32 %v9725_v61, %v9725_v61  ;;  %v2963_v6 = vmul.f32 %v9728_v49, %v9728_v49 }
 0x408   : > { %v2964_v28 = vmul.f32 %v9730_v22, %v9730_v22  ;;  %v2965_v58 = vmul.f32 %v9732_v62, %v9732_v62  ;;  %v2966_v53 = vmul.f32 %v9734_v2, %v9734_v2  ;;  %v2967_v59 = vmul.f32 %v9736_v24, %v9736_v24 }
 0x409   : > { %v2976_v54 = vsel %vm56_vm0, %v2960_v38, 0.0  ;;  %v2977_v25 = vsel %vm56_vm0, %v2961_v23, 0.0  ;;  %v2979_v12 = vsel %vm56_vm0, %v2962_v30, 0.0  ;;  %v2981_v18 = vsel %vm56_vm0, %v2963_v6, 0.0 }
 0x40a   : > { %v2978_v55 = vadd.f32 %v2977_v25, %v2976_v54  ;;  %v2983_v60 = vsel %vm56_vm0, %v2964_v28, 0.0  ;;  %v2985_v38 = vsel %vm56_vm0, %v2965_v58, 0.0  ;;  %v2968_v30 = vmul.f32 %v9738_v57, %v9738_v57 }
 0x40b   : > { %v2987_v54 = vsel %vm56_vm0, %v2966_v53, 0.0  ;;  %v2969_v6 = vmul.f32 %v9740_v48, %v9740_v48  ;;  %v2970_v28 = vmul.f32 %v9742_v33, %v9742_v33  ;;  %v2971_v58 = vmul.f32 %v9744_v45, %v9744_v45 }
 0x40c   : > { %v2980_v47 = vadd.f32 %v2979_v12, %v2978_v55  ;;  %v2989_v55 = vsel %vm56_vm0, %v2967_v59, 0.0  ;;  %v2972_v53 = vmul.f32 %v9746_v19, %v9746_v19  ;;  %v2973_v59 = vmul.f32 %v9748_v16, %v9748_v16 }
 0x40e   : > { %v2982_v14 = vadd.f32 %v2981_v18, %v2980_v47  ;;  %v2991_v47 = vsel %vm56_vm0, %v2968_v30, 0.0  ;;  %v2974_v30 = vmul.f32 %v9750_v36, %v9750_v36 }
 0x410   : > { %v2984_v27 = vadd.f32 %v2983_v60, %v2982_v14  ;;  %v2993_v14 = vsel %vm56_vm0, %v2969_v6, 0.0  ;;  %v2975_v6 = vmul.f32 %v9752_v42, %v9752_v42 }
 0x412   : > { %v2986_v23 = vadd.f32 %v2985_v38, %v2984_v27  ;;  %v2995_v27 = vsel %vm56_vm0, %v2970_v28, 0.0 }
 0x414   : > { %v2988_v25 = vadd.f32 %v2987_v54, %v2986_v23  ;;  %v2997_v23 = vsel %vm56_vm0, %v2971_v58, 0.0 }
 0x416   : > { %v2990_v12 = vadd.f32 %v2989_v55, %v2988_v25  ;;  %v2999_v25 = vsel %vm56_vm0, %v2972_v53, 0.0 }
 0x418   : > { %v2992_v18 = vadd.f32 %v2991_v47, %v2990_v12  ;;  %v3001_v12 = vsel %vm56_vm0, %v2973_v59, 0.0  ;;  %v3003_v47 = vsel %vm56_vm0, %v2974_v30, 0.0  ;;  %v6583_v59 = vld [vmem:[%s9806_s22 + $0x1] sm:$0x1] }
 0x41a   : > { %v2994_v60 = vadd.f32 %v2993_v14, %v2992_v18  ;;  %v3005_v14 = vsel %vm56_vm0, %v2975_v6, 0.0  ;;  %v11882_v6 = vld [vmem:[#allocation24_spill] sm:$0xff] }
 0x41c   : > { %v2996_v38 = vadd.f32 %v2995_v27, %v2994_v60 }
 0x41e   : > { %v2998_v54 = vadd.f32 %v2997_v23, %v2996_v38 }
 0x420   : > { %v3000_v55 = vadd.f32 %v2999_v25, %v2998_v54 }
 0x422   : > { %v3002_v28 = vadd.f32 %v3001_v12, %v3000_v55 }
 0x424   : > { %v3004_v18 = vadd.f32 %v3003_v47, %v3002_v28 }
 0x426   : > { %v3006_v58 = vadd.f32 %v3005_v14, %v3004_v18  ;;  %v6586_v14 = vld [vmem:[%s9812_s25 + $0x1] ss:$0 sm:$0xff] }
 0x428   : > { %v3007_v60 = vrot.slane %v3006_v58, 4 }
 0x42a   : > { %v3008_v27 = vadd.f32 %v3007_v60, %v3006_v58 }
 0x42c   : > { %v3009_v38 = vrot.slane %v3008_v27, 2 }
 0x42e   : > { %v3010_v23 = vadd.f32 %v3009_v38, %v3008_v27 }
 0x430   : > { %v3011_v5 = vrot.slane %v3010_v23, 1 }
 0x432   : > { %v3012_v53 = vadd.f32 %v3011_v5, %v3010_v23 }
 0x434   : > { %v3013_v54 = vmul.f32 0.0078125, %v3012_v53 }
 0x436   : > { %v3014_v25 = vadd.f32 1e-05, %v3013_v54 }
 0x438   : > { %8128 = vrsqrt.f32 %v3014_v25 }
 0x442   : > { %v8129_v30 = vpop.eup %8128 }
 0x443   : > { %v3016_v55 = vmul.f32 %v8129_v30, %v6583_v59 }
 0x445   : > { %v3020_v5 = vrot.slane %v3016_v55, %v11882_v6 }
 0x447   : > { %v3021_v12 = vmul.f32 %v3020_v5, %v9719_v26  ;;  %v3022_v28 = vmul.f32 %v3020_v5, %v9722_v13  ;;  %v3023_v47 = vmul.f32 %v3020_v5, %v9725_v61  ;;  %v3024_v18 = vmul.f32 %v3020_v5, %v9728_v49 }
 0x448   : > { %v3025_v58 = vmul.f32 %v3020_v5, %v9730_v22  ;;  %v3026_v60 = vmul.f32 %v3020_v5, %v9732_v62  ;;  %v3027_v27 = vmul.f32 %v3020_v5, %v9734_v2  ;;  %v3028_v38 = vmul.f32 %v3020_v5, %v9736_v24 }
 0x449   : > { %v3029_v23 = vmul.f32 %v3020_v5, %v9738_v57  ;;  %v3030_v53 = vmul.f32 %v3020_v5, %v9740_v48  ;;  %v3031_v26 = vmul.f32 %v3020_v5, %v9742_v33  ;;  %v3032_v13 = vmul.f32 %v3020_v5, %v9744_v45 }
 0x44a   : > { %v3033_v61 = vmul.f32 %v3020_v5, %v9746_v19  ;;  %v3034_v49 = vmul.f32 %v3020_v5, %v9748_v16  ;;  %v3035_v22 = vmul.f32 %v3020_v5, %v9750_v36  ;;  %v3036_v62 = vmul.f32 %v3020_v5, %v9752_v42 }
 0x44b   : > { %v3041_v54 = vadd.f32 %v6586_v14, %v3021_v12  ;;  %v3042_v2 = vadd.f32 %v6586_v14, %v3022_v28  ;;  %v3043_v25 = vadd.f32 %v6586_v14, %v3023_v47  ;;  %v3044_v24 = vadd.f32 %v6586_v14, %v3024_v18 }
 0x44c   : > { %v3045_v59 = vadd.f32 %v6586_v14, %v3025_v58  ;;  %v3046_v57 = vadd.f32 %v6586_v14, %v3026_v60  ;;  %v3047_v30 = vadd.f32 %v6586_v14, %v3027_v27  ;;  %v3048_v48 = vadd.f32 %v6586_v14, %v3028_v38 }
 0x44d   : > { %v3049_v55 = vadd.f32 %v6586_v14, %v3029_v23  ;;  %v3050_v33 = vadd.f32 %v6586_v14, %v3030_v53  ;;  %v3051_v6 = vadd.f32 %v6586_v14, %v3031_v26  ;;  %v3052_v45 = vadd.f32 %v6586_v14, %v3032_v13  ;;  %v11885_v13 = vld [vmem:[#allocation44_spill] sm:$0xff] }
 0x44e   : > { %v3053_v50 = vadd.f32 %v6586_v14, %v3033_v61  ;;  %v3054_v19 = vadd.f32 %v6586_v14, %v3034_v49  ;;  %v3055_v21 = vadd.f32 %v6586_v14, %v3035_v22  ;;  %v3056_v16 = vadd.f32 %v6586_v14, %v3036_v62  ;;  %v11886_v49 = vld [vmem:[#allocation41_spill] sm:$0xff]  ;;  %v11887_v62 = vld [vmem:[#allocation43_spill] sm:$0xff] }
 0x44f   : > { %v3057_v29 = vmax.f32 %v3041_v54, 0.0  ;;  %v3058_v36 = vmax.f32 %v3042_v2, 0.0  ;;  %v3059_v51 = vmax.f32 %v3043_v25, 0.0  ;;  %v3060_v42 = vmax.f32 %v3044_v24, 0.0 }
 0x450   : > { %v3061_v5 = vmax.f32 %v3045_v59, 0.0  ;;  %v3062_v12 = vmax.f32 %v3046_v57, 0.0  ;;  %v3063_v28 = vmax.f32 %v3047_v30, 0.0  ;;  %v3064_v47 = vmax.f32 %v3048_v48, 0.0  ;;  %v11888_v59 = vld [vmem:[#allocation46_spill] sm:$0xff]  ;;  %v11889_v30 = vld [vmem:[#allocation45_spill] sm:$0xff] }
 0x451   : > { %v3065_v18 = vmax.f32 %v3049_v55, 0.0  ;;  %v3066_v58 = vmax.f32 %v3050_v33, 0.0  ;;  %v3067_v60 = vmax.f32 %v3051_v6, 0.0  ;;  %v3068_v27 = vmax.f32 %v3052_v45, 0.0  ;;  %3073 = vst.msk [vmem:[#allocation2 + $0x10] sm:$0xff] %vm56_vm0, %v3057_v29  ;;  %3074 = vst.msk [vmem:[#allocation2 + $0x18] sm:$0xff] %vm56_vm0, %v3058_v36 }
 0x452   : > { %3075 = vst.msk [vmem:[#allocation2 + $0x20] sm:$0xff] %vm56_vm0, %v3059_v51  ;;  %3076 = vst.msk [vmem:[#allocation2 + $0x28] sm:$0xff] %vm56_vm0, %v3060_v42  ;;  %v3069_v14 = vmax.f32 %v3053_v50, 0.0  ;;  %v3070_v38 = vmax.f32 %v3054_v19, 0.0  ;;  %v3071_v23 = vmax.f32 %v3055_v21, 0.0  ;;  %v3072_v53 = vmax.f32 %v3056_v16, 0.0 }
 0x453   : > { %3077 = vst.msk [vmem:[#allocation2 + $0x30] sm:$0xff] %vm56_vm0, %v3061_v5  ;;  %3078 = vst.msk [vmem:[#allocation2 + $0x38] sm:$0xff] %vm56_vm0, %v3062_v12  ;;  %v3141_v51 = vld [vmem:[#allocation2 + $0x8] sm:$0xff]  ;;  %v11884_v21 = vld [vmem:[#allocation42_spill] sm:$0xff] }
 0x454   : > { %3079 = vst.msk [vmem:[#allocation2 + $0x40] sm:$0xff] %vm56_vm0, %v3063_v28  ;;  %3080 = vst.msk [vmem:[#allocation2 + $0x48] sm:$0xff] %vm56_vm0, %v3064_v47  ;;  %v3157_v50 = vmul.f32 %v3141_v51, %v11884_v21  ;;  %v8097_v19 = vld [vmem:[%s8810_s18 + $0x128] sm:$0xff]   ;;  %v11908_v55 = vld [vmem:[#allocation58_spill] sm:$0xff] }
 0x455   : > { %3081 = vst.msk [vmem:[#allocation2 + $0x50] sm:$0xff] %vm56_vm0, %v3065_v18  ;;  %3082 = vst.msk [vmem:[#allocation2 + $0x58] sm:$0xff] %vm56_vm0, %v3066_v58  ;;  %v11890_v28 = vld [vmem:[#allocation48_spill] sm:$0xff]  ;;  %v11891_v18 = vld [vmem:[#allocation47_spill] sm:$0xff] }
 0x456   : > { %3083 = vst.msk [vmem:[#allocation2 + $0x60] sm:$0xff] %vm56_vm0, %v3067_v60  ;;  %3084 = vst.msk [vmem:[#allocation2 + $0x68] sm:$0xff] %vm56_vm0, %v3068_v27  ;;  %v8098_v60 = vld [vmem:[%s8810_s18 + $0x130] sm:$0xff]   ;;  %v11892_v27 = vld [vmem:[#allocation50_spill] sm:$0xff] }
 0x457   : > { %3085 = vst.msk [vmem:[#allocation2 + $0x70] sm:$0xff] %vm56_vm0, %v3069_v14  ;;  %3086 = vst.msk [vmem:[#allocation2 + $0x78] sm:$0xff] %vm56_vm0, %v3070_v38  ;;  %v11893_v38 = vld [vmem:[#allocation49_spill] sm:$0xff] }
 0x458   : > { %3087 = vst.msk [vmem:[#allocation2 + $0x80] sm:$0xff] %vm56_vm0, %v3071_v23  ;;  %3088 = vst.msk [vmem:[#allocation2 + $0x88] sm:$0xff] %vm56_vm0, %v3072_v53  ;;  %v9848_v29 = vld [vmem:[#allocation2 + $0x10] sm:$0xff]  ;;  %v9851_v6 = vld [vmem:[#allocation2 + $0x18] sm:$0xff] }
 0x459   : > { %11883 = vst [vmem:[#allocation153_spill] sm:$0xff] %v9848_v29  ;;  %v9853_v26 = vld [vmem:[#allocation2 + $0x20] sm:$0xff]  ;;  %v3158_v61 = vmul.f32 %v9848_v29, %v11885_v13  ;;  %v3159_v22 = vmul.f32 %v9851_v6, %v11886_v49  ;;  %v9861_v2 = vld [vmem:[#allocation2 + $0x28] sm:$0xff] }
 0x45a   : > { %v3160_v54 = vmul.f32 %v9853_v26, %v11887_v62  ;;  %v9863_v25 = vld [vmem:[#allocation2 + $0x30] sm:$0xff]  ;;  %v3161_v57 = vmul.f32 %v9861_v2, %v11888_v59  ;;  %v9875_v36 = vld [vmem:[#allocation2 + $0x38] sm:$0xff]  ;;  %v11897_v62 = vld [vmem:[#allocation51_spill] sm:$0xff] }
 0x45b   : > { %v3162_v48 = vmul.f32 %v9863_v25, %v11889_v30  ;;  %v3173_v33 = vpack.c.bf16 %v3158_v61, %v3157_v50  ;;  %v9877_v42 = vld [vmem:[#allocation2 + $0x40] sm:$0xff]  ;;  %v9880_v5 = vld [vmem:[#allocation2 + $0x48] sm:$0xff]  ;;  %v3163_v47 = vmul.f32 %v9875_v36, %v11890_v28  ;;  %v9923_v28 = vld [vmem:[#allocation2 + $0x17] sm:$0xff] }
 0x45c   : > { %v3174_v45 = vpack.c.bf16 %v3160_v54, %v3159_v22  ;;  %v9882_v12 = vld [vmem:[#allocation2 + $0x50] sm:$0xff]  ;;  %v3164_v58 = vmul.f32 %v9877_v42, %v11891_v18  ;;  %v3165_v14 = vmul.f32 %v9880_v5, %v11892_v27  ;;  %v9896_v21 = vld [vmem:[#allocation2 + $0x58] sm:$0xff]  ;;  %v9915_v30 = vld [vmem:[%s8810_s18 + $0x160] sm:$0xff]  }
 0x45d   : > { %7349 = vmatprep.mubr.msk.bf16.mxu1 %vm56_vm0, %v3173_v33  ;;  %v3175_v16 = vpack.c.bf16 %v3162_v48, %v3161_v57  ;;  %v3166_v23 = vmul.f32 %v9882_v12, %v11893_v38  ;;  %11894 = vst [vmem:[#allocation42_spill] sm:$0xff] %v9896_v21  ;;  %v9898_v50 = vld [vmem:[#allocation2 + $0x60] sm:$0xff]  ;;  %v9901_v13 = vld [vmem:[#allocation2 + $0x68] sm:$0xff]  ;;  %v10038_v63 = vld [vmem:[#allocation2 + $0x57] sm:$0xff] }
 0x45e   : > { %7350 = vmatmul.mubr.msk.bf16.vlgmr.msra.gmra.mrb[0].mxu1 %vm56_vm0, %v3174_v45  ;;  %v3176_v53 = vpack.c.bf16 %v3164_v58, %v3163_v47  ;;  %v9903_v61 = vld [vmem:[#allocation2 + $0x70] sm:$0xff]  ;;  %v3168_v54 = vmul.f32 %v9898_v50, %v11897_v62  ;;  %v9910_v59 = vld [vmem:[#allocation2 + $0x78] sm:$0xff]  ;;  %v9978_v10 = vld [vmem:[#allocation2 + $0x21] sm:$0xff] }
 0x45f   : > { %7366 = vmatpush3.bf16.msra.mxu1 %v9705_v31  ;;  %7353 = vmatprep.mubr.msk.bf16.mxu1 %vm56_vm0, %v3175_v16  ;;  %v8099_v31 = vld [vmem:[%s8810_s18 + $0x138] sm:$0xff]   ;;  %v3177_v51 = vpack.c.bf16 %v3166_v23, %v3165_v14  ;;  %11895 = vst [vmem:[#allocation44_spill] sm:$0xff] %v9903_v61  ;;  %v11896_v49 = vld [vmem:[#allocation52_spill] sm:$0xff]  ;;  %11898 = vst [vmem:[#allocation41_spill] sm:$0xff] %v9910_v59 }
 0x460   : > { %7367 = vmatprep.subr.bf16.mxu1 %v8097_v19  ;;  %v3167_v22 = vmul.f32 %v9896_v21, %v11896_v49  ;;  %v9912_v57 = vld [vmem:[#allocation2 + $0x80] sm:$0xff]  ;;  %v11901_v45 = vld [vmem:[#allocation53_spill] sm:$0xff]  ;;  %v11903_v18 = vld [vmem:[#allocation56_spill] sm:$0xff]  ;;  %11914 = vst [vmem:[#allocation47_spill] sm:$0xff] %v9978_v10  ;;  %v10032_v21 = vmul.f32 %v9978_v10, %v9378_v4 }
 0x461   : > { %11899 = vst [vmem:[#allocation43_spill] sm:$0xff] %v9912_v57  ;;  %v11900_v48 = vld [vmem:[#allocation54_spill] sm:$0xff]  ;;  %v9921_v16 = vld [vmem:[#allocation2 + $0xf] sm:$0xff]  ;;  %v9929_v58 = vmul.f32 %v9910_v59, %v11903_v18  ;;  %v9933_v14 = vld [vmem:[#allocation2 + $0x27] sm:$0xff] }
 0x462   : > { %v3169_v33 = vmul.f32 %v9901_v13, %v11900_v48  ;;  %11902 = vst [vmem:[#allocation46_spill] sm:$0xff] %v9921_v16  ;;  %v9925_v47 = vld [vmem:[#allocation2 + $0x1f] sm:$0xff]  ;;  %v9935_v38 = vld [vmem:[#allocation2 + $0x2f] sm:$0xff]  ;;  %v3178_v23 = vpack.c.bf16 %v3168_v54, %v3167_v22  ;;  %11924 = vst [vmem:[#allocation56_spill] sm:$0xff] %v10032_v21 }
 0x463   : > { %7368 = vmatpush3.bf16.msra.mxu1 %v8097_v19  ;;  %v3170_v19 = vmul.f32 %v9903_v61, %v11901_v45  ;;  %v11906_v49 = vld [vmem:[#allocation59_spill] sm:$0xff]  ;;  %v11907_v48 = vld [vmem:[#allocation60_spill] sm:$0xff]  ;;  %v11909_v22 = vld [vmem:[#allocation61_spill] sm:$0xff] }
 0x464   : > { %7369 = vmatprep.subr.bf16.mxu1 %v8098_v60  ;;  %v9942_v62 = vmul.f32 %v9923_v28, %v11906_v49  ;;  %v9946_v45 = vmul.f32 %v9925_v47, %v11907_v48  ;;  %v9954_v54 = vmul.f32 %v9933_v14, %v11909_v22  ;;  %v9960_v29 = vld [vmem:[#allocation2 + $0x3f] sm:$0xff]  ;;  %v9962_v48 = vld [vmem:[#allocation2 + $0x47] sm:$0xff]  ;;  %v10040_v59 = vld [vmem:[#allocation2 + $0x71] sm:$0xff] }
 0x465   : > { %v3179_v18 = vpack.c.bf16 %v3170_v19, %v3169_v33  ;;  %v9966_v19 = vld [vmem:[#allocation2 + $0x4f] sm:$0xff]  ;;  %v9994_v22 = vld [vmem:[#allocation2 + $0x39] sm:$0xff]  ;;  %v10018_v40 = vld [vmem:[#allocation2 + $0x61] sm:$0xff] }
 0x466   : > { %7354 = vmatmul.mubr.msk.bf16.gmra.mrb[4].mxu1 %vm56_vm0, %v3176_v53  ;;  %v11905_v53 = vld [vmem:[#allocation57_spill] sm:$0xff]  ;;  %v9980_v11 = vld [vmem:[#allocation2 + $0x29] sm:$0xff]  ;;  %11919 = vst [vmem:[#allocation52_spill] sm:$0xff] %v9994_v22  ;;  %v10060_v10 = vld [vmem:[#allocation2 + $0x5f] sm:$0xff] }
 0x467   : > { %7357 = vmatprep.mubr.msk.bf16.mxu1 %vm56_vm0, %v3177_v51  ;;  %7370 = vmatpush3.bf16.msra.mxu1 %v8098_v60  ;;  %v11904_v60 = vld [vmem:[#allocation55_spill] sm:$0xff]  ;;  %v3106_v51 = vmul.f32 %v9921_v16, %v11905_v53  ;;  %v11910_v53 = vld [vmem:[#allocation62_spill] sm:$0xff]  ;;  %11915 = vst [vmem:[#allocation50_spill] sm:$0xff] %v9980_v11  ;;  %v10036_v41 = vmul.f32 %v9980_v11, %v9388_v17  ;;  %v11928_v4 = vld [vmem:[#allocation113_spill] sm:$0xff] }
 0x468   : > { %7371 = vmatprep.subr.bf16.mxu1 %v8099_v31  ;;  %v3172_v27 = vmul.f32 %v9912_v57, %v11904_v60  ;;  %v8132_v60 = vld [vmem:[#allocation2 + $0x7] sm:$0xff]  ;;  %v9958_v49 = vmul.f32 %v9935_v38, %v11910_v53  ;;  %v11921_v57 = vld [vmem:[#allocation66_spill] sm:$0xff]  ;;  %v11930_v17 = vld [vmem:[#allocation117_spill] sm:$0xff] }
 0x469   : > { %v3105_v24 = vmul.f32 %v8132_v60, %v11908_v55  ;;  %v9968_v55 = vld [vmem:[#allocation2 + $0x11] sm:$0xff]  ;;  %v11913_v53 = vld [vmem:[#allocation63_spill] sm:$0xff]  ;;  %v10008_v52 = vmul.f32 %v9966_v19, %v11921_v57  ;;  %v10012_v46 = vld [vmem:[#allocation2 + $0x59] sm:$0xff]  ;;  %11925 = vst [vmem:[#allocation55_spill] sm:$0xff] %v10036_v41 }
 0x46a   : > { %v3180_v33 = vpack.c.bf16 %v3172_v27, %v9929_v58  ;;  %11911 = vst [vmem:[#allocation45_spill] sm:$0xff] %v9968_v55  ;;  %v11917_v27 = vld [vmem:[#allocation64_spill] sm:$0xff]  ;;  %v10042_v61 = vld [vmem:[#allocation2 + $0x79] sm:$0xff] }
 0x46b   : > { %7372 = vmatpush3.bf16.msra.mxu1 %v8099_v31  ;;  %v9948_v31 = vld [vmem:[#allocation2 + $0x37] sm:$0xff]  ;;  %v3121_v60 = vpack.c.bf16 %v3106_v51, %v3105_v24  ;;  %v9988_v43 = vmul.f32 %v9960_v29, %v11917_v27  ;;  %v9998_v56 = vld [vmem:[#allocation2 + $0x49] sm:$0xff]  ;;  %v10024_v27 = vmul.f32 %v9968_v55, %v9371_v37 }
 0x46c   : > { %7389 = vmatprep.subr.bf16.mxu1 %v9915_v30  ;;  %v9976_v16 = vmul.f32 %v9948_v31, %v11913_v53  ;;  %v11918_v24 = vld [vmem:[#allocation65_spill] sm:$0xff]  ;;  %v9996_v53 = vld [vmem:[#allocation2 + $0x41] sm:$0xff]  ;;  %11920 = vst [vmem:[#allocation51_spill] sm:$0xff] %v9998_v56  ;;  %v10020_v58 = vld [vmem:[#allocation2 + $0x69] sm:$0xff]  ;;  %v10058_v11 = vmul.f32 %v9998_v56, %v11930_v17 }
 0x46d   : > { %v9992_v51 = vmul.f32 %v9962_v48, %v11918_v24  ;;  %v10010_v24 = vld [vmem:[#allocation2 + $0x51] sm:$0xff]  ;;  %11922 = vst [vmem:[#allocation54_spill] sm:$0xff] %v10024_v27  ;;  %v10054_v55 = vmul.f32 %v9996_v53, %v11928_v4  ;;  %v12010_v41 = vld [vmem:[#allocation146_spill] sm:$0xff] }
 0x46e   : > { %7358 = vmatmul.mubr.msk.bf16.gmra.mrb[8].mxu1 %vm56_vm0, %v3178_v23  ;;  %v9970_v23 = vld [vmem:[#allocation2 + $0x19] sm:$0xff]  ;;  %11931 = vst [vmem:[#allocation58_spill] sm:$0xff] %v10058_v11  ;;  %v11941_v17 = vld [vmem:[#allocation116_spill] sm:$0xff] }
 0x46f   : > { %7361 = vmatprep.mubr.msk.bf16.mxu1 %vm56_vm0, %v3179_v18  ;;  %11912 = vst [vmem:[#allocation48_spill] sm:$0xff] %v9970_v23  ;;  %v9982_v18 = vld [vmem:[#allocation2 + $0x31] sm:$0xff]  ;;  %v10028_v57 = vmul.f32 %v9970_v23, %v9354_v3  ;;  %v10050_v3 = vmul.f32 %v9994_v22, %v9395_v32  ;;  %11929 = vst [vmem:[#allocation60_spill] sm:$0xff] %v10054_v55  ;;  %v11934_v22 = vld [vmem:[#allocation119_spill] sm:$0xff]  ;;  %v10096_v56 = vmul.f32 %v10040_v59, %v11941_v17 }
 0x470   : > { %11916 = vst [vmem:[#allocation49_spill] sm:$0xff] %v9982_v18  ;;  %v10046_v37 = vmul.f32 %v9982_v18, %v9366_v7  ;;  %v11932_v18 = vld [vmem:[#allocation114_spill] sm:$0xff]  ;;  %v10072_v4 = vmul.f32 %v10012_v46, %v11934_v22  ;;  %v11936_v23 = vld [vmem:[#allocation115_spill] sm:$0xff]  ;;  %v11938_v7 = vld [vmem:[#allocation120_spill] sm:$0xff] }
 0x471   : > { %11923 = vst [vmem:[#allocation53_spill] sm:$0xff] %v10028_v57  ;;  %11927 = vst [vmem:[#allocation59_spill] sm:$0xff] %v10050_v3  ;;  %v10068_v32 = vmul.f32 %v10010_v24, %v11932_v18  ;;  %v10081_v27 = vmul.f32 %v10018_v40, %v11936_v23  ;;  %v10085_v18 = vmul.f32 %v10020_v58, %v11938_v7  ;;  %v11940_v22 = vld [vmem:[#allocation67_spill] sm:$0xff]  ;;  %v11943_v55 = vld [vmem:[#allocation121_spill] sm:$0xff] }
 0x472   : > { %11926 = vst [vmem:[#allocation57_spill] sm:$0xff] %v10046_v37  ;;  %11935 = vst [vmem:[#allocation62_spill] sm:$0xff] %v10072_v4  ;;  %v10090_v21 = vmul.f32 %v10038_v63, %v11940_v22  ;;  %v10100_v23 = vmul.f32 %v10042_v61, %v11943_v55  ;;  %v11945_v11 = vld [vmem:[#allocation68_spill] sm:$0xff]  ;;  %v10110_v22 = vmul.f32 %v9923_v28, %v9417_v20  ;;  %v10120_v4 = vld [vmem:[#allocation2 + $0x77] sm:$0xff] }
 0x473   : > { %11933 = vst [vmem:[#allocation61_spill] sm:$0xff] %v10068_v32  ;;  %11937 = vst [vmem:[#allocation63_spill] sm:$0xff] %v10081_v27  ;;  %v10104_v7 = vmul.f32 %v10060_v10, %v11945_v11  ;;  %v10116_v17 = vld [vmem:[#allocation2 + $0x67] sm:$0xff]  ;;  %v10118_v55 = vld [vmem:[#allocation2 + $0x6f] sm:$0xff]  ;;  %v10130_v20 = vmul.f32 %v9935_v38, %v9425_v9  ;;  %v3124_v27 = vpack.c.bf16 %v9988_v43, %v9976_v16 }
 0x474   : > { %11939 = vst [vmem:[#allocation64_spill] sm:$0xff] %v10085_v18  ;;  %11942 = vst [vmem:[#allocation65_spill] sm:$0xff] %v10096_v56  ;;  %v10138_v18 = vld [vmem:[#allocation2 + $0x7f] sm:$0xff]  ;;  %v10148_v9 = vmul.f32 %v9962_v48, %v9477_v8  ;;  %v10154_v56 = vmul.f32 %v9966_v19, %v9445_v15  ;;  %v11955_v43 = vld [vmem:[#allocation88_spill] sm:$0xff] }
 0x475   : > { %11944 = vst [vmem:[#allocation66_spill] sm:$0xff] %v10100_v23  ;;  %11946 = vst [vmem:[#allocation113_spill] sm:$0xff] %v10110_v22  ;;  %v10158_v16 = vmul.f32 %v10038_v63, %v11955_v43  ;;  %v11957_v11 = vld [vmem:[#allocation80_spill] sm:$0xff]  ;;  %v11970_v8 = vld [vmem:[#allocation127_spill] sm:$0xff] }
 0x476   : > { %7362 = vmatmul.mubr.msk.bf16.gmra.mrb[12].mxu1 %vm56_vm0, %v3180_v33  ;;  %v11947_v33 = vld [vmem:[#allocation77_spill] sm:$0xff]  ;;  %11950 = vst [vmem:[#allocation119_spill] sm:$0xff] %v10130_v20  ;;  %11953 = vst [vmem:[#allocation67_spill] sm:$0xff] %v10148_v9  ;;  %v10162_v22 = vmul.f32 %v10060_v10, %v11957_v11  ;;  %v10203_v9 = vmul.f32 %v9851_v6, %v11970_v8  ;;  %v10222_v8 = vmul.f32 %v9863_v25, %v9549_v0  ;;  %v11990_v0 = vld [vmem:[#allocation128_spill] sm:$0xff] }
 0x477   : > { %7373 = vmatprep.mubr.msk.bf16.mxu1 %vm56_vm0, %v3121_v60  ;;  %v10114_v32 = vmul.f32 %v9925_v47, %v11947_v33  ;;  %v10126_v60 = vmul.f32 %v9933_v14, %v9457_v1  ;;  %v10134_v33 = vmul.f32 %v9948_v31, %v9471_v34  ;;  %v10144_v1 = vmul.f32 %v9960_v29, %v9435_v35  ;;  %v8101_v35 = vld [vmem:[%s8810_s18 + $0x168] sm:$0xff]   ;;  %v11961_v34 = vld [vmem:[#allocation81_spill] sm:$0xff]  ;;  %v12011_v57 = vld [vmem:[#allocation50_spill] sm:$0xff] }
 0x478   : > { %11954 = vst [vmem:[#allocation116_spill] sm:$0xff] %v10154_v56  ;;  %11956 = vst [vmem:[#allocation121_spill] sm:$0xff] %v10158_v16  ;;  %v10173_v15 = vmul.f32 %v10118_v55, %v11961_v34  ;;  %v11965_v20 = vld [vmem:[#allocation69_spill] sm:$0xff]  ;;  %v11968_v34 = vpack.c.bf16 %v9946_v45, %v9942_v62  ;;  %v11974_v62 = vpack.c.bf16 %v9958_v49, %v9954_v54  ;;  %v11978_v49 = vld [vmem:[#allocation123_spill] sm:$0xff] }
 0x479   : > { %11948 = vst [vmem:[#allocation117_spill] sm:$0xff] %v10114_v32  ;;  %11949 = vst [vmem:[#allocation114_spill] sm:$0xff] %v10126_v60  ;;  %v11959_v32 = vld [vmem:[#allocation94_spill] sm:$0xff]  ;;  %v11963_v60 = vld [vmem:[#allocation124_spill] sm:$0xff]  ;;  %v10181_v11 = vmul.f32 %v10116_v17, %v11965_v20 }
 0x47a   : > { %11951 = vst [vmem:[#allocation115_spill] sm:$0xff] %v10134_v33  ;;  %11952 = vst [vmem:[#allocation120_spill] sm:$0xff] %v10144_v1  ;;  %v10169_v23 = vmul.f32 %v10116_v17, %v11959_v32  ;;  %v10177_v43 = vmul.f32 %v10120_v4, %v11963_v60  ;;  %v11966_v33 = vld [vmem:[#allocation84_spill] sm:$0xff]  ;;  %v11969_v60 = vld [vmem:[#allocation70_spill] sm:$0xff] }
 0x47b   : > { %11958 = vst [vmem:[#allocation68_spill] sm:$0xff] %v10162_v22  ;;  %11962 = vst [vmem:[#allocation88_spill] sm:$0xff] %v10173_v15  ;;  %v10189_v1 = vmul.f32 %v10138_v18, %v11966_v33  ;;  %v10197_v20 = vmul.f32 %v10118_v55, %v11969_v60  ;;  %v11972_v32 = vld [vmem:[#allocation89_spill] sm:$0xff]  ;;  %v10227_v60 = vld [vmem:[#allocation2 + $0x88] sm:$0xff] }
 0x47c   : > { %11960 = vst [vmem:[#allocation77_spill] sm:$0xff] %v10169_v23  ;;  %11964 = vst [vmem:[#allocation80_spill] sm:$0xff] %v10177_v43  ;;  %v10207_v33 = vmul.f32 %v9853_v26, %v11972_v32  ;;  %v8102_v32 = vld [vmem:[%s8810_s18 + $0x170] sm:$0xff]   ;;  %v11986_v54 = vld [vmem:[#allocation42_spill] sm:$0xff] }
 0x47d   : > { %11967 = vst [vmem:[#allocation94_spill] sm:$0xff] %v10189_v1  ;;  %11971 = vst [vmem:[#allocation81_spill] sm:$0xff] %v10203_v9  ;;  %v11982_v37 = vld [vmem:[#allocation125_spill] sm:$0xff]  ;;  %v11998_v9 = vld [vmem:[#allocation139_spill] sm:$0xff] }
 0x47e   : > { %7374 = vmatmul.mubr.msk.bf16.vlgmr.msra.gmra.mrb[0].mxu1 %vm56_vm0, %v11968_v34  ;;  %11973 = vst [vmem:[#allocation124_spill] sm:$0xff] %v10207_v33  ;;  %v10218_v34 = vmul.f32 %v9861_v2, %v9540_v39  ;;  %11976 = vst [vmem:[#allocation84_spill] sm:$0xff] %v10222_v8  ;;  %v11980_v39 = vld [vmem:[#allocation131_spill] sm:$0xff]  ;;  %v11993_v8 = vld [vmem:[#allocation44_spill] sm:$0xff] }
 0x47f   : > { %7390 = vmatpush3.bf16.msra.mxu1 %v9915_v30  ;;  %7377 = vmatprep.mubr.msk.bf16.mxu1 %vm56_vm0, %v11974_v62  ;;  %v3125_v30 = vpack.c.bf16 %v10008_v52, %v9992_v51  ;;  %11977 = vst [vmem:[#allocation70_spill] sm:$0xff] %v10227_v60  ;;  %v10233_v62 = vmul.f32 %v9875_v36, %v11978_v49  ;;  %v11984_v51 = vld [vmem:[#allocation133_spill] sm:$0xff]  ;;  %v12007_v22 = vld [vmem:[#allocation47_spill] sm:$0xff]  ;;  %v12017_v3 = vld [vmem:[#allocation52_spill] sm:$0xff] }
 0x480   : > { %11975 = vst [vmem:[#allocation69_spill] sm:$0xff] %v10218_v34  ;;  %7391 = vmatprep.subr.bf16.mxu1 %v8101_v35  ;;  %v10237_v45 = vmul.f32 %v9877_v42, %v11980_v39  ;;  %v10243_v52 = vmul.f32 %v9880_v5, %v11982_v37  ;;  %v10247_v43 = vmul.f32 %v9882_v12, %v11984_v51  ;;  %v11988_v39 = vld [vmem:[#allocation135_spill] sm:$0xff]  ;;  %v11992_v37 = vld [vmem:[#allocation137_spill] sm:$0xff]  ;;  %v12019_v56 = vld [vmem:[#allocation136_spill] sm:$0xff] }
 0x481   : > { %11979 = vst [vmem:[#allocation127_spill] sm:$0xff] %v10233_v62  ;;  %v10251_v49 = vmul.f32 %v11986_v54, %v9527_v44  ;;  %v10257_v33 = vmul.f32 %v9898_v50, %v11988_v39  ;;  %v10261_v34 = vmul.f32 %v9901_v13, %v11990_v0  ;;  %v10265_v1 = vmul.f32 %v11993_v8, %v11992_v37  ;;  %v11995_v51 = vld [vmem:[#allocation129_spill] sm:$0xff]  ;;  %v11999_v62 = vld [vmem:[#allocation43_spill] sm:$0xff]  ;;  %v12003_v44 = vld [vmem:[#allocation132_spill] sm:$0xff] }
 0x482   : > { %11981 = vst [vmem:[#allocation89_spill] sm:$0xff] %v10237_v45  ;;  %11983 = vst [vmem:[#allocation123_spill] sm:$0xff] %v10243_v52  ;;  %v11996_v23 = vld [vmem:[#allocation41_spill] sm:$0xff]  ;;  %v10275_v39 = vmul.f32 %v11999_v62, %v11998_v9  ;;  %v12001_v45 = vld [vmem:[#allocation130_spill] sm:$0xff] }
 0x483   : > { %11985 = vst [vmem:[#allocation131_spill] sm:$0xff] %v10247_v43  ;;  %11987 = vst [vmem:[#allocation125_spill] sm:$0xff] %v10251_v49  ;;  %7392 = vmatpush3.bf16.msra.mxu1 %v8101_v35  ;;  %v10271_v15 = vmul.f32 %v11996_v23, %v11995_v51  ;;  %v10279_v0 = vmul.f32 %v10227_v60, %v12001_v45  ;;  %v8103_v16 = vld [vmem:[%s8810_s18 + $0x178] sm:$0xff]   ;;  %v12004_v52 = vld [vmem:[#allocation48_spill] sm:$0xff]  ;;  %v10300_v35 = vmul.f32 %v12011_v57, %v12010_v41 }
 0x484   : > { %11989 = vst [vmem:[#allocation133_spill] sm:$0xff] %v10257_v33  ;;  %11991 = vst [vmem:[#allocation42_spill] sm:$0xff] %v10261_v34  ;;  %7393 = vmatprep.subr.bf16.mxu1 %v8102_v32  ;;  %v10288_v51 = vmul.f32 %v12004_v52, %v12003_v44  ;;  %v12006_v43 = vld [vmem:[#allocation143_spill] sm:$0xff]  ;;  %v12013_v37 = vld [vmem:[#allocation134_spill] sm:$0xff]  ;;  %v10319_v41 = vmul.f32 %v9996_v53, %v12019_v56 }
 0x485   : > { %11994 = vst [vmem:[#allocation135_spill] sm:$0xff] %v10265_v1  ;;  %11997 = vst [vmem:[#allocation128_spill] sm:$0xff] %v10271_v15  ;;  %v10292_v9 = vmul.f32 %v12007_v22, %v12006_v43  ;;  %v12014_v34 = vld [vmem:[#allocation49_spill] sm:$0xff]  ;;  %v10307_v44 = vld [vmem:[#allocation2 + $0x81] sm:$0xff] }
 0x486   : > { %12000 = vst [vmem:[#allocation137_spill] sm:$0xff] %v10275_v39  ;;  %12002 = vst [vmem:[#allocation44_spill] sm:$0xff] %v10279_v0  ;;  %v10304_v1 = vmul.f32 %v12014_v34, %v12013_v37  ;;  %7378 = vmatmul.mubr.msk.bf16.gmra.mrb[4].mxu1 %vm56_vm0, %v3124_v27  ;;  %v10309_v43 = vld [vmem:[#allocation2 + $0x89] sm:$0xff]  ;;  %v12024_v33 = vld [vmem:[#allocation138_spill] sm:$0xff] }
 0x487   : > { %12005 = vst [vmem:[#allocation129_spill] sm:$0xff] %v10288_v51  ;;  %12008 = vst [vmem:[#allocation41_spill] sm:$0xff] %v10292_v9  ;;  %v12016_v15 = vld [vmem:[#allocation147_spill] sm:$0xff]  ;;  %v12021_v39 = vld [vmem:[#allocation148_spill] sm:$0xff]  ;;  %7381 = vmatprep.mubr.msk.bf16.mxu1 %vm56_vm0, %v3125_v30  ;;  %7394 = vmatpush3.bf16.msra.mxu1 %v8102_v32  ;;  %v10330_v45 = vmul.f32 %v10010_v24, %v12024_v33 }
 0x488   : > { %12012 = vst [vmem:[#allocation139_spill] sm:$0xff] %v10300_v35  ;;  %12015 = vst [vmem:[#allocation43_spill] sm:$0xff] %v10304_v1  ;;  %v10315_v0 = vmul.f32 %v12017_v3, %v12016_v15  ;;  %v12022_v37 = vld [vmem:[#allocation51_spill] sm:$0xff]  ;;  %v12025_v15 = vld [vmem:[#allocation149_spill] sm:$0xff]  ;;  %7395 = vmatprep.subr.bf16.mxu1 %v8103_v16 }
 0x489   : > { %12020 = vst [vmem:[#allocation132_spill] sm:$0xff] %v10319_v41  ;;  %v10323_v49 = vmul.f32 %v12022_v37, %v12021_v39  ;;  %v10334_v51 = vmul.f32 %v10012_v46, %v12025_v15  ;;  %v8104_v56 = vld [vmem:[%s8810_s18 + $0x180] sm:$0xff]   ;;  %v12026_v9 = vld [vmem:[#allocation140_spill] sm:$0xff] }
 0x48a   : > { %12018 = vst [vmem:[#allocation130_spill] sm:$0xff] %v10315_v0  ;;  %v10341_v30 = vmul.f32 %v10018_v40, %v12026_v9  ;;  %v12027_v32 = vld [vmem:[#allocation150_spill] sm:$0xff]  ;;  %v12030_v1 = vld [vmem:[#allocation151_spill] sm:$0xff]  ;;  %v12032_v39 = vld [vmem:[#allocation144_spill] sm:$0xff] }
 0x48b   : > { %12023 = vst [vmem:[#allocation48_spill] sm:$0xff] %v10323_v49  ;;  %v10345_v27 = vmul.f32 %v10020_v58, %v12027_v32  ;;  %v12029_v35 = vld [vmem:[#allocation142_spill] sm:$0xff]  ;;  %v10355_v60 = vmul.f32 %v10042_v61, %v12030_v1  ;;  %v10359_v0 = vmul.f32 %v10307_v44, %v12032_v39  ;;  %v12034_v9 = vld [vmem:[#allocation152_spill] sm:$0xff]  ;;  %7396 = vmatpush3.bf16.msra.mxu1 %v8103_v16  ;;  %v12037_v16 = vld [vmem:[#allocation71_spill] sm:$0xff] }
 0x48c   : > { %v10349_v33 = vmul.f32 %v10040_v59, %v12029_v35  ;;  %v10363_v41 = vmul.f32 %v10309_v43, %v12034_v9  ;;  %v3126_v39 = vpack.c.bf16 %v10104_v7, %v10090_v21  ;;  %7413 = vmatprep.subr.bf16.mxu1 %v8104_v56  ;;  %v3127_v9 = vpack.c.bf16 %v10197_v20, %v10181_v11  ;;  %v3483_v32 = vld [vmem:[#allocation2 + $0x9] sm:$0xff]  ;;  %v12039_v49 = vld [vmem:[#allocation73_spill] sm:$0xff]  ;;  %v12040_v1 = vld [vmem:[#allocation74_spill] sm:$0xff] }
 0x48d   : > { %12028 = vst [vmem:[#allocation143_spill] sm:$0xff] %v10345_v27  ;;  %12031 = vst [vmem:[#allocation47_spill] sm:$0xff] %v10355_v60  ;;  %v3119_v35 = vmul.f32 %v10120_v4, %v12037_v16  ;;  %v12038_v15 = vld [vmem:[#allocation72_spill] sm:$0xff]  ;;  %v12041_v21 = vld [vmem:[#allocation45_spill] sm:$0xff] }
 0x48e   : > { %12033 = vst [vmem:[#allocation146_spill] sm:$0xff] %v10359_v0  ;;  %12035 = vst [vmem:[#allocation50_spill] sm:$0xff] %v10363_v41  ;;  %7382 = vmatmul.mubr.msk.bf16.gmra.mrb[8].mxu1 %vm56_vm0, %v3126_v39  ;;  %v3120_v60 = vmul.f32 %v10138_v18, %v12038_v15  ;;  %v3499_v41 = vmul.f32 %v3483_v32, %v12039_v49  ;;  %v3500_v7 = vmul.f32 %v12041_v21, %v12040_v1  ;;  %v12042_v11 = vld [vmem:[#allocation75_spill] sm:$0xff]  ;;  %v12043_v39 = vld [vmem:[#allocation78_spill] sm:$0xff] }
 0x48f   : > { %7385 = vmatprep.mubr.msk.bf16.mxu1 %vm56_vm0, %v3127_v9  ;;  %v3501_v20 = vmul.f32 %v12004_v52, %v12042_v11  ;;  %v3502_v9 = vmul.f32 %v12007_v22, %v12043_v39  ;;  %v12044_v16 = vld [vmem:[#allocation76_spill] sm:$0xff]  ;;  %v12045_v49 = vld [vmem:[#allocation82_spill] sm:$0xff]  ;;  %v12046_v52 = vld [vmem:[#allocation79_spill] sm:$0xff] }
 0x490   : > { %v3128_v0 = vpack.c.bf16 %v3120_v60, %v3119_v35  ;;  %v3515_v27 = vpack.c.bf16 %v3500_v7, %v3499_v41  ;;  %v3503_v15 = vmul.f32 %v12011_v57, %v12044_v16  ;;  %v3504_v32 = vmul.f32 %v12014_v34, %v12045_v49  ;;  %v8105_v41 = vld [vmem:[%s8810_s18 + $0x188] sm:$0xff]   ;;  %v12047_v22 = vld [vmem:[#allocation86_spill] sm:$0xff] }
 0x491   : > { %v3516_v60 = vpack.c.bf16 %v3502_v9, %v3501_v20  ;;  %v3506_v57 = vmul.f32 %v9996_v53, %v12047_v22  ;;  %v12048_v1 = vld [vmem:[#allocation83_spill] sm:$0xff]  ;;  %v12049_v21 = vld [vmem:[#allocation90_spill] sm:$0xff]  ;;  %v12051_v39 = vld [vmem:[#allocation92_spill] sm:$0xff] }
 0x492   : > { %v3517_v35 = vpack.c.bf16 %v3504_v32, %v3503_v15  ;;  %v3507_v34 = vmul.f32 %v12022_v37, %v12048_v1  ;;  %v3508_v7 = vmul.f32 %v10010_v24, %v12049_v21  ;;  %v3510_v9 = vmul.f32 %v10018_v40, %v12051_v39  ;;  %v8108_v37 = vld [vmem:[%s8810_s18 + $0x1a0] sm:$0xff]   ;;  %v12059_v1 = vld [vmem:[#allocation101_spill] sm:$0xff] }
 0x493   : > { %v12052_v16 = vld [vmem:[#allocation91_spill] sm:$0xff] }
 0x494   : > { %v3519_v20 = vpack.c.bf16 %v3508_v7, %v3507_v34  ;;  %v3511_v24 = vmul.f32 %v10020_v58, %v12052_v16  ;;  %v12053_v15 = vld [vmem:[#allocation95_spill] sm:$0xff]  ;;  %v12057_v58 = vld [vmem:[#allocation46_spill] sm:$0xff]  ;;  %v3714_v34 = vmul.f32 %v9925_v47, %v12059_v1  ;;  %v12063_v47 = vld [vmem:[#allocation105_spill] sm:$0xff]  ;;  %v12075_v1 = vpack.c.bf16 %v9861_v2, %v9853_v26 }
 0x495   : > { %v3512_v49 = vmul.f32 %v10040_v59, %v12053_v15  ;;  %v12058_v22 = vld [vmem:[#allocation99_spill] sm:$0xff]  ;;  %v3718_v39 = vmul.f32 %v9960_v29, %v12063_v47  ;;  %v12067_v29 = vld [vmem:[#allocation109_spill] sm:$0xff]  ;;  %v12078_v26 = vpack.c.bf16 %v11986_v54, %v9882_v12  ;;  %v12083_v54 = vld [vmem:[#allocation54_spill] sm:$0xff] }
 0x496   : > { %7386 = vmatmul.mubr.msk.bf16.gmra.mrb[12].mxu1 %vm56_vm0, %v3128_v0  ;;  %v3505_v0 = vmul.f32 %v12017_v3, %v12046_v52  ;;  %v12050_v3 = vld [vmem:[#allocation87_spill] sm:$0xff]  ;;  %v12056_v52 = vld [vmem:[#allocation96_spill] sm:$0xff]  ;;  %v3713_v59 = vmul.f32 %v9923_v28, %v12058_v22  ;;  %v12072_v22 = vld [vmem:[#allocation110_spill] sm:$0xff] }
 0x497   : > { %7397 = vmatprep.mubr.msk.bf16.mxu1 %vm56_vm0, %v3515_v27  ;;  %v8106_v27 = vld [vmem:[%s8810_s18 + $0x190] sm:$0xff]   ;;  %v3509_v53 = vmul.f32 %v10012_v46, %v12050_v3  ;;  %v12061_v7 = vld [vmem:[#allocation103_spill] sm:$0xff]  ;;  %v12094_v47 = vld [vmem:[#allocation62_spill] sm:$0xff] }
 0x498   : > { %v3518_v11 = vpack.c.bf16 %v3506_v57, %v3505_v0  ;;  %v12054_v46 = vld [vmem:[#allocation93_spill] sm:$0xff]  ;;  %v3712_v0 = vmul.f32 %v12057_v58, %v12056_v52  ;;  %v8109_v3 = vld [vmem:[%s8810_s18 + $0x1a8] sm:$0xff]   ;;  %v8116_v2 = vld [vmem:[%s8810_s18 + $0x1e0] sm:$0xff]  }
 0x499   : > { %v3520_v32 = vpack.c.bf16 %v3510_v9, %v3509_v53  ;;  %v3513_v40 = vmul.f32 %v10042_v61, %v12054_v46  ;;  %v12060_v61 = vld [vmem:[#allocation98_spill] sm:$0xff]  ;;  %v8110_v9 = vld [vmem:[%s8810_s18 + $0x1b0] sm:$0xff]   ;;  %v12065_v16 = vld [vmem:[#allocation107_spill] sm:$0xff] }
 0x49a   : > { %v3715_v21 = vmul.f32 %v9933_v14, %v12060_v61  ;;  %v12064_v14 = vld [vmem:[#allocation102_spill] sm:$0xff]  ;;  %v12077_v61 = vpack.c.bf16 %v9880_v5, %v9877_v42  ;;  %v12082_v12 = vld [vmem:[#allocation53_spill] sm:$0xff] }
 0x49b   : > { %v12081_v42 = vld [vmem:[#allocation70_spill] sm:$0xff] }
 0x49c   : > { %v3729_v28 = vpack.c.bf16 %v3715_v21, %v3714_v34  ;;  %v8114_v34 = vld [vmem:[%s8810_s18 + $0x1d0] sm:$0xff]   ;;  %v3932_v5 = vpack.c.bf16 %v12081_v42, %v11999_v62  ;;  %v12084_v21 = vpack.c.bf16 %v12082_v12, %v12083_v54 }
 0x49d   : > { %v8118_v62 = vld [vmem:[%s8810_s18 + $0x1f0] sm:$0xff]  }
 0x49e   : > { %7398 = vmatmul.mubr.msk.bf16.vlgmr.msra.gmra.mrb[0].mxu1 %vm56_vm0, %v3516_v60  ;;  %v3521_v60 = vpack.c.bf16 %v3512_v49, %v3511_v24  ;;  %v12066_v24 = vld [vmem:[#allocation104_spill] sm:$0xff] }
 0x49f   : > { %7414 = vmatpush3.bf16.msra.mxu1 %v8104_v56  ;;  %7401 = vmatprep.mubr.msk.bf16.mxu1 %vm56_vm0, %v3517_v35  ;;  %v8107_v56 = vld [vmem:[%s8810_s18 + $0x198] sm:$0xff]   ;;  %v3721_v15 = vmul.f32 %v10038_v63, %v12066_v24  ;;  %v12069_v63 = vld [vmem:[#allocation111_spill] sm:$0xff] }
 0x4a0   : > { %7415 = vmatprep.subr.bf16.mxu1 %v8105_v41  ;;  %v12100_v24 = vld [vmem:[#allocation66_spill] sm:$0xff] }
 0x4a3   : > { %7416 = vmatpush3.bf16.msra.mxu1 %v8105_v41  ;;  %v12055_v41 = vld [vmem:[#allocation97_spill] sm:$0xff] }
 0x4a4   : > { %7417 = vmatprep.subr.bf16.mxu1 %v8106_v27  ;;  %v3514_v35 = vmul.f32 %v10307_v44, %v12055_v41  ;;  %v12070_v41 = vld [vmem:[#allocation108_spill] sm:$0xff] }
 0x4a6   : > { %7402 = vmatmul.mubr.msk.bf16.gmra.mrb[4].mxu1 %vm56_vm0, %v3518_v11  ;;  %v3522_v57 = vpack.c.bf16 %v3514_v35, %v3513_v40  ;;  %v3716_v11 = vmul.f32 %v9935_v38, %v12061_v7  ;;  %v3719_v38 = vmul.f32 %v9962_v48, %v12064_v14  ;;  %v3722_v48 = vmul.f32 %v10060_v10, %v12067_v29  ;;  %v12071_v10 = vld [vmem:[#allocation112_spill] sm:$0xff]  ;;  %v12104_v29 = vld [vmem:[#allocation122_spill] sm:$0xff] }
 0x4a7   : > { %7405 = vmatprep.mubr.msk.bf16.mxu1 %vm56_vm0, %v3519_v20  ;;  %7418 = vmatpush3.bf16.msra.mxu1 %v8106_v27  ;;  %v3728_v27 = vpack.c.bf16 %v3713_v59, %v3712_v0  ;;  %v3724_v40 = vmul.f32 %v10118_v55, %v12069_v63  ;;  %v3725_v35 = vmul.f32 %v10120_v4, %v12070_v41  ;;  %v10464_v0 = vld [vmem:[#allocation2 + $0x87] sm:$0xff]  ;;  %v12073_v4 = vld [vmem:[#allocation153_spill] sm:$0xff] }
 0x4a8   : > { %7419 = vmatprep.subr.bf16.mxu1 %v8107_v56  ;;  %v3731_v49 = vpack.c.bf16 %v3719_v38, %v3718_v39  ;;  %v3727_v55 = vmul.f32 %v10464_v0, %v12072_v22  ;;  %v8117_v7 = vld [vmem:[%s8810_s18 + $0x1e8] sm:$0xff]   ;;  %v12095_v39 = vld [vmem:[#allocation61_spill] sm:$0xff]  ;;  %v8120_v38 = vld [vmem:[%s8810_s18 + $0x200] sm:$0xff]  }
 0x4a9   : > { %v3734_v58 = vpack.c.bf16 %v3725_v35, %v3724_v40  ;;  %v12096_v14 = vpack.c.bf16 %v12094_v47, %v12095_v39  ;;  %v8121_v40 = vld [vmem:[%s8810_s18 + $0x208] sm:$0xff]   ;;  %v12109_v35 = vld [vmem:[#allocation114_spill] sm:$0xff]  ;;  %v12140_v39 = vld [vmem:[#allocation133_spill] sm:$0xff] }
 0x4aa   : > { %v12108_v41 = vld [vmem:[#allocation119_spill] sm:$0xff]  ;;  %v12114_v22 = vld [vmem:[#allocation116_spill] sm:$0xff] }
 0x4ab   : > { %7420 = vmatpush3.bf16.msra.mxu1 %v8107_v56  ;;  %v12062_v56 = vld [vmem:[#allocation100_spill] sm:$0xff] }
 0x4ac   : > { %7437 = vmatprep.subr.bf16.mxu1 %v8108_v37  ;;  %v3717_v20 = vmul.f32 %v9948_v31, %v12062_v56  ;;  %v3720_v31 = vmul.f32 %v9966_v19, %v12065_v16  ;;  %v8112_v19 = vld [vmem:[%s8810_s18 + $0x1c0] sm:$0xff]  }
 0x4ad   : > { %v12098_v16 = vld [vmem:[#allocation63_spill] sm:$0xff] }
 0x4ae   : > { %7406 = vmatmul.mubr.msk.bf16.gmra.mrb[8].mxu1 %vm56_vm0, %v3520_v32  ;;  %v3730_v53 = vpack.c.bf16 %v3717_v20, %v3716_v11  ;;  %v3732_v32 = vpack.c.bf16 %v3721_v15, %v3720_v31  ;;  %v8119_v20 = vld [vmem:[%s8810_s18 + $0x1f8] sm:$0xff]  }
 0x4af   : > { %7409 = vmatprep.mubr.msk.bf16.mxu1 %vm56_vm0, %v3521_v60  ;;  %v12068_v60 = vld [vmem:[#allocation106_spill] sm:$0xff]  ;;  %v12101_v15 = vld [vmem:[#allocation65_spill] sm:$0xff] }
 0x4b0   : > { %v3723_v46 = vmul.f32 %v10116_v17, %v12068_v60  ;;  %v3726_v17 = vmul.f32 %v10138_v18, %v12071_v10  ;;  %v12076_v18 = vpack.c.bf16 %v9875_v36, %v9863_v25  ;;  %v12079_v25 = vpack.c.bf16 %v9901_v13, %v9898_v50  ;;  %v12085_v50 = vld [vmem:[#allocation55_spill] sm:$0xff]  ;;  %v12086_v13 = vld [vmem:[#allocation56_spill] sm:$0xff] }
 0x4b1   : > { %v12080_v36 = vpack.c.bf16 %v11996_v23, %v11993_v8  ;;  %v12087_v11 = vpack.c.bf16 %v12085_v50, %v12086_v13  ;;  %v12088_v23 = vld [vmem:[#allocation59_spill] sm:$0xff]  ;;  %v12089_v8 = vld [vmem:[#allocation57_spill] sm:$0xff] }
 0x4b2   : > { %v3733_v52 = vpack.c.bf16 %v3723_v46, %v3722_v48  ;;  %v3735_v59 = vpack.c.bf16 %v3727_v55, %v3726_v17  ;;  %v12090_v56 = vpack.c.bf16 %v12088_v23, %v12089_v8  ;;  %v4137_v48 = vmul.f32 %v10309_v43, %v12104_v29  ;;  %v12105_v46 = vld [vmem:[#allocation117_spill] sm:$0xff]  ;;  %v12115_v55 = vld [vmem:[#allocation67_spill] sm:$0xff] }
 0x4b3   : > { %v8122_v43 = vld [vmem:[%s8810_s18 + $0x210] sm:$0xff]   ;;  %v8123_v17 = vld [vmem:[%s8810_s18 + $0x218] sm:$0xff]   ;;  %v8125_v13 = vld [vmem:[%s8810_s18 + $0x228] sm:$0xff]  }
 0x4b4   : > { %v12132_v23 = vld [vmem:[#allocation69_spill] sm:$0xff] }
 0x4b6   : > { %7410 = vmatmul.mubr.msk.bf16.gmra.mrb[12].mxu1 %vm56_vm0, %v3522_v57  ;;  %v12074_v57 = vpack.c.bf16 %v9851_v6, %v12073_v4  ;;  %v8115_v6 = vld [vmem:[%s8810_s18 + $0x1d8] sm:$0xff]   ;;  %v12117_v4 = vld [vmem:[#allocation68_spill] sm:$0xff] }
 0x4b7   : > { %7421 = vmatprep.mubr.msk.bf16.mxu1 %vm56_vm0, %v3728_v27  ;;  %v8113_v27 = vld [vmem:[%s8810_s18 + $0x1c8] sm:$0xff]  }
 0x4be   : > { %7422 = vmatmul.mubr.msk.bf16.vlgmr.msra.gmra.mrb[0].mxu1 %vm56_vm0, %v3729_v28  ;;  %v12091_v28 = vld [vmem:[#allocation58_spill] sm:$0xff] }
 0x4bf   : > { %7438 = vmatpush3.bf16.msra.mxu1 %v8108_v37  ;;  %7425 = vmatprep.mubr.msk.bf16.mxu1 %vm56_vm0, %v3730_v53  ;;  %v8111_v37 = vld [vmem:[%s8810_s18 + $0x1b8] sm:$0xff]  }
 0x4c0   : > { %7439 = vmatprep.subr.bf16.mxu1 %v8109_v3 }
 0x4c3   : > { %7440 = vmatpush3.bf16.msra.mxu1 %v8109_v3  ;;  %v12092_v3 = vld [vmem:[#allocation60_spill] sm:$0xff] }
 0x4c4   : > { %7441 = vmatprep.subr.bf16.mxu1 %v8110_v9  ;;  %v12093_v53 = vpack.c.bf16 %v12091_v28, %v12092_v3  ;;  %v8127_v28 = vld [vmem:[%s8810_s18 + $0x238] sm:$0xff]   ;;  %v12137_v3 = vld [vmem:[#allocation131_spill] sm:$0xff] }
 0x4c6   : > { %7426 = vmatmul.mubr.msk.bf16.gmra.mrb[4].mxu1 %vm56_vm0, %v3731_v49  ;;  %v12102_v49 = vpack.c.bf16 %v12100_v24, %v12101_v15  ;;  %v12146_v24 = vld [vmem:[#allocation137_spill] sm:$0xff]  ;;  %v12147_v15 = vld [vmem:[#allocation128_spill] sm:$0xff] }
 0x4c7   : > { %7429 = vmatprep.mubr.msk.bf16.mxu1 %vm56_vm0, %v3732_v32  ;;  %7442 = vmatpush3.bf16.msra.mxu1 %v8110_v9  ;;  %v12097_v9 = vld [vmem:[#allocation64_spill] sm:$0xff] }
 0x4c8   : > { %7443 = vmatprep.subr.bf16.mxu1 %v8111_v37  ;;  %v12099_v31 = vpack.c.bf16 %v12097_v9, %v12098_v16  ;;  %v12143_v9 = vld [vmem:[#allocation135_spill] sm:$0xff]  ;;  %v12144_v16 = vld [vmem:[#allocation42_spill] sm:$0xff] }
 0x4cb   : > { %7444 = vmatpush3.bf16.msra.mxu1 %v8111_v37  ;;  %v12103_v37 = vld [vmem:[#allocation118_spill] sm:$0xff] }
 0x4cc   : > { %7461 = vmatprep.subr.bf16.mxu1 %v8112_v19  ;;  %v4136_v32 = vmul.f32 %v10307_v44, %v12103_v37  ;;  %v12111_v44 = vld [vmem:[#allocation120_spill] sm:$0xff]  ;;  %v12149_v37 = vld [vmem:[#allocation141_spill] sm:$0xff] }
 0x4ce   : > { %7430 = vmatmul.mubr.msk.bf16.gmra.mrb[8].mxu1 %vm56_vm0, %v3733_v52  ;;  %v4145_v60 = vpack.c.bf16 %v4137_v48, %v4136_v32  ;;  %v12110_v52 = vpack.c.bf16 %v12108_v41, %v12109_v35  ;;  %v12150_v32 = vld [vmem:[#allocation44_spill] sm:$0xff]  ;;  %v12152_v48 = vld [vmem:[#allocation41_spill] sm:$0xff]  ;;  %v12159_v35 = vld [vmem:[#allocation130_spill] sm:$0xff] }
 0x4cf   : > { %7433 = vmatprep.mubr.msk.bf16.mxu1 %vm56_vm0, %v3734_v58  ;;  %v12112_v58 = vld [vmem:[#allocation115_spill] sm:$0xff]  ;;  %v12151_v29 = vpack.c.bf16 %v12149_v37, %v12150_v32  ;;  %v12158_v41 = vld [vmem:[#allocation132_spill] sm:$0xff] }
 0x4d0   : > { %v12113_v10 = vpack.c.bf16 %v12111_v44, %v12112_v58  ;;  %v12161_v44 = vld [vmem:[#allocation48_spill] sm:$0xff] }
 0x4d1   : > { %v12162_v58 = vpack.c.bf16 %v10330_v45, %v12161_v44 }
 0x4d6   : > { %7434 = vmatmul.mubr.msk.bf16.gmra.mrb[12].mxu1 %vm56_vm0, %v3735_v59  ;;  %v12116_v59 = vpack.c.bf16 %v12114_v22, %v12115_v55  ;;  %v12166_v22 = vld [vmem:[#allocation146_spill] sm:$0xff]  ;;  %v12167_v55 = vld [vmem:[#allocation47_spill] sm:$0xff] }
 0x4d7   : > { %7445 = vmatprep.mubr.msk.bf16.mxu1 %vm56_vm0, %v12074_v57  ;;  %v12118_v57 = vld [vmem:[#allocation121_spill] sm:$0xff] }
 0x4de   : > { %7446 = vmatmul.mubr.msk.bf16.vlgmr.msra.gmra.mrb[0].mxu1 %vm56_vm0, %v12075_v1  ;;  %v8124_v1 = vld [vmem:[%s8810_s18 + $0x220] sm:$0xff]  }
 0x4df   : > { %7462 = vmatpush3.bf16.msra.mxu1 %v8112_v19  ;;  %7449 = vmatprep.mubr.msk.bf16.mxu1 %vm56_vm0, %v12076_v18  ;;  %v12106_v19 = vld [vmem:[#allocation113_spill] sm:$0xff] }
 0x4e0   : > { %7463 = vmatprep.subr.bf16.mxu1 %v8113_v27  ;;  %v12107_v63 = vpack.c.bf16 %v12105_v46, %v12106_v19  ;;  %v4334_v18 = vld [vmem:[#allocation2 + $0x8f] sm:$0xff]  ;;  %v12155_v19 = vld [vmem:[#allocation43_spill] sm:$0xff] }
 0x4e3   : > { %7464 = vmatpush3.bf16.msra.mxu1 %v8113_v27  ;;  %v12119_v27 = vpack.c.bf16 %v12117_v4, %v12118_v57  ;;  %v12169_v4 = vld [vmem:[#allocation145_spill] sm:$0xff]  ;;  %v12170_v57 = vld [vmem:[#allocation50_spill] sm:$0xff] }
 0x4e4   : > { %7465 = vmatprep.subr.bf16.mxu1 %v8114_v34  ;;  %v12171_v45 = vpack.c.bf16 %v12169_v4, %v12170_v57 }
 0x4e6   : > { %7450 = vmatmul.mubr.msk.bf16.gmra.mrb[4].mxu1 %vm56_vm0, %v12077_v61 }
 0x4e7   : > { %7453 = vmatprep.mubr.msk.bf16.mxu1 %vm56_vm0, %v12078_v26  ;;  %7466 = vmatpush3.bf16.msra.mxu1 %v8114_v34  ;;  %v12120_v34 = vld [vmem:[#allocation88_spill] sm:$0xff]  ;;  %v12123_v26 = vld [vmem:[#allocation94_spill] sm:$0xff] }
 0x4e8   : > { %7467 = vmatprep.subr.bf16.mxu1 %v8115_v6 }
 0x4eb   : > { %7468 = vmatpush3.bf16.msra.mxu1 %v8115_v6  ;;  %v12121_v6 = vld [vmem:[#allocation77_spill] sm:$0xff] }
 0x4ec   : > { %7485 = vmatprep.subr.bf16.mxu1 %v8116_v2  ;;  %v12122_v61 = vpack.c.bf16 %v12120_v34, %v12121_v6 }
 0x4ee   : > { %7454 = vmatmul.mubr.msk.bf16.gmra.mrb[8].mxu1 %vm56_vm0, %v12079_v25 }
 0x4ef   : > { %7457 = vmatprep.mubr.msk.bf16.mxu1 %vm56_vm0, %v12080_v36  ;;  %v12126_v36 = vld [vmem:[#allocation126_spill] sm:$0xff] }
 0x4f0   : > { %v4349_v42 = vmul.f32 %v10464_v0, %v12126_v36 }
 0x4f6   : > { %7458 = vmatmul.mubr.msk.bf16.gmra.mrb[12].mxu1 %vm56_vm0, %v3932_v5  ;;  %v12127_v5 = vld [vmem:[#allocation85_spill] sm:$0xff] }
 0x4f7   : > { %7469 = vmatprep.mubr.msk.bf16.mxu1 %vm56_vm0, %v12084_v21  ;;  %v4350_v12 = vmul.f32 %v4334_v18, %v12127_v5  ;;  %v12128_v21 = vld [vmem:[#allocation124_spill] sm:$0xff] }
 0x4f9   : > { %v4358_v54 = vpack.c.bf16 %v4350_v12, %v4349_v42 }
 0x4fe   : > { %7470 = vmatmul.mubr.msk.bf16.vlgmr.msra.gmra.mrb[0].mxu1 %vm56_vm0, %v12087_v11  ;;  %v12131_v11 = vld [vmem:[#allocation84_spill] sm:$0xff] }
 0x4ff   : > { %7486 = vmatpush3.bf16.msra.mxu1 %v8116_v2  ;;  %7473 = vmatprep.mubr.msk.bf16.mxu1 %vm56_vm0, %v12090_v56  ;;  %v12124_v2 = vld [vmem:[#allocation80_spill] sm:$0xff]  ;;  %v12133_v8 = vpack.c.bf16 %v12131_v11, %v12132_v23  ;;  %v12134_v56 = vld [vmem:[#allocation89_spill] sm:$0xff] }
 0x500   : > { %7487 = vmatprep.subr.bf16.mxu1 %v8117_v7  ;;  %v12125_v25 = vpack.c.bf16 %v12123_v26, %v12124_v2 }
 0x503   : > { %7488 = vmatpush3.bf16.msra.mxu1 %v8117_v7  ;;  %v12129_v7 = vld [vmem:[#allocation81_spill] sm:$0xff] }
 0x504   : > { %7489 = vmatprep.subr.bf16.mxu1 %v8118_v62  ;;  %v12130_v50 = vpack.c.bf16 %v12128_v21, %v12129_v7 }
 0x506   : > { %7474 = vmatmul.mubr.msk.bf16.gmra.mrb[4].mxu1 %vm56_vm0, %v12093_v53  ;;  %v12138_v53 = vld [vmem:[#allocation123_spill] sm:$0xff] }
 0x507   : > { %7477 = vmatprep.mubr.msk.bf16.mxu1 %vm56_vm0, %v12096_v14  ;;  %7490 = vmatpush3.bf16.msra.mxu1 %v8118_v62  ;;  %v12135_v62 = vld [vmem:[#allocation127_spill] sm:$0xff]  ;;  %v12139_v47 = vpack.c.bf16 %v12137_v3, %v12138_v53  ;;  %v12141_v14 = vld [vmem:[#allocation125_spill] sm:$0xff] }
 0x508   : > { %7491 = vmatprep.subr.bf16.mxu1 %v8119_v20  ;;  %v12136_v0 = vpack.c.bf16 %v12134_v56, %v12135_v62 }
 0x50b   : > { %7492 = vmatpush3.bf16.msra.mxu1 %v8119_v20  ;;  %v8126_v20 = vld [vmem:[%s8810_s18 + $0x230] sm:$0xff]  }
 0x50c   : > { %7509 = vmatprep.subr.bf16.mxu1 %v8120_v38 }
 0x50e   : > { %7478 = vmatmul.mubr.msk.bf16.gmra.mrb[8].mxu1 %vm56_vm0, %v12099_v31  ;;  %v12145_v31 = vpack.c.bf16 %v12143_v9, %v12144_v16 }
 0x50f   : > { %7481 = vmatprep.mubr.msk.bf16.mxu1 %vm56_vm0, %v12102_v49  ;;  %v12148_v49 = vpack.c.bf16 %v12146_v24, %v12147_v15 }
 0x516   : > { %7482 = vmatmul.mubr.msk.bf16.gmra.mrb[12].mxu1 %vm56_vm0, %v4145_v60  ;;  %v12153_v60 = vld [vmem:[#allocation129_spill] sm:$0xff] }
 0x517   : > { %7493 = vmatprep.mubr.msk.bf16.mxu1 %vm56_vm0, %v12107_v63  ;;  %v12154_v46 = vpack.c.bf16 %v12152_v48, %v12153_v60  ;;  %v12156_v63 = vld [vmem:[#allocation139_spill] sm:$0xff] }
 0x51e   : > { %7494 = vmatmul.mubr.msk.bf16.vlgmr.msra.gmra.mrb[0].mxu1 %vm56_vm0, %v12110_v52  ;;  %v12160_v52 = vpack.c.bf16 %v12158_v41, %v12159_v35 }
 0x51f   : > { %7510 = vmatpush3.bf16.msra.mxu1 %v8120_v38  ;;  %7497 = vmatprep.mubr.msk.bf16.mxu1 %vm56_vm0, %v12113_v10  ;;  %v12142_v38 = vpack.c.bf16 %v12140_v39, %v12141_v14  ;;  %v12163_v10 = vpack.c.bf16 %v10341_v30, %v10334_v51 }
 0x520   : > { %7511 = vmatprep.subr.bf16.mxu1 %v8121_v40 }
 0x523   : > { %7512 = vmatpush3.bf16.msra.mxu1 %v8121_v40  ;;  %v12157_v40 = vpack.c.bf16 %v12155_v19, %v12156_v63 }
 0x524   : > { %7513 = vmatprep.subr.bf16.mxu1 %v8122_v43 }
 0x526   : > { %7498 = vmatmul.mubr.msk.bf16.gmra.mrb[4].mxu1 %vm56_vm0, %v12116_v59  ;;  %v12168_v59 = vpack.c.bf16 %v12166_v22, %v12167_v55 }
 0x527   : > { %7501 = vmatprep.mubr.msk.bf16.mxu1 %vm56_vm0, %v12119_v27  ;;  %7514 = vmatpush3.bf16.msra.mxu1 %v8122_v43  ;;  %v12164_v43 = vld [vmem:[#allocation143_spill] sm:$0xff] }
 0x528   : > { %7515 = vmatprep.subr.bf16.mxu1 %v8123_v17 }
 0x52b   : > { %7516 = vmatpush3.bf16.msra.mxu1 %v8123_v17  ;;  %v12165_v17 = vpack.c.bf16 %v10349_v33, %v12164_v43 }
 0x52c   : > { %7533 = vmatprep.subr.bf16.mxu1 %v8124_v1 }
 0x52e   : > { %7502 = vmatmul.mubr.msk.bf16.gmra.mrb[8].mxu1 %vm56_vm0, %v12122_v61 }
 0x52f   : > { %7505 = vmatprep.mubr.msk.bf16.mxu1 %vm56_vm0, %v12125_v25 }
 0x536   : > { %7506 = vmatmul.mubr.msk.bf16.gmra.mrb[12].mxu1 %vm56_vm0, %v4358_v54 }
 0x537   : > { %7517 = vmatprep.mubr.msk.bf16.mxu1 %vm56_vm0, %v12130_v50 }
 0x53e   : > { %7518 = vmatmul.mubr.msk.bf16.vlgmr.msra.gmra.mrb[0].mxu1 %vm56_vm0, %v12133_v8 }
 0x53f   : > { %7534 = vmatpush3.bf16.msra.mxu1 %v8124_v1  ;;  %7521 = vmatprep.mubr.msk.bf16.mxu1 %vm56_vm0, %v12136_v0 }
 0x540   : > { %7535 = vmatprep.subr.bf16.mxu1 %v8125_v13 }
 0x543   : > { %7536 = vmatpush3.bf16.msra.mxu1 %v8125_v13 }
 0x544   : > { %7537 = vmatprep.subr.bf16.mxu1 %v8126_v20 }
 0x546   : > { %7522 = vmatmul.mubr.msk.bf16.gmra.mrb[4].mxu1 %vm56_vm0, %v12139_v47 }
 0x547   : > { %7525 = vmatprep.mubr.msk.bf16.mxu1 %vm56_vm0, %v12142_v38  ;;  %7538 = vmatpush3.bf16.msra.mxu1 %v8126_v20 }
 0x548   : > { %7539 = vmatprep.subr.bf16.mxu1 %v8127_v28 }
 0x54b   : > { %7540 = vmatpush3.bf16.msra.mxu1 %v8127_v28 }
 0x54e   : > { %7526 = vmatmul.mubr.msk.bf16.gmra.mrb[8].mxu1 %vm56_vm0, %v12145_v31 }
 0x54f   : > { %7529 = vmatprep.mubr.msk.bf16.mxu1 %vm56_vm0, %v12148_v49 }
 0x556   : > { %7530 = vmatmul.mubr.msk.bf16.gmra.mrb[12].mxu1 %vm56_vm0, %v12151_v29 }
 0x557   : > { %7541 = vmatprep.mubr.msk.bf16.mxu1 %vm56_vm0, %v12154_v46 }
 0x55e   : > { %7542 = vmatmul.mubr.msk.bf16.vlgmr.msra.gmra.mrb[0].mxu1 %vm56_vm0, %v12157_v40 }
 0x55f   : > { %7545 = vmatprep.mubr.msk.bf16.mxu1 %vm56_vm0, %v12160_v52 }
 0x566   : > { %7546 = vmatmul.mubr.msk.bf16.gmra.mrb[4].mxu1 %vm56_vm0, %v12162_v58 }
 0x567   : > { %7549 = vmatprep.mubr.msk.bf16.mxu1 %vm56_vm0, %v12163_v10 }
 0x56e   : > { %7550 = vmatmul.mubr.msk.bf16.gmra.mrb[8].mxu1 %vm56_vm0, %v12165_v17 }
 0x56f   : > { %7553 = vmatprep.mubr.msk.bf16.mxu1 %vm56_vm0, %v12168_v59 }
 0x576   : > { %7554 = vmatmul.mubr.msk.bf16.gmra.mrb[12].mxu1 %vm56_vm0, %v12171_v45 }
 0x631   : > { %v7543_v27 = vpop.f32.mrb[0].mxu1 }
 0x632   : > { %v4879_v1 = vpop.f32.mrb[1].mxu1  ;;  %v4966_v6 = vsel %vm56_vm0, %v7543_v27, 0.0 }
 0x633   : > { %v7544_v51 = vpop.f32.mrb[2].mxu1  ;;  %v4963_v18 = vsel %vm56_vm0, %v4879_v1, 0.0 }
 0x634   : > { %v4882_v30 = vpop.f32.mrb[3].mxu1  ;;  %v4968_v26 = vsel %vm56_vm0, %v7544_v51, 0.0 }
 0x635   : > { %v4964_v33 = vsel %vm56_vm0, %v4882_v30, 0.0 }
 0x636   : > { %v4965_v34 = vadd.f32 %v4964_v33, %v4963_v18 }
 0x638   : > { %v4967_v61 = vadd.f32 %v4966_v6, %v4965_v34 }
 0x639   : > { %v7547_v2 = vpop.f32.mrb[4].mxu1 }
 0x63a   : > { %v4895_v25 = vpop.f32.mrb[5].mxu1  ;;  %v4969_v36 = vadd.f32 %v4968_v26, %v4967_v61  ;;  %v4974_v50 = vsel %vm56_vm0, %v7547_v2, 0.0 }
 0x63b   : > { %v4970_v42 = vsel %vm56_vm0, %v4895_v25, 0.0  ;;  %v7548_v5 = vpop.f32.mrb[6].mxu1 }
 0x63c   : > { %v4971_v12 = vadd.f32 %v4970_v42, %v4969_v36  ;;  %v4898_v54 = vpop.f32.mrb[7].mxu1  ;;  %v4976_v11 = vsel %vm56_vm0, %v7548_v5, 0.0 }
 0x63d   : > { %v4972_v21 = vsel %vm56_vm0, %v4898_v54, 0.0 }
 0x63e   : > { %v4973_v7 = vadd.f32 %v4972_v21, %v4971_v12 }
 0x640   : > { %v4975_v13 = vadd.f32 %v4974_v50, %v4973_v7 }
 0x641   : > { %v7551_v23 = vpop.f32.mrb[8].mxu1 }
 0x642   : > { %v4911_v8 = vpop.f32.mrb[9].mxu1  ;;  %v4977_v56 = vadd.f32 %v4976_v11, %v4975_v13  ;;  %v4982_v47 = vsel %vm56_vm0, %v7551_v23, 0.0 }
 0x643   : > { %v4978_v62 = vsel %vm56_vm0, %v4911_v8, 0.0  ;;  %v7552_v0 = vpop.f32.mrb[10].mxu1 }
 0x644   : > { %v4979_v20 = vadd.f32 %v4978_v62, %v4977_v56  ;;  %v4914_v28 = vpop.f32.mrb[11].mxu1  ;;  %v4984_v14 = vsel %vm56_vm0, %v7552_v0, 0.0 }
 0x645   : > { %v4980_v3 = vsel %vm56_vm0, %v4914_v28, 0.0 }
 0x646   : > { %v4981_v53 = vadd.f32 %v4980_v3, %v4979_v20 }
 0x648   : > { %v4983_v39 = vadd.f32 %v4982_v47, %v4981_v53 }
 0x649   : > { %v7555_v38 = vpop.f32.mrb[12].mxu1 }
 0x64a   : > { %v4927_v9 = vpop.f32.mrb[13].mxu1  ;;  %v4985_v16 = vadd.f32 %v4984_v14, %v4983_v39  ;;  %v4990_v29 = vsel %vm56_vm0, %v7555_v38, 0.0 }
 0x64b   : > { %v4986_v31 = vsel %vm56_vm0, %v4927_v9, 0.0  ;;  %v7556_v24 = vpop.f32.mrb[14].mxu1 }
 0x64c   : > { %v4987_v15 = vadd.f32 %v4986_v31, %v4985_v16  ;;  %v4930_v49 = vpop.f32.mrb[15].mxu1  ;;  %v4992_v60 = vsel %vm56_vm0, %v7556_v24, 0.0 }
 0x64d   : > { %v4988_v37 = vsel %vm56_vm0, %v4930_v49, 0.0 }
 0x64e   : > { %v4989_v32 = vadd.f32 %v4988_v37, %v4987_v15 }
 0x650   : > { %v4991_v48 = vadd.f32 %v4990_v29, %v4989_v32 }
 0x652   : > { %v4993_v46 = vadd.f32 %v4992_v60, %v4991_v48 }
 0x654   : > { %v4994_v19 = vrot.slane %v4993_v46, 4 }
 0x656   : > { %v4995_v63 = vadd.f32 %v4994_v19, %v4993_v46 }
 0x658   : > { %v4996_v40 = vrot.slane %v4995_v63, 2 }
 0x65a   : > { %v4997_v41 = vadd.f32 %v4996_v40, %v4995_v63 }
 0x65c   : > { %v4998_v35 = vrot.slane %v4997_v41, 1 }
 0x65e   : > { %v4999_v52 = vadd.f32 %v4998_v35, %v4997_v41 }
 0x660   : > { %v5000_v44 = vmul.f32 0.0078125, %v4999_v52 }
 0x662   : > { %v10664_v58 = vsub.f32 %v4879_v1, %v5000_v44  ;;  %v10666_v10 = vsub.f32 %v4882_v30, %v5000_v44  ;;  %v10668_v43 = vsub.f32 %v7543_v27, %v5000_v44  ;;  %v10670_v17 = vsub.f32 %v7544_v51, %v5000_v44 }
 0x663   : > { %v10672_v22 = vsub.f32 %v4895_v25, %v5000_v44  ;;  %v10674_v55 = vsub.f32 %v4898_v54, %v5000_v44  ;;  %v10676_v59 = vsub.f32 %v7547_v2, %v5000_v44  ;;  %v10678_v4 = vsub.f32 %v7548_v5, %v5000_v44 }
 0x664   : > { %v10680_v57 = vsub.f32 %v4911_v8, %v5000_v44  ;;  %v10682_v45 = vsub.f32 %v4914_v28, %v5000_v44  ;;  %v10684_v1 = vsub.f32 %v7551_v23, %v5000_v44  ;;  %v10686_v30 = vsub.f32 %v7552_v0, %v5000_v44 }
 0x665   : > { %v10688_v27 = vsub.f32 %v4927_v9, %v5000_v44  ;;  %v10690_v51 = vsub.f32 %v4930_v49, %v5000_v44  ;;  %v10692_v18 = vsub.f32 %v7555_v38, %v5000_v44  ;;  %v10694_v33 = vsub.f32 %v7556_v24, %v5000_v44 }
 0x666   : > { %v5017_v34 = vmul.f32 %v10664_v58, %v10664_v58  ;;  %v5018_v6 = vmul.f32 %v10666_v10, %v10666_v10  ;;  %v5019_v61 = vmul.f32 %v10668_v43, %v10668_v43  ;;  %v5020_v26 = vmul.f32 %v10670_v17, %v10670_v17 }
 0x667   : > { %v5021_v42 = vmul.f32 %v10672_v22, %v10672_v22  ;;  %v5022_v54 = vmul.f32 %v10674_v55, %v10674_v55  ;;  %v5023_v50 = vmul.f32 %v10676_v59, %v10676_v59  ;;  %v5024_v23 = vmul.f32 %v10678_v4, %v10678_v4 }
 0x668   : > { %v5033_v2 = vsel %vm56_vm0, %v5017_v34, 0.0  ;;  %v5034_v25 = vsel %vm56_vm0, %v5018_v6, 0.0  ;;  %v5036_v5 = vsel %vm56_vm0, %v5019_v61, 0.0  ;;  %v5038_v21 = vsel %vm56_vm0, %v5020_v26, 0.0 }
 0x669   : > { %v5035_v36 = vadd.f32 %v5034_v25, %v5033_v2  ;;  %v5040_v13 = vsel %vm56_vm0, %v5021_v42, 0.0  ;;  %v5042_v8 = vsel %vm56_vm0, %v5022_v54, 0.0  ;;  %v5025_v62 = vmul.f32 %v10680_v57, %v10680_v57  ;;  %v6794_v42 = vld [vmem:[%s9806_s22 + $0x2] sm:$0x1]  ;;  %v12172_v54 = vld [vmem:[#allocation24_spill] sm:$0xff] }
 0x66a   : > { %v5044_v0 = vsel %vm56_vm0, %v5023_v50, 0.0  ;;  %v5026_v28 = vmul.f32 %v10682_v45, %v10682_v45  ;;  %v5046_v3 = vsel %vm56_vm0, %v5024_v23, 0.0  ;;  %v5027_v47 = vmul.f32 %v10684_v1, %v10684_v1  ;;  %v6797_v23 = vld [vmem:[%s9812_s25 + $0x2] ss:$0 sm:$0xff] }
 0x66b   : > { %v5037_v12 = vadd.f32 %v5036_v5, %v5035_v36  ;;  %v5048_v39 = vsel %vm56_vm0, %v5025_v62, 0.0  ;;  %v5028_v38 = vmul.f32 %v10686_v30, %v10686_v30  ;;  %v5029_v31 = vmul.f32 %v10688_v27, %v10688_v27 }
 0x66c   : > { %v5050_v9 = vsel %vm56_vm0, %v5026_v28, 0.0  ;;  %v5052_v24 = vsel %vm56_vm0, %v5027_v47, 0.0  ;;  %v5030_v49 = vmul.f32 %v10690_v51, %v10690_v51  ;;  %v5031_v29 = vmul.f32 %v10692_v18, %v10692_v18 }
 0x66d   : > { %v5039_v7 = vadd.f32 %v5038_v21, %v5037_v12  ;;  %v5054_v37 = vsel %vm56_vm0, %v5028_v38, 0.0  ;;  %v5056_v48 = vsel %vm56_vm0, %v5029_v31, 0.0  ;;  %v5032_v46 = vmul.f32 %v10694_v33, %v10694_v33  ;;  %v12173_v31 = vld [vmem:[#allocation40_spill] sm:$0xff] }
 0x66e   : > { %v5058_v19 = vsel %vm56_vm0, %v5030_v49, 0.0  ;;  %v5060_v40 = vsel %vm56_vm0, %v5031_v29, 0.0  ;;  %v12177_v29 = vld [vmem:[#allocation36_spill] sm:$0xff] }
 0x66f   : > { %v5041_v11 = vadd.f32 %v5040_v13, %v5039_v7  ;;  %v5062_v35 = vsel %vm56_vm0, %v5032_v46, 0.0 }
 0x671   : > { %v5043_v56 = vadd.f32 %v5042_v8, %v5041_v11 }
 0x673   : > { %v5045_v20 = vadd.f32 %v5044_v0, %v5043_v56 }
 0x675   : > { %v5047_v53 = vadd.f32 %v5046_v3, %v5045_v20 }
 0x677   : > { %v5049_v14 = vadd.f32 %v5048_v39, %v5047_v53 }
 0x679   : > { %v5051_v16 = vadd.f32 %v5050_v9, %v5049_v14 }
 0x67b   : > { %v5053_v15 = vadd.f32 %v5052_v24, %v5051_v16  ;;  %v12174_v24 = vld [vmem:[#allocation39_spill] sm:$0xff] }
 0x67d   : > { %v5055_v32 = vadd.f32 %v5054_v37, %v5053_v15  ;;  %v12175_v15 = vld [vmem:[#allocation38_spill] sm:$0xff]  ;;  %v12176_v37 = vld [vmem:[#allocation37_spill] sm:$0xff] }
 0x67f   : > { %v5057_v60 = vadd.f32 %v5056_v48, %v5055_v32 }
 0x681   : > { %v5059_v63 = vadd.f32 %v5058_v19, %v5057_v60  ;;  %v12178_v60 = vld [vmem:[#allocation35_spill] sm:$0xff]  ;;  %v12179_v19 = vld [vmem:[#allocation34_spill] sm:$0xff] }
 0x683   : > { %v5061_v41 = vadd.f32 %v5060_v40, %v5059_v63  ;;  %v12180_v40 = vld [vmem:[#allocation33_spill] sm:$0xff] }
 0x685   : > { %v5063_v52 = vadd.f32 %v5062_v35, %v5061_v41  ;;  %v12181_v35 = vld [vmem:[#allocation32_spill] sm:$0xff] }
 0x687   : > { %v5064_v44 = vrot.slane %v5063_v52, 4 }
 0x689   : > { %v5065_v34 = vadd.f32 %v5064_v44, %v5063_v52  ;;  %v12182_v44 = vld [vmem:[#allocation31_spill] sm:$0xff] }
 0x68b   : > { %v5066_v6 = vrot.slane %v5065_v34, 2 }
 0x68d   : > { %v5067_v61 = vadd.f32 %v5066_v6, %v5065_v34  ;;  %v12183_v6 = vld [vmem:[#allocation30_spill] sm:$0xff] }
 0x68f   : > { %v5068_v26 = vrot.slane %v5067_v61, 1 }
 0x691   : > { %v5069_v2 = vadd.f32 %v5068_v26, %v5067_v61  ;;  %v12184_v26 = vld [vmem:[#allocation29_spill] sm:$0xff] }
 0x693   : > { %v5070_v25 = vmul.f32 0.0078125, %v5069_v2 }
 0x695   : > { %v5071_v36 = vadd.f32 1e-05, %v5070_v25  ;;  %v12185_v25 = vld [vmem:[#allocation28_spill] sm:$0xff] }
 0x697   : > { %8130 = vrsqrt.f32 %v5071_v36 }
 0x6a1   : > { %v8131_v5 = vpop.eup %8130 }
 0x6a2   : > { %v5073_v12 = vmul.f32 %v8131_v5, %v6794_v42  ;;  %v12186_v42 = vld [vmem:[#allocation27_spill] sm:$0xff] }
 0x6a4   : > { %v5077_v21 = vrot.slane %v5073_v12, %v12172_v54  ;;  %v12187_v12 = vld [vmem:[#allocation26_spill] sm:$0xff] }
 0x6a6   : > { %v5078_v7 = vmul.f32 %v5077_v21, %v10664_v58  ;;  %v5079_v50 = vmul.f32 %v5077_v21, %v10666_v10  ;;  %v5080_v13 = vmul.f32 %v5077_v21, %v10668_v43  ;;  %v5081_v11 = vmul.f32 %v5077_v21, %v10670_v17 }
 0x6a7   : > { %v5082_v8 = vmul.f32 %v5077_v21, %v10672_v22  ;;  %v5083_v56 = vmul.f32 %v5077_v21, %v10674_v55  ;;  %v5084_v62 = vmul.f32 %v5077_v21, %v10676_v59  ;;  %v5085_v0 = vmul.f32 %v5077_v21, %v10678_v4 }
 0x6a8   : > { %v5086_v20 = vmul.f32 %v5077_v21, %v10680_v57  ;;  %v5087_v28 = vmul.f32 %v5077_v21, %v10682_v45  ;;  %v5088_v58 = vmul.f32 %v5077_v21, %v10684_v1  ;;  %v5089_v10 = vmul.f32 %v5077_v21, %v10686_v30 }
 0x6a9   : > { %v5090_v43 = vmul.f32 %v5077_v21, %v10688_v27  ;;  %v5091_v17 = vmul.f32 %v5077_v21, %v10690_v51  ;;  %v5092_v22 = vmul.f32 %v5077_v21, %v10692_v18  ;;  %v5093_v55 = vmul.f32 %v5077_v21, %v10694_v33  ;;  %v12188_v21 = vld [vmem:[#allocation25_spill] sm:$0xff] }
 0x6aa   : > { %v5098_v3 = vadd.f32 %v6797_v23, %v5078_v7  ;;  %v5099_v59 = vadd.f32 %v6797_v23, %v5079_v50  ;;  %v5100_v53 = vadd.f32 %v6797_v23, %v5080_v13  ;;  %v5101_v4 = vadd.f32 %v6797_v23, %v5081_v11 }
 0x6ab   : > { %v5102_v47 = vadd.f32 %v6797_v23, %v5082_v8  ;;  %v5103_v57 = vadd.f32 %v6797_v23, %v5083_v56  ;;  %v5104_v39 = vadd.f32 %v6797_v23, %v5084_v62  ;;  %v5105_v45 = vadd.f32 %v6797_v23, %v5085_v0 }
 0x6ac   : > { %v5106_v14 = vadd.f32 %v6797_v23, %v5086_v20  ;;  %v5107_v1 = vadd.f32 %v6797_v23, %v5087_v28  ;;  %v5108_v38 = vadd.f32 %v6797_v23, %v5088_v58  ;;  %v5109_v30 = vadd.f32 %v6797_v23, %v5089_v10 }
 0x6ad   : > { %v5110_v9 = vadd.f32 %v6797_v23, %v5090_v43  ;;  %v5111_v27 = vadd.f32 %v6797_v23, %v5091_v17  ;;  %v5112_v16 = vadd.f32 %v6797_v23, %v5092_v22  ;;  %v5113_v51 = vadd.f32 %v6797_v23, %v5093_v55 }
 0x6ae   : > { %v5114_v18 = vadd.f32 %v12173_v31, %v5098_v3  ;;  %v5115_v33 = vadd.f32 %v12174_v24, %v5099_v59  ;;  %v10766_v49 = vadd.f32 %v12175_v15, %v5100_v53  ;;  %v10769_v32 = vadd.f32 %v12176_v37, %v5101_v4 }
 0x6af   : > { %v10772_v48 = vadd.f32 %v12177_v29, %v5102_v47  ;;  %v10775_v46 = vadd.f32 %v12178_v60, %v5103_v57  ;;  %v10778_v63 = vadd.f32 %v12179_v19, %v5104_v39  ;;  %v10781_v41 = vadd.f32 %v12180_v40, %v5105_v45  ;;  %v8159_v47 = vld [vmem:[%s11445_s6] sm:$0xff] (%p10822_p0)   ;;  %v8160_v45 = vld [vmem:[%s11445_s6 + $0x8] sm:$0xff] (%p10822_p0)  }
 0x6b0   : > { %v10784_v52 = vadd.f32 %v12181_v35, %v5106_v14  ;;  %v10787_v34 = vadd.f32 %v12182_v44, %v5107_v1  ;;  %v10790_v61 = vadd.f32 %v12183_v6, %v5108_v38  ;;  %v10793_v2 = vadd.f32 %v12184_v26, %v5109_v30  ;;  %7557 = vmatprep.subr.bf16.mxu0 (%p10822_p0), %v8159_v47  ;;  %v8161_v14 = vld [vmem:[%s11445_s6 + $0x10] sm:$0xff] (%p10822_p0)  }
 0x6b1   : > { %v10796_v36 = vadd.f32 %v12185_v25, %v5110_v9  ;;  %v10799_v5 = vadd.f32 %v12186_v42, %v5111_v27  ;;  %v10802_v54 = vadd.f32 %v12187_v12, %v5112_v16  ;;  %v10805_v7 = vadd.f32 %v12188_v21, %v5113_v51  ;;  %7558 = vmatpush3.bf16.msra.mxu0 (%p10822_p0), %v8159_v47 }
 0x6b2   : > { %v5130_v50 = vmax.f32 %v5114_v18, 0.0   ;;  %v5131_v13 = vmax.f32 %v5115_v33, 0.0   ;;  %v5132_v11 = vmax.f32 %v10766_v49, 0.0   ;;  %v5133_v8 = vmax.f32 %v10769_v32, 0.0   ;;  %7559 = vmatprep.subr.bf16.mxu0 (%p10822_p0), %v8160_v45 }
 0x6b3   : > { %v5134_v56 = vmax.f32 %v10772_v48, 0.0   ;;  %v5135_v62 = vmax.f32 %v10775_v46, 0.0   ;;  %v5136_v0 = vmax.f32 %v10778_v63, 0.0   ;;  %v5137_v20 = vmax.f32 %v10781_v41, 0.0   ;;  %469 = sbr.rel (!%p10822_p0) target bundleno = 364 (0x16c), region = 118 }
 0x6b4   : > { %v5138_v28 = vmax.f32 %v10784_v52, 0.0   ;;  %v5139_v58 = vmax.f32 %v10787_v34, 0.0   ;;  %v5140_v10 = vmax.f32 %v10790_v61, 0.0   ;;  %v5141_v17 = vmax.f32 %v10793_v2, 0.0  }
 0x6b5   : > { %v5142_v55 = vmax.f32 %v10796_v36, 0.0   ;;  %v5143_v3 = vmax.f32 %v10799_v5, 0.0   ;;  %v5144_v59 = vmax.f32 %v10802_v54, 0.0   ;;  %v5145_v4 = vmax.f32 %v10805_v7, 0.0   ;;  %7560 = vmatpush3.bf16.msra.mxu0 (%p10822_p0), %v8160_v45 }
 0x6b6   : > { %v12194_v40 = vmov %v5141_v17  ;;  %v12195_v39 = vmov %v5140_v10  ;;  %v12196_v29 = vmov %v5139_v58  ;;  %v12197_v27 = vmov %v5138_v28  ;;  %7561 = vmatprep.subr.bf16.mxu0 (%p10822_p0), %v8161_v14 }
 0x6b7   : > { %v12190_v44 = vmov %v5145_v4  ;;  %v12191_v43 = vmov %v5144_v59  ;;  %v12192_v42 = vmov %v5143_v3  ;;  %v12193_v41 = vmov %v5142_v55 }
 0x6b8   : > { %v12198_v26 = vmov %v5137_v20  ;;  %v12199_v25 = vmov %v5136_v0  ;;  %v12200_v24 = vmov %v5135_v62  ;;  %v12201_v23 = vmov %v5134_v56 }
 0x6b9   : > { %v12202_v53 = vmov %v5133_v8  ;;  %v12203_v22 = vmov %v5132_v11  ;;  %v12204_v46 = vmov %v5131_v13  ;;  %v12205_v21 = vmov %v5130_v50  ;;  %v8162_v23 = vld [vmem:[%s11445_s6 + $0x18] sm:$0xff] (%p10822_p0)   ;;  %7562 = vmatpush3.bf16.msra.mxu0 (%p10822_p0), %v8161_v14 }
 0x6ba   :  { %v5146_v57 = vpack.c.bf16 %v5131_v13, %v5130_v50  ;;  %7563 = vmatprep.subr.bf16.mxu0 %v8162_v23  ;;  %v5147_v43 = vpack.c.bf16 %v5133_v8, %v5132_v11  ;;  %v5148_v22 = vpack.c.bf16 %v5135_v62, %v5134_v56  ;;  %v5149_v53 = vpack.c.bf16 %v5137_v20, %v5136_v0 }
 0x6bb   :  { %v5150_v39 = vpack.c.bf16 %v5139_v58, %v5138_v28  ;;  %v5151_v1 = vpack.c.bf16 %v5141_v17, %v5140_v10  ;;  %v5152_v38 = vpack.c.bf16 %v5143_v3, %v5142_v55  ;;  %v5153_v30 = vpack.c.bf16 %v5145_v4, %v5144_v59 }
 0x6bc   :  { %7565 = vmatprep.mubr.msk.bf16.mxu0 %vm56_vm0, %v5146_v57  ;;  %v8346_v9 = vmov 2  }
 0x6bd   :  { %7564 = vmatpush3.bf16.msra.mxu0 %v8162_v23  ;;  %8134 = vset.pattern.permute.xlu1 %v8346_v9 }
 0x6be   :  { %8133 = vset.pattern.permute.xlu0 %v8346_v9 }
 0x6c0   :  { %7566 = vmatmul.mubr.msk.bf16.vlgmr.msra.gmra.mrb[0].mxu0 %vm56_vm0, %v5147_v43 }
 0x6c1   :  { %7569 = vmatprep.mubr.msk.bf16.mxu0 %vm56_vm0, %v5148_v22 }
 0x6c8   :  { %7570 = vmatmul.mubr.msk.bf16.gmra.mrb[4].mxu0 %vm56_vm0, %v5149_v53 }
 0x6c9   :  { %7573 = vmatprep.mubr.msk.bf16.mxu0 %vm56_vm0, %v5150_v39 }
 0x6d0   :  { %7574 = vmatmul.mubr.msk.bf16.gmra.mrb[8].mxu0 %vm56_vm0, %v5151_v1 }
 0x6d1   :  { %7577 = vmatprep.mubr.msk.bf16.mxu0 %vm56_vm0, %v5152_v38 }
 0x6d8   :  { %7578 = vmatmul.mubr.msk.bf16.gmra.mrb[12].mxu0 %vm56_vm0, %v5153_v30 }
 0x793   :  { %v7567_v27 = vpop.f32.mrb[0].mxu0 }
 0x794   :  { %v5244_v16 = vpop.f32.mrb[1].mxu0  ;;  %v5313_v15 = vsel %vm5309_vm3, %v7567_v27, 0.0 }
 0x795   :  { %v7568_v51 = vpop.f32.mrb[2].mxu0  ;;  %v5310_v18 = vsel %vm5309_vm3, %v5244_v16, 0.0 }
 0x796   :  { %v5247_v31 = vpop.f32.mrb[3].mxu0  ;;  %v5315_v37 = vsel %vm5309_vm3, %v7568_v51, 0.0 }
 0x797   :  { %v5311_v24 = vsel %vm5309_vm3, %v5247_v31, 0.0 }
 0x798   :  { %v5312_v33 = vadd.f32 %v5311_v24, %v5310_v18 }
 0x79a   :  { %v5314_v49 = vadd.f32 %v5313_v15, %v5312_v33 }
 0x79b   :  { %v7571_v32 = vpop.f32.mrb[4].mxu0 }
 0x79c   :  { %v5260_v29 = vpop.f32.mrb[5].mxu0  ;;  %v5316_v48 = vadd.f32 %v5315_v37, %v5314_v49  ;;  %v5321_v35 = vsel %vm5309_vm3, %v7571_v32, 0.0 }
 0x79d   :  { %v5317_v60 = vsel %vm5309_vm3, %v5260_v29, 0.0  ;;  %v7572_v46 = vpop.f32.mrb[6].mxu0 }
 0x79e   :  { %v5318_v19 = vadd.f32 %v5317_v60, %v5316_v48  ;;  %v5263_v63 = vpop.f32.mrb[7].mxu0  ;;  %v5323_v44 = vsel %vm5309_vm3, %v7572_v46, 0.0 }
 0x79f   :  { %v5319_v40 = vsel %vm5309_vm3, %v5263_v63, 0.0 }
 0x7a0   :  { %v5320_v41 = vadd.f32 %v5319_v40, %v5318_v19 }
 0x7a2   :  { %v5322_v52 = vadd.f32 %v5321_v35, %v5320_v41 }
 0x7a3   :  { %v7575_v34 = vpop.f32.mrb[8].mxu0 }
 0x7a4   :  { %v5276_v6 = vpop.f32.mrb[9].mxu0  ;;  %v5324_v61 = vadd.f32 %v5323_v44, %v5322_v52  ;;  %v5329_v12 = vsel %vm5309_vm3, %v7575_v34, 0.0 }
 0x7a5   :  { %v5325_v26 = vsel %vm5309_vm3, %v5276_v6, 0.0  ;;  %v7576_v2 = vpop.f32.mrb[10].mxu0 }
 0x7a6   :  { %v5326_v25 = vadd.f32 %v5325_v26, %v5324_v61  ;;  %v5279_v36 = vpop.f32.mrb[11].mxu0  ;;  %v5331_v21 = vsel %vm5309_vm3, %v7576_v2, 0.0 }
 0x7a7   :  { %v5327_v42 = vsel %vm5309_vm3, %v5279_v36, 0.0 }
 0x7a8   :  { %v5328_v5 = vadd.f32 %v5327_v42, %v5326_v25 }
 0x7aa   :  { %v5330_v54 = vadd.f32 %v5329_v12, %v5328_v5 }
 0x7ab   :  { %v7579_v7 = vpop.f32.mrb[12].mxu0 }
 0x7ac   :  { %v5292_v50 = vpop.f32.mrb[13].mxu0  ;;  %v5332_v13 = vadd.f32 %v5331_v21, %v5330_v54  ;;  %v5337_v28 = vsel %vm5309_vm3, %v7579_v7, 0.0 }
 0x7ad   :  { %v5333_v11 = vsel %vm5309_vm3, %v5292_v50, 0.0  ;;  %v7580_v8 = vpop.f32.mrb[14].mxu0 }
 0x7ae   :  { %v5334_v56 = vadd.f32 %v5333_v11, %v5332_v13  ;;  %v5295_v62 = vpop.f32.mrb[15].mxu0  ;;  %v5339_v10 = vsel %vm5309_vm3, %v7580_v8, 0.0 }
 0x7af   :  { %v5335_v0 = vsel %vm5309_vm3, %v5295_v62, 0.0 }
 0x7b0   :  { %v5336_v20 = vadd.f32 %v5335_v0, %v5334_v56 }
 0x7b2   :  { %v5338_v58 = vadd.f32 %v5337_v28, %v5336_v20 }
 0x7b4   :  { %v5340_v17 = vadd.f32 %v5339_v10, %v5338_v58 }
 0x7b6   :  { %v5341_v55 = vrot.slane %v5340_v17, 4 }
 0x7b8   :  { %v5342_v3 = vadd.f32 %v5341_v55, %v5340_v17 }
 0x7ba   :  { %v5343_v59 = vrot.slane %v5342_v3, 2 }
 0x7bc   :  { %v5344_v4 = vadd.f32 %v5343_v59, %v5342_v3 }
 0x7be   :  { %v5345_v47 = vrot.slane %v5344_v4, 1 }
 0x7c0   :  { %v5346_v57 = vadd.f32 %v5345_v47, %v5344_v4 }
 0x7c2   :  { %v5347_v45 = vmul.f32 0.0078125, %v5346_v57 }
 0x7c4   :  { %v10900_v14 = vsub.f32 %v5244_v16, %v5347_v45  ;;  %v10902_v23 = vsub.f32 %v5247_v31, %v5347_v45  ;;  %v10904_v43 = vsub.f32 %v7567_v27, %v5347_v45  ;;  %v10906_v22 = vsub.f32 %v7568_v51, %v5347_v45 }
 0x7c5   :  { %v10908_v53 = vsub.f32 %v5260_v29, %v5347_v45  ;;  %v10910_v39 = vsub.f32 %v5263_v63, %v5347_v45  ;;  %v10912_v1 = vsub.f32 %v7571_v32, %v5347_v45  ;;  %v10914_v38 = vsub.f32 %v7572_v46, %v5347_v45 }
 0x7c6   :  { %v10916_v30 = vsub.f32 %v5276_v6, %v5347_v45  ;;  %v10918_v18 = vsub.f32 %v5279_v36, %v5347_v45  ;;  %v10920_v16 = vsub.f32 %v7575_v34, %v5347_v45  ;;  %v10922_v31 = vsub.f32 %v7576_v2, %v5347_v45 }
 0x7c7   :  { %v10924_v27 = vsub.f32 %v5292_v50, %v5347_v45  ;;  %v10926_v51 = vsub.f32 %v5295_v62, %v5347_v45  ;;  %v10928_v24 = vsub.f32 %v7579_v7, %v5347_v45  ;;  %v10930_v33 = vsub.f32 %v7580_v8, %v5347_v45 }
 0x7c8   :  { %v5364_v15 = vmul.f32 %v10900_v14, %v10900_v14  ;;  %v5365_v49 = vmul.f32 %v10902_v23, %v10902_v23  ;;  %v5366_v37 = vmul.f32 %v10904_v43, %v10904_v43  ;;  %v5373_v32 = vmul.f32 %v10918_v18, %v10918_v18 }
 0x7c9   :  { %v5374_v29 = vmul.f32 %v10920_v16, %v10920_v16  ;;  %v5367_v48 = vmul.f32 %v10906_v22, %v10906_v22  ;;  %v5375_v60 = vmul.f32 %v10922_v31, %v10922_v31  ;;  %v5376_v46 = vmul.f32 %v10924_v27, %v10924_v27 }
 0x7ca   :  { %v5377_v19 = vmul.f32 %v10926_v51, %v10926_v51  ;;  %v5378_v63 = vmul.f32 %v10928_v24, %v10928_v24  ;;  %v5379_v40 = vmul.f32 %v10930_v33, %v10930_v33  ;;  %v5380_v41 = vsel %vm5309_vm3, %v5364_v15, 0.0 }
 0x7cb   :  { %v5381_v35 = vsel %vm5309_vm3, %v5365_v49, 0.0  ;;  %v5368_v44 = vmul.f32 %v10908_v53, %v10908_v53  ;;  %v5383_v34 = vsel %vm5309_vm3, %v5366_v37, 0.0  ;;  %v5397_v6 = vsel %vm5309_vm3, %v5373_v32, 0.0 }
 0x7cc   :  { %v5382_v52 = vadd.f32 %v5381_v35, %v5380_v41  ;;  %v5399_v61 = vsel %vm5309_vm3, %v5374_v29, 0.0  ;;  %v5401_v2 = vsel %vm5309_vm3, %v5375_v60, 0.0  ;;  %v5403_v25 = vsel %vm5309_vm3, %v5376_v46, 0.0  ;;  %v12206_v41 = vld [vmem:[#allocation24_spill] sm:$0xff] }
 0x7cd   :  { %v5405_v36 = vsel %vm5309_vm3, %v5377_v19, 0.0  ;;  %v5369_v42 = vmul.f32 %v10910_v39, %v10910_v39  ;;  %v5385_v5 = vsel %vm5309_vm3, %v5367_v48, 0.0  ;;  %v5407_v12 = vsel %vm5309_vm3, %v5378_v63, 0.0  ;;  %v5307_v19 = vld [vmem:[%s11446_s7] sm:$0x1] }
 0x7ce   :  { %v5384_v26 = vadd.f32 %v5383_v34, %v5382_v52  ;;  %v5409_v54 = vsel %vm5309_vm3, %v5379_v40, 0.0  ;;  %v5370_v7 = vmul.f32 %v10912_v1, %v10912_v1  ;;  %v5387_v50 = vsel %vm5309_vm3, %v5368_v44, 0.0  ;;  %v6810_v52 = vld [vmem:[%s11447_s8] ss:$0 sm:$0xff] }
 0x7cf   :  { %v5371_v11 = vmul.f32 %v10914_v38, %v10914_v38  ;;  %v5389_v8 = vsel %vm5309_vm3, %v5369_v42, 0.0  ;;  %v5372_v62 = vmul.f32 %v10916_v30, %v10916_v30 }
 0x7d0   :  { %v5386_v21 = vadd.f32 %v5385_v5, %v5384_v26  ;;  %v5391_v0 = vsel %vm5309_vm3, %v5370_v7, 0.0 }
 0x7d1   :  { %v5393_v28 = vsel %vm5309_vm3, %v5371_v11, 0.0  ;;  %v5395_v10 = vsel %vm5309_vm3, %v5372_v62, 0.0 }
 0x7d2   :  { %v5388_v13 = vadd.f32 %v5387_v50, %v5386_v21 }
 0x7d4   :  { %v5390_v56 = vadd.f32 %v5389_v8, %v5388_v13 }
 0x7d6   :  { %v5392_v20 = vadd.f32 %v5391_v0, %v5390_v56 }
 0x7d8   :  { %v5394_v58 = vadd.f32 %v5393_v28, %v5392_v20 }
 0x7da   :  { %v5396_v17 = vadd.f32 %v5395_v10, %v5394_v58 }
 0x7dc   :  { %v5398_v55 = vadd.f32 %v5397_v6, %v5396_v17 }
 0x7de   :  { %v5400_v3 = vadd.f32 %v5399_v61, %v5398_v55 }
 0x7e0   :  { %v5402_v59 = vadd.f32 %v5401_v2, %v5400_v3 }
 0x7e2   :  { %v5404_v4 = vadd.f32 %v5403_v25, %v5402_v59 }
 0x7e4   :  { %v5406_v47 = vadd.f32 %v5405_v36, %v5404_v4 }
 0x7e6   :  { %v5408_v57 = vadd.f32 %v5407_v12, %v5406_v47 }
 0x7e8   :  { %v5410_v45 = vadd.f32 %v5409_v54, %v5408_v57  ;;  %v6113_v57 = vld [vmem:[%s11452_s13 + $0x80] sm:$0xff] }
 0x7ea   :  { %v5411_v15 = vrot.slane %v5410_v45, 4 }
 0x7ec   :  { %v5412_v49 = vadd.f32 %v5411_v15, %v5410_v45  ;;  %v6114_v45 = vld [vmem:[%s11452_s13 + $0x88] sm:$0xff] }
 0x7ed   :  { %v7581_v15 = vpack.c.bf16 %v6114_v45, %v6113_v57 }
 0x7ee   :  { %v5413_v37 = vrot.slane %v5412_v49, 2 }
 0x7ef   :  { %7582 = vmatprep.subr.bf16.mxu1 %v7581_v15  ;;  %v5917_v15 = vld [vmem:[%s11450_s11 + $0x20] sm:$0xff] }
 0x7f0   :  { %v5414_v32 = vadd.f32 %v5413_v37, %v5412_v49  ;;  %v6098_v49 = vld [vmem:[%s11452_s13 + $0x8] sm:$0xff] }
 0x7f2   :  { %v5415_v29 = vrot.slane %v5414_v32, 1 }
 0x7f4   :  { %v5416_v48 = vadd.f32 %v5415_v29, %v5414_v32 }
 0x7f6   :  { %v5417_v60 = vmul.f32 0.0078125, %v5416_v48  ;;  %v6115_v48 = vld [vmem:[%s11452_s13 + $0x90] sm:$0xff] }
 0x7f8   :  { %v5418_v46 = vadd.f32 1e-05, %v5417_v60  ;;  %v6116_v60 = vld [vmem:[%s11452_s13 + $0x98] sm:$0xff] }
 0x7fa   :  { %8163 = vrsqrt.f32 %v5418_v46  ;;  %v6099_v46 = vld [vmem:[%s11452_s13 + $0x10] sm:$0xff] }
 0x804   :  { %v8164_v63 = vpop.eup %8163 }
 0x805   :  { %v5420_v40 = vmul.f32 %v8164_v63, %v5307_v19  ;;  %v7585_v19 = vpack.c.bf16 %v6116_v60, %v6115_v48  ;;  %v6100_v63 = vld [vmem:[%s11452_s13 + $0x18] sm:$0xff] }
 0x807   :  { %v5425_v35 = vrot.slane %v5420_v40, %v12206_v41  ;;  %v7587_v40 = vpack.c.bf16 %v6100_v63, %v6099_v46  ;;  %v5920_v63 = vld [vmem:[%s11450_s11 + $0x38] sm:$0xff] }
 0x809   :  { %v5440_v44 = vmul.f32 %v5425_v35, %v10926_v51  ;;  %v5435_v34 = vmul.f32 %v5425_v35, %v10916_v30  ;;  %v5427_v6 = vmul.f32 %v5425_v35, %v10900_v14  ;;  %v5436_v61 = vmul.f32 %v5425_v35, %v10918_v18 }
 0x80a   :  { %v5428_v26 = vmul.f32 %v5425_v35, %v10902_v23  ;;  %v5437_v2 = vmul.f32 %v5425_v35, %v10920_v16  ;;  %v5438_v25 = vmul.f32 %v5425_v35, %v10922_v31  ;;  %v5429_v5 = vmul.f32 %v5425_v35, %v10904_v43 }
 0x80b   :  { %v5457_v36 = vadd.f32 %v6810_v52, %v5435_v34  ;;  %v5449_v42 = vadd.f32 %v6810_v52, %v5427_v6  ;;  %v5458_v51 = vadd.f32 %v6810_v52, %v5436_v61  ;;  %v5439_v14 = vmul.f32 %v5425_v35, %v10924_v27  ;;  %v6101_v6 = vld [vmem:[%s11452_s13 + $0x20] sm:$0xff]  ;;  %v6102_v61 = vld [vmem:[%s11452_s13 + $0x28] sm:$0xff] }
 0x80c   :  { %v5450_v30 = vadd.f32 %v6810_v52, %v5428_v26  ;;  %v5430_v23 = vmul.f32 %v5425_v35, %v10906_v22  ;;  %v5441_v18 = vmul.f32 %v5425_v35, %v10928_v24  ;;  %v5442_v16 = vmul.f32 %v5425_v35, %v10930_v33 }
 0x80d   :  { %v10995_v12 = vmax.f32 %v5457_v36, 0.0  ;;  %v10997_v54 = vmax.f32 %v5449_v42, 0.0  ;;  %v11005_v31 = vmax.f32 %v5458_v51, 0.0  ;;  %v5459_v21 = vadd.f32 %v6810_v52, %v5437_v2  ;;  %v6120_v36 = vld [vmem:[%s11452_s13 + $0xb8] sm:$0xff] }
 0x80e   :  { %v11007_v43 = vmax.f32 %v5450_v30, 0.0  ;;  %v5451_v7 = vadd.f32 %v6810_v52, %v5429_v5  ;;  %v5460_v50 = vadd.f32 %v6810_v52, %v5438_v25  ;;  %v5452_v22 = vadd.f32 %v6810_v52, %v5430_v23  ;;  %v6119_v25 = vld [vmem:[%s11452_s13 + $0xb0] sm:$0xff]  ;;  %v6104_v51 = vld [vmem:[%s11452_s13 + $0x38] sm:$0xff] }
 0x80f   :  { %5962 = vperm.xlu0 %8133, %v10995_v12   ;;  %5930 = vperm.xlu1 %8134, %v10997_v54   ;;  %v11011_v13 = vmax.f32 %v5459_v21, 0.0  ;;  %v5431_v24 = vmul.f32 %v5425_v35, %v10908_v53  ;;  %v5461_v8 = vadd.f32 %v6810_v52, %v5439_v14  ;;  %v5432_v62 = vmul.f32 %v5425_v35, %v10910_v39  ;;  %v6103_v5 = vld [vmem:[%s11452_s13 + $0x30] sm:$0xff]  ;;  %v6121_v14 = vld [vmem:[%s11452_s13 + $0xc0] sm:$0xff] }
 0x810   :  { %v11013_v27 = vmax.f32 %v5451_v7, 0.0  ;;  %v11018_v33 = vmax.f32 %v5460_v50, 0.0  ;;  %v11020_v11 = vmax.f32 %v5452_v22, 0.0  ;;  %v5462_v0 = vadd.f32 %v6810_v52, %v5440_v44  ;;  %v6118_v44 = vld [vmem:[%s11452_s13 + $0xa8] sm:$0xff]  ;;  %v6123_v21 = vld [vmem:[%s11452_s13 + $0xd0] sm:$0xff]  ;;  %v6124_v7 = vld [vmem:[%s11452_s13 + $0xd8] sm:$0xff] }
 0x811   :  { %v5453_v56 = vadd.f32 %v6810_v52, %v5431_v24  ;;  %v11025_v20 = vmax.f32 %v5461_v8, 0.0  ;;  %v5454_v28 = vadd.f32 %v6810_v52, %v5432_v62  ;;  %v5433_v58 = vmul.f32 %v5425_v35, %v10912_v1  ;;  %v6107_v22 = vld [vmem:[%s11452_s13 + $0x50] sm:$0xff]  ;;  %v6108_v24 = vld [vmem:[%s11452_s13 + $0x58] sm:$0xff]  ;;  %v6125_v8 = vld [vmem:[%s11452_s13 + $0xe0] sm:$0xff] }
 0x812   :  { %v11032_v10 = vmax.f32 %v5462_v0, 0.0  ;;  %v5463_v39 = vadd.f32 %v6810_v52, %v5441_v18  ;;  %v5434_v3 = vmul.f32 %v5425_v35, %v10914_v38  ;;  %v5464_v1 = vadd.f32 %v6810_v52, %v5442_v16  ;;  %v6097_v38 = vld [vmem:[%s11452_s13] sm:$0xff]  ;;  %v6106_v16 = vld [vmem:[%s11452_s13 + $0x48] sm:$0xff] }
 0x813   :  { %5966 = vperm.xlu0 %8133, %v11005_v31   ;;  %5934 = vperm.xlu1 %8134, %v11007_v43   ;;  %v11027_v53 = vmax.f32 %v5453_v56, 0.0  ;;  %v11034_v17 = vmax.f32 %v5454_v28, 0.0  ;;  %v5455_v55 = vadd.f32 %v6810_v52, %v5433_v58  ;;  %v7583_v37 = vpack.c.bf16 %v6098_v49, %v6097_v38  ;;  %v6105_v18 = vld [vmem:[%s11452_s13 + $0x40] sm:$0xff]  ;;  %v6126_v56 = vld [vmem:[%s11452_s13 + $0xe8] sm:$0xff] }
 0x814   :  { %v11039_v59 = vmax.f32 %v5463_v39, 0.0  ;;  %v5456_v47 = vadd.f32 %v6810_v52, %v5434_v3  ;;  %v11057_v32 = vmax.f32 %v5464_v1, 0.0  ;;  %v8347_v35 = vmov 0   ;;  %v6117_v52 = vld [vmem:[%s11452_s13 + $0xa0] sm:$0xff]  ;;  %v6110_v58 = vld [vmem:[%s11452_s13 + $0x68] sm:$0xff]  ;;  %v6128_v39 = vld [vmem:[%s11452_s13 + $0xf8] sm:$0xff] }
 0x815   :  { %v11041_v4 = vmax.f32 %v5455_v55, 0.0  ;;  %7584 = vmatpush3.bf16.msra.mxu1 %v7583_v37  ;;  %v7589_v34 = vpack.c.bf16 %v6118_v44, %v6117_v52  ;;  %v7591_v26 = vpack.c.bf16 %v6102_v61, %v6101_v6  ;;  %v8348_v2 = vmov 1   ;;  %v6109_v28 = vld [vmem:[%s11452_s13 + $0x60] sm:$0xff]  ;;  %v6111_v1 = vld [vmem:[%s11452_s13 + $0x70] sm:$0xff]  ;;  %v5918_v49 = vld [vmem:[%s11450_s11 + $0x28] sm:$0xff] }
 0x816   :  { %v11059_v29 = vmax.f32 %v5456_v47, 0.0  ;;  %7586 = vmatprep.subr.bf16.mxu1 %v7585_v19  ;;  %v7593_v42 = vpack.c.bf16 %v6120_v36, %v6119_v25  ;;  %v7595_v30 = vpack.c.bf16 %v6104_v51, %v6103_v5  ;;  %v7601_v50 = vpack.c.bf16 %v6124_v7, %v6123_v21  ;;  %v5919_v19 = vld [vmem:[%s11450_s11 + $0x30] sm:$0xff]  ;;  %v5924_v21 = vld [vmem:[%s11450_s11 + $0x58] sm:$0xff] }
 0x817   :  { %5970 = vperm.xlu0 %8133, %v11011_v13   ;;  %5938 = vperm.xlu1 %8134, %v11013_v27   ;;  %v7603_v62 = vpack.c.bf16 %v6108_v24, %v6107_v22  ;;  %v7605_v0 = vpack.c.bf16 %v6126_v56, %v6125_v8  ;;  %v7607_v55 = vpack.c.bf16 %v6110_v58, %v6109_v28 }
 0x819   :  { %7588 = vmatpush3.bf16.msra.mxu1 %v7587_v40 }
 0x81a   :  { %7590 = vmatprep.subr.bf16.mxu1 %v7589_v34 }
 0x81b   :  { %5974 = vperm.xlu0 %8133, %v11018_v33   ;;  %5942 = vperm.xlu1 %8134, %v11020_v11  }
 0x81d   :  { %7592 = vmatpush3.bf16.msra.mxu1 %v7591_v26 }
 0x81e   :  { %7594 = vmatprep.subr.bf16.mxu1 %v7593_v42 }
 0x81f   :  { %5978 = vperm.xlu0 %8133, %v11025_v20   ;;  %5946 = vperm.xlu1 %8134, %v11027_v53  }
 0x821   :  { %7596 = vmatpush3.bf16.msra.mxu1 %v7595_v30  ;;  %v5921_v30 = vld [vmem:[%s11450_s11 + $0x40] sm:$0xff] }
 0x823   :  { %5982 = vperm.xlu0 %8133, %v11032_v10   ;;  %5950 = vperm.xlu1 %8134, %v11034_v17  }
 0x827   :  { %5986 = vperm.xlu0 %8133, %v11039_v59   ;;  %5954 = vperm.xlu1 %8134, %v11041_v4  }
 0x82b   :  { %5990 = vperm.xlu0 %8133, %v11057_v32   ;;  %5958 = vperm.xlu1 %8134, %v11059_v29  }
 0x82f   :  { %8135 = vset.pattern.permute.xlu0 %v8347_v35  ;;  %8136 = vset.pattern.permute.xlu1 %v8347_v35 }
 0x830   :  { %5539 = vperm.xlu0 %8135, %v10995_v12   ;;  %5544 = vperm.xlu1 %8136, %v11005_v31  }
 0x834   :  { %8138 = vset.pattern.permute.xlu0 %v8348_v2  ;;  %8137 = vset.pattern.permute.xlu1 %v8348_v2 }
 0x835   :  { %5663 = vperm.xlu0 %8138, %v11005_v31   ;;  %5659 = vperm.xlu1 %8137, %v10995_v12   ;;  %v6122_v12 = vld [vmem:[%s11452_s13 + $0xc8] sm:$0xff]  ;;  %v7599_v31 = vpack.c.bf16 %v6106_v16, %v6105_v18 }
 0x836   :  { %v7597_v23 = vpack.c.bf16 %v6122_v12, %v6121_v14  ;;  %v5922_v14 = vld [vmem:[%s11450_s11 + $0x48] sm:$0xff] }
 0x838   :  { %7598 = vmatprep.subr.bf16.mxu1 %v7597_v23 }
 0x839   :  { %8140 = vset.pattern.permute.xlu0 %v8347_v35  ;;  %8139 = vset.pattern.permute.xlu1 %v8347_v35 }
 0x83a   :  { %5549 = vperm.xlu0 %8140, %v11011_v13   ;;  %5499 = vperm.xlu1 %8139, %v10997_v54  }
 0x83b   :  { %7600 = vmatpush3.bf16.msra.mxu1 %v7599_v31  ;;  %v5923_v31 = vld [vmem:[%s11450_s11 + $0x50] sm:$0xff] }
 0x83c   :  { %7602 = vmatprep.subr.bf16.mxu1 %v7601_v50 }
 0x83e   :  { %8142 = vset.pattern.permute.xlu0 %v8348_v2  ;;  %5504 = vperm.xlu1 %8139, %v11007_v43  }
 0x83f   :  { %5667 = vperm.xlu0 %8142, %v11011_v13   ;;  %v6127_v13 = vld [vmem:[%s11452_s13 + $0xf0] sm:$0xff]  ;;  %7604 = vmatpush3.bf16.msra.mxu1 %v7603_v62 }
 0x840   :  { %7606 = vmatprep.subr.bf16.mxu1 %v7605_v0  ;;  %v7609_v3 = vpack.c.bf16 %v6128_v39, %v6127_v13 }
 0x842   :  { %8141 = vset.pattern.permute.xlu1 %v8348_v2 }
 0x843   :  { %5635 = vperm.xlu0 %8142, %v11013_v27   ;;  %5627 = vperm.xlu1 %8141, %v10997_v54   ;;  %v6112_v54 = vld [vmem:[%s11452_s13 + $0x78] sm:$0xff] }
 0x844   :  { %7608 = vmatpush3.bf16.msra.mxu1 %v7607_v55  ;;  %v7611_v47 = vpack.c.bf16 %v6112_v54, %v6111_v1  ;;  %v5925_v1 = vld [vmem:[%s11450_s11 + $0x60] sm:$0xff]  ;;  %v5926_v54 = vld [vmem:[%s11450_s11 + $0x68] sm:$0xff] }
 0x845   :  { %7610 = vmatprep.subr.bf16.mxu1 %v7609_v3 }
 0x847   :  { %8145 = vset.pattern.permute.xlu0 %v8347_v35  ;;  %5631 = vperm.xlu1 %8141, %v11007_v43  }
 0x848   :  { %5514 = vperm.xlu0 %8145, %v11020_v11   ;;  %7612 = vmatpush3.bf16.msra.mxu1 %v7611_v47 }
 0x84b   :  { %8143 = vset.pattern.permute.xlu1 %v8347_v35 }
 0x84c   :  { %8148 = vset.pattern.permute.xlu0 %v8348_v2  ;;  %5509 = vperm.xlu1 %8143, %v11013_v27  }
 0x84d   :  { %5675 = vperm.xlu0 %8148, %v11025_v20  }
 0x850   :  { %5554 = vperm.xlu1 %8143, %v11018_v33  }
 0x851   :  { %5643 = vperm.xlu0 %8148, %v11027_v53  }
 0x854   :  { %8144 = vset.pattern.permute.xlu1 %v8348_v2 }
 0x855   :  { %8151 = vset.pattern.permute.xlu0 %v8347_v35  ;;  %5671 = vperm.xlu1 %8144, %v11018_v33  }
 0x856   :  { %5524 = vperm.xlu0 %8151, %v11034_v17  }
 0x859   :  { %8146 = vset.pattern.permute.xlu1 %v8347_v35 }
 0x85a   :  { %8154 = vset.pattern.permute.xlu0 %v8348_v2  ;;  %5559 = vperm.xlu1 %8146, %v11025_v20  }
 0x85b   :  { %5683 = vperm.xlu0 %8154, %v11039_v59  }
 0x85e   :  { %8147 = vset.pattern.permute.xlu1 %v8348_v2 }
 0x85f   :  { %5651 = vperm.xlu0 %8154, %v11041_v4   ;;  %5639 = vperm.xlu1 %8147, %v11020_v11  }
 0x863   :  { %8157 = vset.pattern.permute.xlu0 %v8347_v35  ;;  %8149 = vset.pattern.permute.xlu1 %v8347_v35 }
 0x864   :  { %5534 = vperm.xlu0 %8157, %v11059_v29   ;;  %5519 = vperm.xlu1 %8149, %v11027_v53   ;;  %v5915_v53 = vld [vmem:[%s11450_s11 + $0x10] sm:$0xff] }
 0x868   :  { %5564 = vperm.xlu1 %8149, %v11032_v10   ;;  %8158 = vset.pattern.permute.xlu0 %v8346_v9 }
 0x86c   :  { %8150 = vset.pattern.permute.xlu1 %v8348_v2 }
 0x86d   :  { %5679 = vperm.xlu1 %8150, %v11032_v10   ;;  %v5916_v10 = vld [vmem:[%s11450_s11 + $0x18] sm:$0xff] }
 0x871   :  { %8152 = vset.pattern.permute.xlu1 %v8347_v35 }
 0x872   :  { %5569 = vperm.xlu1 %8152, %v11039_v59   ;;  %v5914_v59 = vld [vmem:[%s11450_s11 + $0x8] sm:$0xff] }
 0x876   :  { %8153 = vset.pattern.permute.xlu1 %v8348_v2 }
 0x877   :  { %5647 = vperm.xlu1 %8153, %v11034_v17   ;;  %v5913_v17 = vld [vmem:[%s11450_s11] sm:$0xff] }
 0x87b   :  { %8155 = vset.pattern.permute.xlu1 %v8347_v35 }
 0x87c   :  { %5529 = vperm.xlu1 %8155, %v11041_v4  }
 0x880   :  { %5574 = vperm.xlu1 %8155, %v11057_v32  }
 0x884   :  { %8156 = vset.pattern.permute.xlu1 %v8348_v2 }
 0x885   :  { %5687 = vperm.xlu1 %8156, %v11057_v32  }
 0x889   :  { %5655 = vperm.xlu1 %8156, %v11059_v29  }
 0x88e   :  { %v5963_v9 = vpop.permute.xlu0 %5962  ;;  %v5931_v43 = vpop.permute.xlu1 %5930 }
 0x88f   :  { %v6009_v29 = vmul.f32 %v5963_v9, %v5913_v17  ;;  %v6010_v48 = vmul.f32 %v5963_v9, %v5914_v59  ;;  %v5993_v60 = vmul.f32 %v5931_v43, %v5913_v17  ;;  %v5994_v46 = vmul.f32 %v5931_v43, %v5914_v59 }
 0x892   :  { %v5967_v27 = vpop.permute.xlu0 %5966  ;;  %v5935_v33 = vpop.permute.xlu1 %5934 }
 0x893   :  { %v6011_v4 = vmul.f32 %v5967_v27, %v5915_v53  ;;  %v6012_v57 = vmul.f32 %v5967_v27, %v5916_v10  ;;  %v5995_v45 = vmul.f32 %v5935_v33, %v5915_v53  ;;  %v5996_v38 = vmul.f32 %v5935_v33, %v5916_v10 }
 0x895   :  { %v6051_v34 = vadd.f32 %v6011_v4, %v6009_v29  ;;  %v6064_v6 = vadd.f32 %v6012_v57, %v6010_v48  ;;  %v6025_v61 = vadd.f32 %v5995_v45, %v5993_v60  ;;  %v6038_v26 = vadd.f32 %v5996_v38, %v5994_v46  ;;  %v5927_v38 = vld [vmem:[%s11450_s11 + $0x70] sm:$0xff] }
 0x896   :  { %v5971_v11 = vpop.permute.xlu0 %5970  ;;  %v5939_v20 = vpop.permute.xlu1 %5938 }
 0x897   :  { %v6013_v40 = vmul.f32 %v5971_v11, %v5917_v15  ;;  %v6014_v35 = vmul.f32 %v5971_v11, %v5918_v49  ;;  %v5997_v52 = vmul.f32 %v5939_v20, %v5917_v15  ;;  %v5998_v44 = vmul.f32 %v5939_v20, %v5918_v49  ;;  %v5928_v15 = vld [vmem:[%s11450_s11 + $0x78] sm:$0xff] }
 0x899   :  { %v6052_v12 = vadd.f32 %v6051_v34, %v6013_v40  ;;  %v6065_v23 = vadd.f32 %v6064_v6, %v6014_v35  ;;  %v6026_v18 = vadd.f32 %v6025_v61, %v5997_v52  ;;  %v6039_v16 = vadd.f32 %v6038_v26, %v5998_v44 }
 0x89a   :  { %v5975_v37 = vpop.permute.xlu0 %5974  ;;  %v5943_v32 = vpop.permute.xlu1 %5942 }
 0x89b   :  { %v6015_v36 = vmul.f32 %v5975_v37, %v5919_v19  ;;  %v6016_v42 = vmul.f32 %v5975_v37, %v5920_v63  ;;  %v5999_v5 = vmul.f32 %v5943_v32, %v5919_v19  ;;  %v6000_v51 = vmul.f32 %v5943_v32, %v5920_v63 }
 0x89d   :  { %v6053_v62 = vadd.f32 %v6052_v12, %v6015_v36  ;;  %v6066_v0 = vadd.f32 %v6065_v23, %v6016_v42  ;;  %v6027_v28 = vadd.f32 %v6026_v18, %v5999_v5  ;;  %v6040_v58 = vadd.f32 %v6039_v16, %v6000_v51 }
 0x89e   :  { %v5979_v2 = vpop.permute.xlu0 %5978  ;;  %v5947_v25 = vpop.permute.xlu1 %5946 }
 0x89f   :  { %v6017_v7 = vmul.f32 %v5979_v2, %v5921_v30  ;;  %v6018_v50 = vmul.f32 %v5979_v2, %v5922_v14  ;;  %v6001_v22 = vmul.f32 %v5947_v25, %v5921_v30  ;;  %v6002_v24 = vmul.f32 %v5947_v25, %v5922_v14  ;;  %v12207_v30 = vld [vmem:[#allocation23_spill] sm:$0xff] }
 0x8a0   :  { %v5814_v14 = vsub.s32 1, %v12207_v30 }
 0x8a1   :  { %v6054_v47 = vadd.f32 %v6053_v62, %v6017_v7  ;;  %v6067_v9 = vadd.f32 %v6066_v0, %v6018_v50  ;;  %v6028_v43 = vadd.f32 %v6027_v28, %v6001_v22  ;;  %v6041_v27 = vadd.f32 %v6040_v58, %v6002_v24 }
 0x8a2   :  { %v5983_v8 = vpop.permute.xlu0 %5982  ;;  %v5951_v56 = vpop.permute.xlu1 %5950 }
 0x8a3   :  { %v6019_v13 = vmul.f32 %v5983_v8, %v5923_v31  ;;  %v6020_v39 = vmul.f32 %v5983_v8, %v5924_v21  ;;  %v6003_v55 = vmul.f32 %v5951_v56, %v5923_v31  ;;  %v6004_v3 = vmul.f32 %v5951_v56, %v5924_v21  ;;  %v6077_v31 = vld [vmem:[%s11451_s12] sm:$0x3] }
 0x8a4   :  { %v6086_v8 = vrot.slane %v6077_v31, %v5814_v14  ;;  %v6082_v58 = vrot.slane %v6077_v31, %v12206_v41  ;;  %v6815_v31 = vld [vmem:[%s11448_s9 + $0xa0] sm:$0xff] }
 0x8a5   :  { %v6055_v59 = vadd.f32 %v6054_v47, %v6019_v13  ;;  %v6068_v4 = vadd.f32 %v6067_v9, %v6020_v39  ;;  %v6029_v57 = vadd.f32 %v6028_v43, %v6003_v55  ;;  %v6042_v45 = vadd.f32 %v6041_v27, %v6004_v3 }
 0x8a6   :  { %v5987_v33 = vpop.permute.xlu0 %5986  ;;  %v5955_v11 = vpop.permute.xlu1 %5954 }
 0x8a7   :  { %v6021_v20 = vmul.f32 %v5987_v33, %v5925_v1  ;;  %v6022_v53 = vmul.f32 %v5987_v33, %v5926_v54  ;;  %v6005_v10 = vmul.f32 %v5955_v11, %v5925_v1  ;;  %v6006_v17 = vmul.f32 %v5955_v11, %v5926_v54 }
 0x8a9   :  { %v6056_v49 = vadd.f32 %v6055_v59, %v6021_v20  ;;  %v6069_v37 = vadd.f32 %v6068_v4, %v6022_v53  ;;  %v6030_v32 = vadd.f32 %v6029_v57, %v6005_v10  ;;  %v6043_v29 = vadd.f32 %v6042_v45, %v6006_v17 }
 0x8aa   :  { %v5991_v48 = vpop.permute.xlu0 %5990  ;;  %v5959_v60 = vpop.permute.xlu1 %5958 }
 0x8ab   :  { %v6023_v46 = vmul.f32 %v5991_v48, %v5927_v38  ;;  %v6024_v19 = vmul.f32 %v5991_v48, %v5928_v15  ;;  %v6007_v63 = vmul.f32 %v5959_v60, %v5927_v38  ;;  %v6008_v40 = vmul.f32 %v5959_v60, %v5928_v15 }
 0x8ad   :  { %v6057_v35 = vadd.f32 %v6056_v49, %v6023_v46  ;;  %v6070_v52 = vadd.f32 %v6069_v37, %v6024_v19  ;;  %v6031_v44 = vadd.f32 %v6030_v32, %v6007_v63  ;;  %v6044_v34 = vadd.f32 %v6043_v29, %v6008_v40 }
 0x8af   :  { %v6058_v6 = vrot.slane %v6057_v35, 4  ;;  %v6071_v61 = vrot.slane %v6070_v52, 4  ;;  %v6032_v26 = vrot.slane %v6031_v44, 4  ;;  %v6045_v2 = vrot.slane %v6044_v34, 4  ;;  %v11251_v25 = vpop.permute.xlu1 %5544  ;;  %v5540_v4 = vpop.permute.xlu0 %5539 }
 0x8b1   :  { %v6059_v36 = vadd.f32 %v6058_v6, %v6057_v35  ;;  %v6072_v42 = vadd.f32 %v6071_v61, %v6070_v52  ;;  %v6033_v5 = vadd.f32 %v6032_v26, %v6031_v44  ;;  %v6046_v51 = vadd.f32 %v6045_v2, %v6044_v34  ;;  %v6813_v52 = vld [vmem:[%s11448_s9 + $0x90] sm:$0xff]  ;;  %v6814_v44 = vld [vmem:[%s11448_s9 + $0x98] sm:$0xff]  ;;  %v6811_v6 = vld [vmem:[%s11448_s9 + $0x80] sm:$0xff] }
 0x8b2   :  { %v6812_v61 = vld [vmem:[%s11448_s9 + $0x88] sm:$0xff]  ;;  %v5483_v26 = vld [vmem:[%s11448_s9 + $0x10] sm:$0xff]  ;;  %v5484_v2 = vld [vmem:[%s11448_s9 + $0x18] sm:$0xff] }
 0x8b3   :  { %v6060_v12 = vrot.slane %v6059_v36, 2  ;;  %v6073_v23 = vrot.slane %v6072_v42, 2  ;;  %v6034_v18 = vrot.slane %v6033_v5, 2  ;;  %v6047_v16 = vrot.slane %v6046_v51, 2 }
 0x8b4   :  { %v5660_v21 = vpop.permute.xlu1 %5659  ;;  %v5664_v15 = vpop.permute.xlu0 %5663 }
 0x8b5   :  { %v6061_v7 = vadd.f32 %v6060_v12, %v6059_v36  ;;  %v6074_v50 = vadd.f32 %v6073_v23, %v6072_v42  ;;  %v6035_v22 = vadd.f32 %v6034_v18, %v6033_v5  ;;  %v6048_v24 = vadd.f32 %v6047_v16, %v6046_v51  ;;  %v5481_v36 = vld [vmem:[%s11448_s9] sm:$0xff]  ;;  %v5482_v42 = vld [vmem:[%s11448_s9 + $0x8] sm:$0xff] }
 0x8b6   :  { %v5708_v5 = vmul.f32 %v6813_v52, %v5664_v15  ;;  %v5709_v51 = vmul.f32 %v6814_v44, %v5664_v15  ;;  %v5706_v12 = vmul.f32 %v6811_v6, %v5660_v21  ;;  %v5707_v23 = vmul.f32 %v6812_v61, %v5660_v21  ;;  %v5485_v21 = vld [vmem:[%s11448_s9 + $0x20] sm:$0xff] }
 0x8b7   :  { %v6062_v56 = vrot.slane %v6061_v7, 1  ;;  %v6036_v62 = vrot.slane %v6035_v22, 1  ;;  %v6049_v0 = vrot.slane %v6048_v24, 1  ;;  %v6075_v28 = vrot.slane %v6074_v50, 1 }
 0x8b8   :  { %v5595_v18 = vmul.f32 %v11251_v25, %v5483_v26  ;;  %v5596_v16 = vmul.f32 %v11251_v25, %v5484_v2  ;;  %v5486_v25 = vld [vmem:[%s11448_s9 + $0x28] sm:$0xff] }
 0x8b9   :  { %v11260_v13 = vpop.permute.xlu1 %5499  ;;  %v6050_v39 = vadd.f32 %v6049_v0, %v6048_v24  ;;  %v6076_v55 = vadd.f32 %v6075_v28, %v6074_v50  ;;  %v6037_v3 = vadd.f32 %v6036_v62, %v6035_v22  ;;  %v6063_v1 = vadd.f32 %v6062_v56, %v6061_v7  ;;  %v5550_v37 = vpop.permute.xlu0 %5549  ;;  %v6816_v7 = vld [vmem:[%s11448_s9 + $0xa8] sm:$0xff] }
 0x8ba   :  { %v5593_v24 = vmul.f32 %v5540_v4, %v5481_v36  ;;  %v5740_v56 = vadd.f32 %v5708_v5, %v5595_v18  ;;  %v5741_v62 = vadd.f32 %v5709_v51, %v5596_v16  ;;  %v6820_v5 = vld [vmem:[%s11448_s9 + $0xc8] sm:$0xff] }
 0x8bb   :  { %v6090_v54 = vadd.f32 %v6086_v8, %v6050_v39  ;;  %v6092_v47 = vadd.f32 %v6086_v8, %v6076_v55  ;;  %v6089_v9 = vadd.f32 %v6082_v58, %v6037_v3  ;;  %v6091_v43 = vadd.f32 %v6082_v58, %v6063_v1 }
 0x8bc   :  { %v5594_v8 = vmul.f32 %v5540_v4, %v5482_v42  ;;  %v5738_v0 = vadd.f32 %v5706_v12, %v5593_v24  ;;  %v5597_v55 = vmul.f32 %v5550_v37, %v5485_v21  ;;  %v5598_v3 = vmul.f32 %v5550_v37, %v5486_v25 }
 0x8bd   :  { %v11262_v27 = vpop.permute.xlu1 %5504  ;;  %v6096_v33 = vmax.f32 %v6092_v47, 0.0  ;;  %v6095_v11 = vmax.f32 %v6091_v43, 0.0  ;;  %v6094_v20 = vmax.f32 %v6090_v54, 0.0  ;;  %v6093_v10 = vmax.f32 %v6089_v9, 0.0 }
 0x8be   :  { %v5668_v29 = vpop.permute.xlu0 %5667  ;;  %v5739_v28 = vadd.f32 %v5707_v23, %v5594_v8  ;;  %v5577_v47 = vmul.f32 %v11260_v13, %v5481_v36  ;;  %v5578_v9 = vmul.f32 %v11260_v13, %v5482_v42  ;;  %v5490_v23 = vld [vmem:[%s11448_s9 + $0x48] sm:$0xff] }
 0x8bf   :  { %v6142_v53 = vrot.slane %v6096_v33, 7  ;;  %v6140_v17 = vrot.slane %v6095_v11, 7  ;;  %v5710_v58 = vmul.f32 %v6815_v31, %v5668_v29  ;;  %v5711_v39 = vmul.f32 %v6816_v7, %v5668_v29  ;;  %v6817_v11 = vld [vmem:[%s11448_s9 + $0xb0] sm:$0xff] }
 0x8c1   :  { %v6143_v59 = vsel %vm5827_vm4, %v6142_v53, %v6094_v20  ;;  %v6141_v45 = vsel %vm5827_vm4, %v6140_v17, %v6093_v10  ;;  %v6818_v20 = vld [vmem:[%s11448_s9 + $0xb8] sm:$0xff]  ;;  %v5579_v10 = vmul.f32 %v11262_v27, %v5483_v26  ;;  %v5580_v17 = vmul.f32 %v11262_v27, %v5484_v2 }
 0x8c2   :  { %6210 = vmatprep.mubr.f32.mxu1 %v6143_v59  ;;  %v5628_v57 = vpop.permute.xlu1 %5627  ;;  %v5636_v46 = vpop.permute.xlu0 %5635  ;;  %v5742_v13 = vadd.f32 %v5710_v58, %v5597_v55  ;;  %v5780_v27 = vadd.f32 %v5740_v56, %v5738_v0  ;;  %v5793_v26 = vadd.f32 %v5741_v62, %v5739_v28  ;;  %v5492_v62 = vld [vmem:[%s11448_s9 + $0x58] sm:$0xff]  ;;  %v6821_v55 = vld [vmem:[%s11448_s9 + $0xd0] sm:$0xff] }
 0x8c3   :  { %6211 = vmatmul.mubr.f32.vlgmr.msra.gmra.mrb[0].mxu1 %v6141_v45  ;;  %v5690_v43 = vmul.f32 %v6811_v6, %v5628_v57  ;;  %v5691_v33 = vmul.f32 %v6812_v61, %v5628_v57  ;;  %v5694_v57 = vmul.f32 %v6815_v31, %v5636_v46  ;;  %v5695_v15 = vmul.f32 %v6816_v7, %v5636_v46  ;;  %v6819_v46 = vld [vmem:[%s11448_s9 + $0xc0] sm:$0xff] }
 0x8c4   :  { %v5781_v16 = vadd.f32 %v5780_v27, %v5742_v13 }
 0x8c5   :  { %v5723_v2 = vadd.f32 %v5691_v33, %v5578_v9 }
 0x8c6   :  { %v5632_v38 = vpop.permute.xlu1 %5631 }
 0x8c7   :  { %v11272_v63 = vpop.permute.xlu0 %5514  ;;  %v5692_v1 = vmul.f32 %v6813_v52, %v5632_v38  ;;  %v5693_v54 = vmul.f32 %v6814_v44, %v5632_v38  ;;  %v5743_v38 = vadd.f32 %v5711_v39, %v5598_v3  ;;  %v5487_v52 = vld [vmem:[%s11448_s9 + $0x30] sm:$0xff]  ;;  %v5488_v44 = vld [vmem:[%s11448_s9 + $0x38] sm:$0xff] }
 0x8c8   :  { %v5583_v7 = vmul.f32 %v11272_v63, %v5487_v52  ;;  %v5584_v24 = vmul.f32 %v11272_v63, %v5488_v44  ;;  %v6822_v3 = vld [vmem:[%s11448_s9 + $0xd8] sm:$0xff] }
 0x8c9   :  { %v5724_v37 = vadd.f32 %v5692_v1, %v5579_v10  ;;  %v5725_v29 = vadd.f32 %v5693_v54, %v5580_v17  ;;  %v5794_v31 = vadd.f32 %v5793_v26, %v5743_v38 }
 0x8cb   :  { %v5510_v49 = vpop.permute.xlu1 %5509 }
 0x8cc   :  { %v11276_v35 = vpop.permute.xlu0 %5675  ;;  %v5581_v59 = vmul.f32 %v5510_v49, %v5485_v21  ;;  %v5582_v4 = vmul.f32 %v5510_v49, %v5486_v25  ;;  %v5722_v49 = vadd.f32 %v5690_v43, %v5577_v47  ;;  %v5767_v21 = vadd.f32 %v5725_v29, %v5723_v2 }
 0x8cd   :  { %v5714_v28 = vmul.f32 %v6819_v46, %v11276_v35  ;;  %v5715_v58 = vmul.f32 %v6820_v5, %v11276_v35  ;;  %v6823_v35 = vld [vmem:[%s11448_s9 + $0xe0] sm:$0xff] }
 0x8ce   :  { %v5726_v36 = vadd.f32 %v5694_v57, %v5581_v59  ;;  %v5727_v42 = vadd.f32 %v5695_v15, %v5582_v4  ;;  %v5754_v8 = vadd.f32 %v5724_v37, %v5722_v49  ;;  %v5493_v57 = vld [vmem:[%s11448_s9 + $0x60] sm:$0xff]  ;;  %v5494_v15 = vld [vmem:[%s11448_s9 + $0x68] sm:$0xff] }
 0x8cf   :  { %v11266_v32 = vpop.permute.xlu1 %5554 }
 0x8d0   :  { %v11312_v50 = vpop.permute.xlu0 %5643  ;;  %v5599_v51 = vmul.f32 %v11266_v32, %v5487_v52  ;;  %v5600_v12 = vmul.f32 %v11266_v32, %v5488_v44  ;;  %v5491_v32 = vld [vmem:[%s11448_s9 + $0x50] sm:$0xff]  ;;  %v5755_v1 = vadd.f32 %v5754_v8, %v5726_v36  ;;  %v5768_v54 = vadd.f32 %v5767_v21, %v5727_v42 }
 0x8d1   :  { %v5698_v47 = vmul.f32 %v6819_v46, %v11312_v50  ;;  %v5699_v9 = vmul.f32 %v6820_v5, %v11312_v50  ;;  %v5495_v21 = vld [vmem:[%s11448_s9 + $0x70] sm:$0xff] }
 0x8d4   :  { %v5672_v48 = vpop.permute.xlu1 %5671 }
 0x8d5   :  { %v5525_v45 = vpop.permute.xlu0 %5524  ;;  %v5712_v6 = vmul.f32 %v6817_v11, %v5672_v48  ;;  %v5713_v61 = vmul.f32 %v6818_v20, %v5672_v48  ;;  %v5489_v48 = vld [vmem:[%s11448_s9 + $0x40] sm:$0xff] }
 0x8d6   :  { %v5587_v43 = vmul.f32 %v5525_v45, %v5491_v32  ;;  %v5588_v33 = vmul.f32 %v5525_v45, %v5492_v62 }
 0x8d7   :  { %v5744_v25 = vadd.f32 %v5712_v6, %v5599_v51  ;;  %v5745_v56 = vadd.f32 %v5713_v61, %v5600_v12 }
 0x8d9   :  { %v11268_v60 = vpop.permute.xlu1 %5559  ;;  %v5782_v4 = vadd.f32 %v5781_v16, %v5744_v25  ;;  %v5795_v13 = vadd.f32 %v5794_v31, %v5745_v56  ;;  %v5496_v25 = vld [vmem:[%s11448_s9 + $0x78] sm:$0xff] }
 0x8da   :  { %v5684_v0 = vpop.permute.xlu0 %5683  ;;  %v5601_v39 = vmul.f32 %v11268_v60, %v5489_v48  ;;  %v5602_v63 = vmul.f32 %v11268_v60, %v5490_v23  ;;  %v6824_v60 = vld [vmem:[%s11448_s9 + $0xe8] sm:$0xff] }
 0x8db   :  { %v5719_v29 = vmul.f32 %v6824_v60, %v5684_v0 }
 0x8dc   :  { %v5746_v45 = vadd.f32 %v5714_v28, %v5601_v39  ;;  %v5747_v37 = vadd.f32 %v5715_v58, %v5602_v63 }
 0x8de   :  { %v11270_v19 = vpop.permute.xlu1 %5639  ;;  %v5783_v5 = vadd.f32 %v5782_v4, %v5746_v45  ;;  %v5796_v51 = vadd.f32 %v5795_v13, %v5747_v37 }
 0x8df   :  { %v5696_v10 = vmul.f32 %v6817_v11, %v11270_v19  ;;  %v5697_v17 = vmul.f32 %v6818_v20, %v11270_v19  ;;  %v5718_v11 = vmul.f32 %v6823_v35, %v5684_v0  ;;  %v5652_v19 = vpop.permute.xlu0 %5651 }
 0x8e0   :  { %v5702_v12 = vmul.f32 %v6823_v35, %v5652_v19 }
 0x8e1   :  { %v5728_v6 = vadd.f32 %v5696_v10, %v5583_v7  ;;  %v5729_v61 = vadd.f32 %v5697_v17, %v5584_v24 }
 0x8e3   :  { %v11274_v40 = vpop.permute.xlu1 %5519  ;;  %v5756_v7 = vadd.f32 %v5755_v1, %v5728_v6  ;;  %v5769_v24 = vadd.f32 %v5768_v54, %v5729_v61  ;;  %v5535_v58 = vpop.permute.xlu0 %5534 }
 0x8e4   :  { %v5585_v20 = vmul.f32 %v11274_v40, %v5489_v48  ;;  %v5586_v52 = vmul.f32 %v11274_v40, %v5490_v23  ;;  %v5703_v48 = vmul.f32 %v6824_v60, %v5652_v19  ;;  %v5592_v4 = vmul.f32 %v5535_v58, %v5496_v25 }
 0x8e6   :  { %v5730_v40 = vadd.f32 %v5698_v47, %v5585_v20  ;;  %v5731_v23 = vadd.f32 %v5699_v9, %v5586_v52 }
 0x8e7   :  { %v11284_v34 = vpop.permute.xlu1 %5564 }
 0x8e8   :  { %v5603_v44 = vmul.f32 %v11284_v34, %v5491_v32  ;;  %v5757_v1 = vadd.f32 %v5756_v7, %v5730_v40  ;;  %v5770_v54 = vadd.f32 %v5769_v24, %v5731_v23 }
 0x8ec   :  { %v11314_v22 = vpop.permute.xlu1 %5679 }
 0x8ed   :  { %v5716_v38 = vmul.f32 %v6821_v55, %v11314_v22  ;;  %v5717_v50 = vmul.f32 %v6822_v3, %v11314_v22  ;;  %v5604_v22 = vmul.f32 %v11284_v34, %v5492_v62  ;;  %v6825_v34 = vld [vmem:[%s11448_s9 + $0xf0] sm:$0xff] }
 0x8ef   :  { %v5748_v2 = vadd.f32 %v5716_v38, %v5603_v44  ;;  %v5749_v46 = vadd.f32 %v5717_v50, %v5604_v22 }
 0x8f1   :  { %v11330_v53 = vpop.permute.xlu1 %5569  ;;  %v5784_v56 = vadd.f32 %v5783_v5, %v5748_v2  ;;  %v5797_v32 = vadd.f32 %v5796_v51, %v5749_v46  ;;  %v5806_v2 = vld [vmem:[%s11449_s10] sm:$0x3] }
 0x8f2   :  { %v5605_v27 = vmul.f32 %v11330_v53, %v5493_v57  ;;  %v5606_v26 = vmul.f32 %v11330_v53, %v5494_v15  ;;  %v6826_v53 = vld [vmem:[%s11448_s9 + $0xf8] sm:$0xff]  ;;  %v5811_v51 = vrot.slane %v5806_v2, %v12206_v41 }
 0x8f4   :  { %v5750_v8 = vadd.f32 %v5718_v11, %v5605_v27 }
 0x8f6   :  { %v5648_v18 = vpop.permute.xlu1 %5647  ;;  %v5785_v35 = vadd.f32 %v5784_v56, %v5750_v8 }
 0x8f7   :  { %v5700_v36 = vmul.f32 %v6821_v55, %v5648_v18  ;;  %v5701_v42 = vmul.f32 %v6822_v3, %v5648_v18  ;;  %v5751_v18 = vadd.f32 %v5719_v29, %v5606_v26 }
 0x8f9   :  { %v5732_v62 = vadd.f32 %v5700_v36, %v5587_v43  ;;  %v5733_v0 = vadd.f32 %v5701_v42, %v5588_v33  ;;  %v5798_v60 = vadd.f32 %v5797_v32, %v5751_v18 }
 0x8fb   :  { %v5530_v59 = vpop.permute.xlu1 %5529  ;;  %v5758_v13 = vadd.f32 %v5757_v1, %v5732_v62  ;;  %v5771_v38 = vadd.f32 %v5770_v54, %v5733_v0 }
 0x8fc   :  { %v5589_v16 = vmul.f32 %v5530_v59, %v5493_v57  ;;  %v5590_v31 = vmul.f32 %v5530_v59, %v5494_v15  ;;  %v5591_v59 = vmul.f32 %v5535_v58, %v5495_v21 }
 0x8fe   :  { %v5734_v47 = vadd.f32 %v5702_v12, %v5589_v16  ;;  %v5735_v9 = vadd.f32 %v5703_v48, %v5590_v31  ;;  %v5815_v12 = vrot.slane %v5806_v2, %v5814_v14 }
 0x8ff   :  { %v5575_v49 = vpop.permute.xlu1 %5574 }
 0x900   :  { %v5607_v39 = vmul.f32 %v5575_v49, %v5495_v21  ;;  %v5608_v63 = vmul.f32 %v5575_v49, %v5496_v25  ;;  %v5759_v45 = vadd.f32 %v5758_v13, %v5734_v47  ;;  %v5772_v37 = vadd.f32 %v5771_v38, %v5735_v9 }
 0x904   :  { %v5688_v28 = vpop.permute.xlu1 %5687 }
 0x905   :  { %v5720_v55 = vmul.f32 %v6825_v34, %v5688_v28  ;;  %v5721_v3 = vmul.f32 %v6826_v53, %v5688_v28 }
 0x907   :  { %v5752_v10 = vadd.f32 %v5720_v55, %v5607_v39  ;;  %v5753_v17 = vadd.f32 %v5721_v3, %v5608_v63  ;;  %v6827_v3 = vld [vmem:[#allocation3] ss:$0 sm:$0xff] }
 0x908   :  { %v5656_v43 = vpop.permute.xlu1 %5655 }
 0x909   :  { %v5786_v33 = vadd.f32 %v5785_v35, %v5752_v10  ;;  %v5799_v50 = vadd.f32 %v5798_v60, %v5753_v17  ;;  %v5704_v57 = vmul.f32 %v6825_v34, %v5656_v43  ;;  %v5705_v15 = vmul.f32 %v6826_v53, %v5656_v43 }
 0x90b   :  { %v5787_v11 = vrot.slane %v5786_v33, 4  ;;  %v5800_v29 = vrot.slane %v5799_v50, 4  ;;  %v5736_v19 = vadd.f32 %v5704_v57, %v5591_v59  ;;  %v5737_v20 = vadd.f32 %v5705_v15, %v5592_v4 }
 0x90d   :  { %v5788_v52 = vadd.f32 %v5787_v11, %v5786_v33  ;;  %v5801_v44 = vadd.f32 %v5800_v29, %v5799_v50  ;;  %v5760_v22 = vadd.f32 %v5759_v45, %v5736_v19  ;;  %v5773_v6 = vadd.f32 %v5772_v37, %v5737_v20 }
 0x90f   :  { %v5789_v61 = vrot.slane %v5788_v52, 2  ;;  %v5802_v27 = vrot.slane %v5801_v44, 2  ;;  %v5761_v26 = vrot.slane %v5760_v22, 4  ;;  %v5774_v49 = vrot.slane %v5773_v6, 4 }
 0x911   :  { %v5790_v46 = vadd.f32 %v5789_v61, %v5788_v52  ;;  %v5803_v36 = vadd.f32 %v5802_v27, %v5801_v44  ;;  %v5762_v42 = vadd.f32 %v5761_v26, %v5760_v22  ;;  %v5775_v5 = vadd.f32 %v5774_v49, %v5773_v6 }
 0x912   :  { %v8349_v6 = vmov 1983009808  }
 0x913   :  { %v5791_v48 = vrot.slane %v5790_v46, 1  ;;  %v5804_v40 = vrot.slane %v5803_v36, 1  ;;  %v5763_v23 = vrot.slane %v5762_v42, 2  ;;  %v5776_v16 = vrot.slane %v5775_v5, 2 }
 0x914   :  { %v5885_v61 = vunpack.c.l.s4 %v8349_v6 }
 0x915   :  { %v5764_v31 = vadd.f32 %v5763_v23, %v5762_v42  ;;  %v5777_v34 = vadd.f32 %v5776_v16, %v5775_v5  ;;  %v5792_v53 = vadd.f32 %v5791_v48, %v5790_v46  ;;  %v5805_v7 = vadd.f32 %v5804_v40, %v5803_v36 }
 0x916   :  { %v5886_v49 = vunpack.c.0.s8 %v5885_v61 }
 0x917   :  { %v5765_v24 = vrot.slane %v5764_v31, 1  ;;  %v5778_v8 = vrot.slane %v5777_v34, 1  ;;  %v5820_v18 = vadd.f32 %v5811_v51, %v5792_v53  ;;  %v5821_v21 = vadd.f32 %v5815_v12, %v5805_v7 }
 0x919   :  { %v5766_v25 = vadd.f32 %v5765_v24, %v5764_v31  ;;  %v5779_v56 = vadd.f32 %v5778_v8, %v5777_v34  ;;  %v5826_v41 = vrot.slane %v5820_v18, 7  ;;  %v5829_v0 = vrot.slane %v5821_v21, 7 }
 0x91b   :  { %v5818_v32 = vadd.f32 %v5811_v51, %v5766_v25  ;;  %v5819_v62 = vadd.f32 %v5815_v12, %v5779_v56  ;;  %v5889_v51 = vsub.s32 %v5886_v49, %v12207_v30 }
 0x91d   :  { %v5828_v14 = vsel %vm5827_vm4, %v5826_v41, %v5818_v32  ;;  %v5830_v28 = vsel %vm5827_vm4, %v5829_v0, %v5819_v62 }
 0x91e   :  { %v5833_v58 = vsel %vm194_vm2, %v5828_v14, -inf  ;;  %v5834_v39 = vsel %vm194_vm2, %v5830_v28, -inf }
 0x91f   :  { %v5835_v63 = vmax.f32 %v5833_v58, %v5834_v39 }
 0x921   :  { %5836 = vmax.xlane.f32.xlu1 %v5835_v63 }
 0x996   :  { %v7100_v55 = vpop.f32.mrb[0].mxu1 }
 0x997   :  { %v7101_v1 = vpop.f32.mrb[1].mxu1 }
 0x998   :  { %v7102_v54 = vadd.f32 %v7101_v1, %v7100_v55 }
 0x99a   :  { %v6213_v47 = vadd.f32 %v7102_v54, %v6827_v3 }
 0x99c   :  { %8165 = vtanh.f32 %v6213_v47 }
 0x9a6   :  { %v8166_v9 = vpop.eup %8165 }
 0x9a7   :  { %6218 = vst.msk [vmem:[%s11455_s16] sm:$0x3] %vm6217_vm5, %v8166_v9  ;;  %s8350_s16 = smov [#allocation4]  }
 0x9a8   :  { %s6225_s25 = sshll.u32 %s8350_s16, 4  ;;  %s6226_s25 = int_to_ptr.vmem [resolvable:$true] %s6225_s25 }
 0x9a9   :  { %s8177_s26 = scalar_lea.vmem %s6226_s25, 64  ;;  %p8182_p2 = scmp.lt.s32.totalorder %s6226_s25, %s6226_s25 }
 0x9aa   :  { %p8178_p1 = scmp.ne.s32.totalorder %s6226_s25, %s8177_s26  ;;  %p8183_p3 = scmp.lt.s32.totalorder %s8177_s26, %s8177_s26 }
 0x9ac   :  { %p8184_p4 = por %p8183_p3, %p8182_p2 }
 0x9ae   :  { %v5837_v35 = vpop.xlane.xlu1 %5836  ;;  %p8185_p5 = pnand %p8184_p4, %p8178_p1 }
 0x9af   :  { %v5839_v60 = vrot.slane %v5837_v35, 1  ;;  %v5842_v10 = vsub.f32 %v5818_v32, %v5837_v35  ;;  %v5843_v17 = vsub.f32 %v5819_v62, %v5837_v35 }
 0x9b1   :  { %v5844_v59 = vsub.f32 %v5820_v18, %v5839_v60  ;;  %v5845_v4 = vsub.f32 %v5821_v21, %v5839_v60  ;;  %v5846_v13 = vmul.f32 1.442695, %v5842_v10  ;;  %v5848_v33 = vmul.f32 1.442695, %v5843_v17 }
 0x9b3   :  { %v5850_v38 = vmul.f32 1.442695, %v5844_v59  ;;  %v5852_v43 = vmul.f32 1.442695, %v5845_v4 }
 0x9b5   :  { %8167 = vpow2.f32 %v5850_v38 }
 0x9b6   :  { %8169 = vpow2.f32 %v5852_v43 }
 0x9b7   :  { %8171 = vpow2.f32 %v5846_v13 }
 0x9b8   :  { %8173 = vpow2.f32 %v5848_v33 }
 0x9bf   :  { %v8168_v50 = vpop.eup %8167 }
 0x9c0   :  { %v8170_v57 = vpop.eup %8169  ;;  %v5858_v15 = vrot.slane %v8168_v50, 7 }
 0x9c1   :  { %v8172_v45 = vpop.eup %8171  ;;  %v5860_v37 = vrot.slane %v8170_v57, 7 }
 0x9c2   :  { %v8174_v11 = vpop.eup %8173  ;;  %v5859_v29 = vsel %vm5827_vm4, %v5858_v15, %v8172_v45 }
 0x9c3   :  { %v5861_v19 = vsel %vm5827_vm4, %v5860_v37, %v8174_v11  ;;  %v5864_v20 = vsel %vm194_vm2, %v5859_v29, 0.0 }
 0x9c4   :  { %v5865_v52 = vsel %vm194_vm2, %v5861_v19, 0.0 }
 0x9c5   :  { %v5866_v44 = vadd.f32 %v5865_v52, %v5864_v20 }
 0x9c7   :  { %5867 = vadd.xlane.f32.xlu0 %v5866_v44 }
 0xa54   :  { %v5868_v22 = vpop.xlane.xlu0 %5867 }
 0xa55   :  { %8175 = vlog2.f32 %v5868_v22 }
 0xa5f   :  { %v8176_v27 = vpop.eup %8175 }
 0xa60   :  { %v5870_v26 = vmul.f32 0.6931472, %v8176_v27 }
 0xa62   :  { %v5872_v2 = vrot.slane %v5870_v26, 1  ;;  %v5875_v46 = vsub.f32 %v5842_v10, %v5870_v26  ;;  %v5876_v36 = vsub.f32 %v5843_v17, %v5870_v26 }
 0xa64   :  { %v5877_v42 = vsub.f32 %v5844_v59, %v5872_v2  ;;  %v5878_v5 = vsub.f32 %v5845_v4, %v5872_v2  ;;  %v5883_v12 = vcombine.low %v5875_v46, %v5876_v36 }
 0xa66   :  { %v5891_v48 = vcombine.low %v5877_v42, %v5878_v5  ;;  %v5890_v23 = vrot.slane %v5883_v12, %v5889_v51 }
 0xa68   :  { %v5898_v40 = vrot.slane %v5891_v48, %v5889_v51 }
 0xa6a   :  { %v5903_v16 = vrot.slane %v5898_v40, 7 }
 0xa6c   :  { %v5904_v31 = vsel %vm5827_vm4, %v5903_v16, %v5890_v23 }
 0xa6d   :  { %v5906_v34 = vsel %vm5905_vm6, %v5903_v16, %v5904_v31 }
 0xa6e   :  { %v5908_v53 = vsel %vm5907_vm7, %v5903_v16, %v5906_v34 }
 0xa6f   :  { %v5910_v7 = vsel %vm5909_vm8, %v5903_v16, %v5908_v53 }
 0xa70   :  { %5912 = vst [vmem:[#allocation4] sm:$0xf] %v5910_v7 }
 0xa71   :  { %8188 = shalt.err (!%p8185_p5)
}
 0xa72   :  { %s8189_s29 = scalar_lea.hbm %s11454_s15, 64 }
 0xa73   :  { %p8190_p6 = scmp.ne.s32.totalorder %s11454_s15, %s8189_s29  ;;  %p8193_p7 = scmp.lt.u32.totalorder %s8189_s29, %s11454_s15 }
 0xa75   :  { %p8195_p8 = pnand %p8193_p7, %p8190_p6 }
 0xa77   :  { %8198 = shalt.err (!%p8195_p8)
}
 0xa78   :  { %6228 = dma.vmem_to_hbm [thread:$0]  %s6226_s25, 64, %s11454_s15, [#allocation5]  }
 0xa79   :  { %8267 = dma.done.wait [#allocation5], 64  }
 0xa7a   :  { %8268 = vsyncadd [#allocation5], 4294967232 }
 0xa7b   :  { %6236 = vsyncpa [#allocation5], 1 }

</bundles_post_ra>
